<compile_context>
chip_gen: v5e
topology: v5e:2x2
jax: 0.10.0
libtpu: 0.0.40
codegen_flags: <defaults>
</compile_context>

<pallas_src>
import functools

import jax
import jax.numpy as jnp
from jax.experimental import pallas as pl
from jax.experimental.pallas import tpu as pltpu

EPS = 1e-5
LANE = 128


def _round_up(x, m):
    return (x + m - 1) // m * m


def _pad2(x, rows, cols):
    r, c = x.shape
    if r == rows and c == cols:
        return x
    return jnp.pad(x, ((0, rows - r), (0, cols - c)))


def _apply_act(y, act):
    if act == "relu":
        return jnp.maximum(y, 0.0)
    if act == "tanh":
        return jnp.tanh(y)
    return y


# ---------------------------------------------------------------------------
# Pallas kernel 1: full-K bf16 matmul + in-kernel BatchNorm statistics.
# ---------------------------------------------------------------------------
def _matmul_stats_kernel(a_ref, b_ref, y_ref, mean_ref, var_ref, *, inv_m):
    y = jnp.dot(a_ref[...], b_ref[...], preferred_element_type=jnp.float32)
    y_ref[...] = y
    # Zero-padded rows contribute 0 to both sums; dividing by the true M
    # (baked in as inv_m) keeps the statistics exact.
    mean = jnp.sum(y, axis=0, keepdims=True) * inv_m
    ex2 = jnp.sum(y * y, axis=0, keepdims=True) * inv_m
    mean_ref[...] = mean
    var_ref[...] = ex2 - mean * mean


def matmul_with_stats(a_bf16, b):
    """a: [M, K] bf16 patches, b: [K, C] weights.
    Returns (y [Mp, Np] f32, mean [Np] f32, var [Np] f32)."""
    M, K = a_bf16.shape
    Kb, C = b.shape
    assert K == Kb
    Mp, Kp, Np = _round_up(M, 8), _round_up(K, LANE), _round_up(C, LANE)
    a_p = _pad2(a_bf16.astype(jnp.bfloat16), Mp, Kp)
    b_p = _pad2(b.astype(jnp.bfloat16), Kp, Np)
    tn = LANE
    y, mean, var = pl.pallas_call(
        functools.partial(_matmul_stats_kernel, inv_m=1.0 / float(M)),
        out_shape=(jax.ShapeDtypeStruct((Mp, Np), jnp.float32),
                   jax.ShapeDtypeStruct((1, Np), jnp.float32),
                   jax.ShapeDtypeStruct((1, Np), jnp.float32)),
        grid_spec=pltpu.PrefetchScalarGridSpec(
            num_scalar_prefetch=0,
            grid=(Np // tn,),
            in_specs=[pl.BlockSpec((Mp, Kp), lambda j: (0, 0)),
                      pl.BlockSpec((Kp, tn), lambda j: (0, j))],
            out_specs=(pl.BlockSpec((Mp, tn), lambda j: (0, j)),
                       pl.BlockSpec((1, tn), lambda j: (0, j)),
                       pl.BlockSpec((1, tn), lambda j: (0, j)))),
        compiler_params=pltpu.CompilerParams(
            dimension_semantics=("parallel",)),
    )(a_p, b_p)
    return y, mean[0], var[0]


# ---------------------------------------------------------------------------
# Pallas kernel 2: full-K bf16 matmul + bias + activation epilogue (final conv).
# ---------------------------------------------------------------------------
def _matmul_bias_act_kernel(a_ref, b_ref, bias_ref, o_ref, *, act):
    y = jnp.dot(a_ref[...], b_ref[...], preferred_element_type=jnp.float32)
    o_ref[...] = _apply_act(y + bias_ref[...], act).astype(o_ref.dtype)


def matmul_bias_act(a_bf16, b, bias, act="none"):
    M, K = a_bf16.shape
    _, C = b.shape
    Mp, Kp, Np = _round_up(M, 8), _round_up(K, LANE), _round_up(C, LANE)
    a_p = _pad2(a_bf16.astype(jnp.bfloat16), Mp, Kp)
    b_p = _pad2(b.astype(jnp.bfloat16), Kp, Np)
    bias_p = jnp.pad(bias.astype(jnp.float32), (0, Np - C)).reshape(1, Np)
    tn = LANE
    return pl.pallas_call(
        functools.partial(_matmul_bias_act_kernel, act=act),
        out_shape=jax.ShapeDtypeStruct((Mp, Np), jnp.float32),
        grid_spec=pltpu.PrefetchScalarGridSpec(
            num_scalar_prefetch=0,
            grid=(Np // tn,),
            in_specs=[pl.BlockSpec((Mp, Kp), lambda j: (0, 0)),
                      pl.BlockSpec((Kp, tn), lambda j: (0, j)),
                      pl.BlockSpec((1, tn), lambda j: (0, j))],
            out_specs=pl.BlockSpec((Mp, tn), lambda j: (0, j))),
        compiler_params=pltpu.CompilerParams(
            dimension_semantics=("parallel",)),
    )(a_p, b_p, bias_p)


# ---------------------------------------------------------------------------
# Pallas kernel 3: fused BN-apply (per-channel affine) + activation
#                  (+ optional residual add) on the 128-lane-padded slab.
# ---------------------------------------------------------------------------
def _affine_act_kernel(y_ref, scale_ref, shift_ref, o_ref, *, act):
    y = y_ref[...] * scale_ref[...] + shift_ref[...]
    o_ref[...] = _apply_act(y, act).astype(o_ref.dtype)


def _affine_act_res_kernel(y_ref, scale_ref, shift_ref, res_ref, o_ref, *, act):
    y = (y_ref[...] * scale_ref[...] + shift_ref[...]
         + res_ref[...].astype(jnp.float32))
    o_ref[...] = _apply_act(y, act).astype(o_ref.dtype)


def affine_act(y_pad, scale, shift, act="none", residual_slab=None,
               out_dtype=jnp.bfloat16):
    Mp, Np = y_pad.shape
    C = scale.shape[0]
    scale_p = jnp.pad(scale.astype(jnp.float32), (0, Np - C)).reshape(1, Np)
    shift_p = jnp.pad(shift.astype(jnp.float32), (0, Np - C)).reshape(1, Np)
    full = lambda i: (0, 0)
    in_specs = [pl.BlockSpec((Mp, Np), full),
                pl.BlockSpec((1, Np), full),
                pl.BlockSpec((1, Np), full)]
    args = [y_pad, scale_p, shift_p]
    if residual_slab is None:
        kernel = functools.partial(_affine_act_kernel, act=act)
    else:
        kernel = functools.partial(_affine_act_res_kernel, act=act)
        in_specs.append(pl.BlockSpec((Mp, Np), full))
        args.append(residual_slab)
    return pl.pallas_call(
        kernel,
        out_shape=jax.ShapeDtypeStruct((Mp, Np), out_dtype),
        grid_spec=pltpu.PrefetchScalarGridSpec(
            num_scalar_prefetch=0, grid=(1,),
            in_specs=in_specs,
            out_specs=pl.BlockSpec((Mp, Np), full)),
        compiler_params=pltpu.CompilerParams(
            dimension_semantics=("arbitrary",)),
    )(*args)


# ---------------------------------------------------------------------------
# Conv plumbing (glue): padding, im2col (bf16), weight flattening.
# ---------------------------------------------------------------------------
def _im2col(x, kh, kw, stride):
    """x: NHWC (already padded, bf16) -> ([N*oh*ow, kh*kw*C], (N, oh, ow))."""
    # TODO(synk): gather the patches inside the matmul kernel (Element-offset
    # index_map over the padded NHWC tensor) instead of materializing the
    # kh*kw-times-larger patch matrix in HBM.
    N, H, W, C = x.shape
    oh = (H - kh) // stride + 1
    ow = (W - kw) // stride + 1
    cols = []
    for i in range(kh):
        for j in range(kw):
            cols.append(x[:, i:i + stride * (oh - 1) + 1:stride,
                          j:j + stride * (ow - 1) + 1:stride, :])
    patches = jnp.concatenate(cols, axis=-1)
    return patches.reshape(N * oh * ow, kh * kw * C), (N, oh, ow)


def _conv_weight_matrix(w):
    """PyTorch Conv2d weight (Cout, Cin, kh, kw) -> (kh*kw*Cin, Cout)."""
    Cout, Cin, kh, kw = w.shape
    return jnp.transpose(w, (2, 3, 1, 0)).reshape(kh * kw * Cin, Cout)


def _subpixel_weight_matrix(w):
    """ConvTranspose2d(k=3, s=2, p=1, out_pad=1) weight (Cin, Cout, 3, 3) ->
    combined (4*Cin, 4*Cout) matrix: a 2x2 stride-1 conv over the input
    (zero-padded by 1 on bottom/right) produces all 4 output parities."""
    Cin, Cout = w.shape[0], w.shape[1]
    k_of = {(0, 0): 1, (1, 0): 2, (1, 1): 0}   # (parity, tap) -> kernel index
    w4 = jnp.zeros((2, 2, Cin, 2, 2, Cout), w.dtype)
    for py in (0, 1):
        for px in (0, 1):
            for da in (0, 1):
                for db in (0, 1):
                    kh = k_of.get((py, da))
                    kw = k_of.get((px, db))
                    if kh is None or kw is None:
                        continue
                    w4 = w4.at[da, db, :, py, px, :].set(w[:, :, kh, kw])
    return w4.reshape(4 * Cin, 4 * Cout)


def _bn_scale_shift(mean, var, gamma, beta):
    var = jnp.maximum(var, 0.0)
    scale = gamma * jax.lax.rsqrt(var + EPS)
    shift = beta - mean * scale
    return scale, shift


# ---------------------------------------------------------------------------
# Layer helpers
# ---------------------------------------------------------------------------
def conv_bn_act(x_nhwc, w, gamma, beta, *, stride, pad, pad_mode, act,
                residual_slab=None):
    """Conv2d (no bias) -> BatchNorm2d (batch stats) -> act (+ residual)."""
    Cout, _, kh, kw = w.shape
    x = x_nhwc.astype(jnp.bfloat16)
    if pad > 0:
        mode = "reflect" if pad_mode == "reflect" else "constant"
        x = jnp.pad(x, ((0, 0), (pad, pad), (pad, pad), (0, 0)), mode=mode)
    patches, (N, OH, OW) = _im2col(x, kh, kw, stride)
    y_pad, mean, var = matmul_with_stats(patches, _conv_weight_matrix(w))
    scale, shift = _bn_scale_shift(mean[:Cout], var[:Cout], gamma, beta)
    slab = affine_act(y_pad, scale, shift, act=act, residual_slab=residual_slab)
    M = N * OH * OW
    act_nhwc = slab[:M, :Cout].reshape(N, OH, OW, Cout)
    return act_nhwc, slab


def conv_transpose_bn_relu(x_nhwc, w, gamma, beta):
    """ConvTranspose2d(k=3, s=2, p=1, out_pad=1, no bias) -> BN -> ReLU,
    via the subpixel decomposition + depth-to-space."""
    Cin, Cout = w.shape[0], w.shape[1]
    N, H, W, _ = x_nhwc.shape
    x = jnp.pad(x_nhwc.astype(jnp.bfloat16), ((0, 0), (0, 1), (0, 1), (0, 0)))
    patches, _ = _im2col(x, 2, 2, 1)                     # [N*H*W, 4*Cin]
    y_pad, mean_c, var_c = matmul_with_stats(patches, _subpixel_weight_matrix(w))
    # Pool the per-(parity, channel) statistics over the 4 output parities.
    mean4 = mean_c[:4 * Cout].reshape(4, Cout)
    ex2_4 = var_c[:4 * Cout].reshape(4, Cout) + mean4 * mean4
    mean = jnp.mean(mean4, axis=0)
    var = jnp.mean(ex2_4, axis=0) - mean * mean
    scale, shift = _bn_scale_shift(mean, var, gamma, beta)
    slab = affine_act(y_pad, jnp.tile(scale, 4), jnp.tile(shift, 4), act="relu")
    M = N * H * W
    out = slab[:M, :4 * Cout].reshape(N, H, W, 2, 2, Cout)
    out = jnp.transpose(out, (0, 1, 3, 2, 4, 5)).reshape(N, 2 * H, 2 * W, Cout)
    return out


def final_conv_tanh(x_nhwc, w, bias):
    """ReflectionPad(3) -> Conv7x7(bias) -> Tanh, bias+tanh fused in-kernel."""
    Cout = w.shape[0]
    x = jnp.pad(x_nhwc.astype(jnp.bfloat16), ((0, 0), (3, 3), (3, 3), (0, 0)),
                mode="reflect")
    patches, (N, OH, OW) = _im2col(x, 7, 7, 1)
    y_pad = matmul_bias_act(patches, _conv_weight_matrix(w), bias, act="tanh")
    M = N * OH * OW
    return y_pad[:M, :Cout].reshape(N, OH, OW, Cout)


# ---------------------------------------------------------------------------
# Parameters (deterministic, synthetic)
# ---------------------------------------------------------------------------
def init_params(key, input_nc=3, output_nc=3, ngf=8, n_blocks=2):
    n_keys = 1 + 2 + 2 * n_blocks + 2 + 2
    keys = list(jax.random.split(key, n_keys))
    ki = iter(keys)

    def wn(shape):
        return 0.05 * jax.random.normal(next(ki), shape, jnp.float32)

    p = {}
    p["c0_w"] = wn((ngf, input_nc, 7, 7))
    p["c0_g"] = jnp.ones((ngf,), jnp.float32)
    p["c0_b"] = jnp.zeros((ngf,), jnp.float32)
    for i in range(2):
        mult = 2 ** i
        co = ngf * mult * 2
        p[f"d{i}_w"] = wn((co, ngf * mult, 3, 3))
        p[f"d{i}_g"] = jnp.ones((co,), jnp.float32)
        p[f"d{i}_b"] = jnp.zeros((co,), jnp.float32)
    dim = ngf * 4
    for b in range(n_blocks):
        p[f"r{b}_w1"] = wn((dim, dim, 3, 3))
        p[f"r{b}_g1"] = jnp.ones((dim,), jnp.float32)
        p[f"r{b}_b1"] = jnp.zeros((dim,), jnp.float32)
        p[f"r{b}_w2"] = wn((dim, dim, 3, 3))
        p[f"r{b}_g2"] = jnp.ones((dim,), jnp.float32)
        p[f"r{b}_b2"] = jnp.zeros((dim,), jnp.float32)
    for i in range(2):
        mult = 2 ** (2 - i)
        ci, co = ngf * mult, ngf * mult // 2
        p[f"u{i}_w"] = wn((ci, co, 3, 3))        # ConvTranspose2d layout (Cin, Cout, k, k)
        p[f"u{i}_g"] = jnp.ones((co,), jnp.float32)
        p[f"u{i}_b"] = jnp.zeros((co,), jnp.float32)
    p["cf_w"] = wn((output_nc, ngf, 7, 7))
    p["cf_bias"] = 0.05 * jax.random.normal(next(ki), (output_nc,), jnp.float32)
    return p


# ---------------------------------------------------------------------------
# Forward pass (mirrors ResnetGenerator.forward)
# ---------------------------------------------------------------------------
def resnet_generator_forward(params, x_nchw, n_blocks=2):
    x = jnp.transpose(x_nchw.astype(jnp.float32), (0, 2, 3, 1))  # NCHW -> NHWC

    # initial: ReflectionPad(3), Conv7x7 (no bias), BN, ReLU
    x, slab = conv_bn_act(x, params["c0_w"], params["c0_g"], params["c0_b"],
                          stride=1, pad=3, pad_mode="reflect", act="relu")

    # downsampling: Conv3x3 stride 2, zero pad 1, BN, ReLU
    for i in range(2):
        x, slab = conv_bn_act(x, params[f"d{i}_w"], params[f"d{i}_g"],
                              params[f"d{i}_b"], stride=2, pad=1,
                              pad_mode="zero", act="relu")

    # resnet blocks: (reflect pad1, conv, BN, ReLU, reflect pad1, conv, BN) + skip
    for b in range(n_blocks):
        h, _ = conv_bn_act(x, params[f"r{b}_w1"], params[f"r{b}_g1"],
                           params[f"r{b}_b1"], stride=1, pad=1,
                           pad_mode="reflect", act="relu")
        # residual skip fused into the BN-apply kernel of the second conv
        x, slab = conv_bn_act(h, params[f"r{b}_w2"], params[f"r{b}_g2"],
                              params[f"r{b}_b2"], stride=1, pad=1,
                              pad_mode="reflect", act="none",
                              residual_slab=slab)

    # upsampling: ConvTranspose3x3 stride 2 (subpixel), BN, ReLU
    for i in range(2):
        x = conv_transpose_bn_relu(x, params[f"u{i}_w"], params[f"u{i}_g"],
                                   params[f"u{i}_b"])

    # final: ReflectionPad(3), Conv7x7 (with bias), Tanh
    y = final_conv_tanh(x, params["cf_w"], params["cf_bias"])
    return jnp.transpose(y, (0, 3, 1, 2))  # NHWC -> NCHW


if __name__ == "__main__":
    # batch=2, input_nc=output_nc=3, spatial 16x16, ngf=8, n_blocks=2.
    INPUT_NC, OUTPUT_NC, NGF, N_BLOCKS = 3, 3, 8, 2
    key = jax.random.PRNGKey(0)
    pkey, xkey = jax.random.split(key)
    params = init_params(pkey, INPUT_NC, OUTPUT_NC, NGF, N_BLOCKS)
    x = jax.random.normal(xkey, (2, INPUT_NC, 16, 16), jnp.float32)

    fwd = jax.jit(functools.partial(resnet_generator_forward, n_blocks=N_BLOCKS))
    out = fwd(params, x)
    out = jax.block_until_ready(out)

    assert out.shape == (2, OUTPUT_NC, 16, 16), out.shape
    assert bool(jnp.all(jnp.isfinite(out)))
    assert bool(jnp.all(jnp.abs(out) <= 1.0))  # tanh output range
    print("KERNEL_OK")
</pallas_src>

<mosaic_0001>
module attributes {stable_mosaic.version = 11 : i64} {
  func.func @_matmul_stats_kernel(%arg0: i32, %arg1: memref<512x256xbf16, #tpu.memory_space<vmem>>, %arg2: memref<256x128xbf16, #tpu.memory_space<vmem>>, %arg3: memref<512x128xf32, #tpu.memory_space<vmem>>, %arg4: memref<1x128xf32, #tpu.memory_space<vmem>>, %arg5: memref<1x128xf32, #tpu.memory_space<vmem>>) attributes {dimension_semantics = [#tpu.dimension_semantics<parallel>], iteration_bounds = array<i64: 1>, scalar_prefetch = 0 : i64, scratch_operands = 0 : i64, tpu.core_type = #tpu.core_type<tc>, window_params = [{pipeline_mode = #tpu.pipeline_mode<synchronous>, transform_indices = @transform_0, window_bounds = array<i64: 512, 256>}, {transform_indices = @transform_1, window_bounds = array<i64: 256, 128>}, {transform_indices = @transform_2, window_bounds = array<i64: 512, 128>}, {transform_indices = @transform_3, window_bounds = array<i64: 1, 128>}, {transform_indices = @transform_4, window_bounds = array<i64: 1, 128>}]} {
    %c0 = arith.constant 0 : index
    %c0_0 = arith.constant 0 : index
    %0 = vector.load %arg1[%c0, %c0_0] : memref<512x256xbf16, #tpu.memory_space<vmem>>, vector<512x256xbf16>
    %c0_1 = arith.constant 0 : index
    %c0_2 = arith.constant 0 : index
    %1 = vector.load %arg2[%c0_1, %c0_2] : memref<256x128xbf16, #tpu.memory_space<vmem>>, vector<256x128xbf16>
    %cst = arith.constant dense<0.000000e+00> : vector<512x128xf32>
    %2 = tpu.matmul %0, %1, %cst {dimension_numbers = #tpu.dot_dimension_numbers<[1], [0], [0], [1], [0, 0, 1, 1], [], []>} : vector<512x256xbf16>, vector<256x128xbf16>, vector<512x128xf32> -> vector<512x128xf32>
    %c0_3 = arith.constant 0 : index
    %c0_4 = arith.constant 0 : index
    %3 = vector.load %arg3[%c0_3, %c0_4] : memref<512x128xf32, #tpu.memory_space<vmem>>, vector<512x128xf32>
    tpu.vector_store %arg3[%c0_3, %c0_4], %2 {strides = array<i32>} : memref<512x128xf32, #tpu.memory_space<vmem>>, vector<512x128xf32>,
    %cst_5 = arith.constant dense<0.000000e+00> : vector<128xf32>
    %4 = vector.multi_reduction <add>, %2, %cst_5 [0] : vector<512x128xf32> to vector<128xf32>
    %5 = vector.shape_cast %4 : vector<128xf32> to vector<1x128xf32>
    %cst_6 = arith.constant 0.001953125 : f32
    %6 = vector.broadcast %cst_6 : f32 to vector<1x128xf32>
    %7 = arith.mulf %5, %6 : vector<1x128xf32>
    %8 = arith.mulf %2, %2 : vector<512x128xf32>
    %cst_7 = arith.constant dense<0.000000e+00> : vector<128xf32>
    %9 = vector.multi_reduction <add>, %8, %cst_7 [0] : vector<512x128xf32> to vector<128xf32>
    %10 = vector.shape_cast %9 : vector<128xf32> to vector<1x128xf32>
    %cst_8 = arith.constant 0.001953125 : f32
    %11 = vector.broadcast %cst_8 : f32 to vector<1x128xf32>
    %12 = arith.mulf %10, %11 : vector<1x128xf32>
    %c0_9 = arith.constant 0 : index
    %c0_10 = arith.constant 0 : index
    %13 = vector.load %arg4[%c0_9, %c0_10] : memref<1x128xf32, #tpu.memory_space<vmem>>, vector<1x128xf32>
    tpu.vector_store %arg4[%c0_9, %c0_10], %7 {strides = array<i32>} : memref<1x128xf32, #tpu.memory_space<vmem>>, vector<1x128xf32>,
    %14 = arith.mulf %7, %7 : vector<1x128xf32>
    %15 = arith.subf %12, %14 : vector<1x128xf32>
    %c0_11 = arith.constant 0 : index
    %c0_12 = arith.constant 0 : index
    %16 = vector.load %arg5[%c0_11, %c0_12] : memref<1x128xf32, #tpu.memory_space<vmem>>, vector<1x128xf32>
    tpu.vector_store %arg5[%c0_11, %c0_12], %15 {strides = array<i32>} : memref<1x128xf32, #tpu.memory_space<vmem>>, vector<1x128xf32>,
    return
  }
  func.func @transform_0(%arg0: i32) -> (i32, i32) {
    %c0_i32 = arith.constant 0 : i32
    %c0_i32_0 = arith.constant 0 : i32
    %c0_i32_1 = arith.constant 0 : i32
    return %c0_i32, %c0_i32_0 : i32, i32
  }
  func.func @transform_1(%arg0: i32) -> (i32, i32) {
    %c0_i32 = arith.constant 0 : i32
    %c0_i32_0 = arith.constant 0 : i32
    return %c0_i32, %arg0 : i32, i32
  }
  func.func @transform_2(%arg0: i32) -> (i32, i32) {
    %c0_i32 = arith.constant 0 : i32
    %c0_i32_0 = arith.constant 0 : i32
    return %c0_i32, %arg0 : i32, i32
  }
  func.func @transform_3(%arg0: i32) -> (i32, i32) {
    %c0_i32 = arith.constant 0 : i32
    %c0_i32_0 = arith.constant 0 : i32
    return %c0_i32, %arg0 : i32, i32
  }
  func.func @transform_4(%arg0: i32) -> (i32, i32) {
    %c0_i32 = arith.constant 0 : i32
    %c0_i32_0 = arith.constant 0 : i32
    return %c0_i32, %arg0 : i32, i32
  }
}

module attributes {stable_mosaic.version = 11 : i64} {
  func.func @_affine_act_kernel(%arg0: i32, %arg1: memref<512x128xf32, #tpu.memory_space<vmem>>, %arg2: memref<1x128xf32, #tpu.memory_space<vmem>>, %arg3: memref<1x128xf32, #tpu.memory_space<vmem>>, %arg4: memref<512x128xbf16, #tpu.memory_space<vmem>>) attributes {dimension_semantics = [#tpu.dimension_semantics<arbitrary>], iteration_bounds = array<i64: 1>, scalar_prefetch = 0 : i64, scratch_operands = 0 : i64, tpu.core_type = #tpu.core_type<tc>, window_params = [{pipeline_mode = #tpu.pipeline_mode<synchronous>, transform_indices = @transform_0, window_bounds = array<i64: 512, 128>}, {pipeline_mode = #tpu.pipeline_mode<synchronous>, transform_indices = @transform_1, window_bounds = array<i64: 1, 128>}, {pipeline_mode = #tpu.pipeline_mode<synchronous>, transform_indices = @transform_2, window_bounds = array<i64: 1, 128>}, {pipeline_mode = #tpu.pipeline_mode<synchronous>, transform_indices = @transform_3, window_bounds = array<i64: 512, 128>}]} {
    %c0 = arith.constant 0 : index
    %c0_0 = arith.constant 0 : index
    %0 = vector.load %arg1[%c0, %c0_0] : memref<512x128xf32, #tpu.memory_space<vmem>>, vector<512x128xf32>
    %c0_1 = arith.constant 0 : index
    %c0_2 = arith.constant 0 : index
    %1 = vector.load %arg2[%c0_1, %c0_2] : memref<1x128xf32, #tpu.memory_space<vmem>>, vector<1x128xf32>
    %2 = vector.broadcast %1 : vector<1x128xf32> to vector<512x128xf32>
    %3 = arith.mulf %0, %2 : vector<512x128xf32>
    %c0_3 = arith.constant 0 : index
    %c0_4 = arith.constant 0 : index
    %4 = vector.load %arg3[%c0_3, %c0_4] : memref<1x128xf32, #tpu.memory_space<vmem>>, vector<1x128xf32>
    %5 = vector.broadcast %4 : vector<1x128xf32> to vector<512x128xf32>
    %6 = arith.addf %3, %5 : vector<512x128xf32>
    %cst = arith.constant 0.000000e+00 : f32
    %7 = vector.broadcast %cst : f32 to vector<512x128xf32>
    %8 = arith.maximumf %6, %7 : vector<512x128xf32>
    %9 = arith.truncf %8 : vector<512x128xf32> to vector<512x128xbf16>
    %c0_5 = arith.constant 0 : index
    %c0_6 = arith.constant 0 : index
    %10 = vector.load %arg4[%c0_5, %c0_6] : memref<512x128xbf16, #tpu.memory_space<vmem>>, vector<512x128xbf16>
    tpu.vector_store %arg4[%c0_5, %c0_6], %9 {strides = array<i32>} : memref<512x128xbf16, #tpu.memory_space<vmem>>, vector<512x128xbf16>,
    return
  }
  func.func @transform_0(%arg0: i32) -> (i32, i32) {
    %c0_i32 = arith.constant 0 : i32
    %c0_i32_0 = arith.constant 0 : i32
    %c0_i32_1 = arith.constant 0 : i32
    return %c0_i32, %c0_i32_0 : i32, i32
  }
  func.func @transform_1(%arg0: i32) -> (i32, i32) {
    %c0_i32 = arith.constant 0 : i32
    %c0_i32_0 = arith.constant 0 : i32
    %c0_i32_1 = arith.constant 0 : i32
    return %c0_i32, %c0_i32_0 : i32, i32
  }
  func.func @transform_2(%arg0: i32) -> (i32, i32) {
    %c0_i32 = arith.constant 0 : i32
    %c0_i32_0 = arith.constant 0 : i32
    %c0_i32_1 = arith.constant 0 : i32
    return %c0_i32, %c0_i32_0 : i32, i32
  }
  func.func @transform_3(%arg0: i32) -> (i32, i32) {
    %c0_i32 = arith.constant 0 : i32
    %c0_i32_0 = arith.constant 0 : i32
    %c0_i32_1 = arith.constant 0 : i32
    return %c0_i32, %c0_i32_0 : i32, i32
  }
}

module attributes {stable_mosaic.version = 11 : i64} {
  func.func @_affine_act_kernel(%arg0: i32, %arg1: memref<128x128xf32, #tpu.memory_space<vmem>>, %arg2: memref<1x128xf32, #tpu.memory_space<vmem>>, %arg3: memref<1x128xf32, #tpu.memory_space<vmem>>, %arg4: memref<128x128xbf16, #tpu.memory_space<vmem>>) attributes {dimension_semantics = [#tpu.dimension_semantics<arbitrary>], iteration_bounds = array<i64: 1>, scalar_prefetch = 0 : i64, scratch_operands = 0 : i64, tpu.core_type = #tpu.core_type<tc>, window_params = [{pipeline_mode = #tpu.pipeline_mode<synchronous>, transform_indices = @transform_0, window_bounds = array<i64: 128, 128>}, {pipeline_mode = #tpu.pipeline_mode<synchronous>, transform_indices = @transform_1, window_bounds = array<i64: 1, 128>}, {pipeline_mode = #tpu.pipeline_mode<synchronous>, transform_indices = @transform_2, window_bounds = array<i64: 1, 128>}, {pipeline_mode = #tpu.pipeline_mode<synchronous>, transform_indices = @transform_3, window_bounds = array<i64: 128, 128>}]} {
    %c0 = arith.constant 0 : index
    %c0_0 = arith.constant 0 : index
    %0 = vector.load %arg1[%c0, %c0_0] : memref<128x128xf32, #tpu.memory_space<vmem>>, vector<128x128xf32>
    %c0_1 = arith.constant 0 : index
    %c0_2 = arith.constant 0 : index
    %1 = vector.load %arg2[%c0_1, %c0_2] : memref<1x128xf32, #tpu.memory_space<vmem>>, vector<1x128xf32>
    %2 = vector.broadcast %1 : vector<1x128xf32> to vector<128x128xf32>
    %3 = arith.mulf %0, %2 : vector<128x128xf32>
    %c0_3 = arith.constant 0 : index
    %c0_4 = arith.constant 0 : index
    %4 = vector.load %arg3[%c0_3, %c0_4] : memref<1x128xf32, #tpu.memory_space<vmem>>, vector<1x128xf32>
    %5 = vector.broadcast %4 : vector<1x128xf32> to vector<128x128xf32>
    %6 = arith.addf %3, %5 : vector<128x128xf32>
    %cst = arith.constant 0.000000e+00 : f32
    %7 = vector.broadcast %cst : f32 to vector<128x128xf32>
    %8 = arith.maximumf %6, %7 : vector<128x128xf32>
    %9 = arith.truncf %8 : vector<128x128xf32> to vector<128x128xbf16>
    %c0_5 = arith.constant 0 : index
    %c0_6 = arith.constant 0 : index
    %10 = vector.load %arg4[%c0_5, %c0_6] : memref<128x128xbf16, #tpu.memory_space<vmem>>, vector<128x128xbf16>
    tpu.vector_store %arg4[%c0_5, %c0_6], %9 {strides = array<i32>} : memref<128x128xbf16, #tpu.memory_space<vmem>>, vector<128x128xbf16>,
    return
  }
  func.func @transform_0(%arg0: i32) -> (i32, i32) {
    %c0_i32 = arith.constant 0 : i32
    %c0_i32_0 = arith.constant 0 : i32
    %c0_i32_1 = arith.constant 0 : i32
    return %c0_i32, %c0_i32_0 : i32, i32
  }
  func.func @transform_1(%arg0: i32) -> (i32, i32) {
    %c0_i32 = arith.constant 0 : i32
    %c0_i32_0 = arith.constant 0 : i32
    %c0_i32_1 = arith.constant 0 : i32
    return %c0_i32, %c0_i32_0 : i32, i32
  }
  func.func @transform_2(%arg0: i32) -> (i32, i32) {
    %c0_i32 = arith.constant 0 : i32
    %c0_i32_0 = arith.constant 0 : i32
    %c0_i32_1 = arith.constant 0 : i32
    return %c0_i32, %c0_i32_0 : i32, i32
  }
  func.func @transform_3(%arg0: i32) -> (i32, i32) {
    %c0_i32 = arith.constant 0 : i32
    %c0_i32_0 = arith.constant 0 : i32
    %c0_i32_1 = arith.constant 0 : i32
    return %c0_i32, %c0_i32_0 : i32, i32
  }
}

module attributes {stable_mosaic.version = 11 : i64} {
  func.func @_matmul_stats_kernel(%arg0: i32, %arg1: memref<128x128xbf16, #tpu.memory_space<vmem>>, %arg2: memref<128x128xbf16, #tpu.memory_space<vmem>>, %arg3: memref<128x128xf32, #tpu.memory_space<vmem>>, %arg4: memref<1x128xf32, #tpu.memory_space<vmem>>, %arg5: memref<1x128xf32, #tpu.memory_space<vmem>>) attributes {dimension_semantics = [#tpu.dimension_semantics<parallel>], iteration_bounds = array<i64: 1>, scalar_prefetch = 0 : i64, scratch_operands = 0 : i64, tpu.core_type = #tpu.core_type<tc>, window_params = [{pipeline_mode = #tpu.pipeline_mode<synchronous>, transform_indices = @transform_0, window_bounds = array<i64: 128, 128>}, {transform_indices = @transform_1, window_bounds = array<i64: 128, 128>}, {transform_indices = @transform_2, window_bounds = array<i64: 128, 128>}, {transform_indices = @transform_3, window_bounds = array<i64: 1, 128>}, {transform_indices = @transform_4, window_bounds = array<i64: 1, 128>}]} {
    %c0 = arith.constant 0 : index
    %c0_0 = arith.constant 0 : index
    %0 = vector.load %arg1[%c0, %c0_0] : memref<128x128xbf16, #tpu.memory_space<vmem>>, vector<128x128xbf16>
    %c0_1 = arith.constant 0 : index
    %c0_2 = arith.constant 0 : index
    %1 = vector.load %arg2[%c0_1, %c0_2] : memref<128x128xbf16, #tpu.memory_space<vmem>>, vector<128x128xbf16>
    %cst = arith.constant dense<0.000000e+00> : vector<128x128xf32>
    %2 = tpu.matmul %0, %1, %cst {dimension_numbers = #tpu.dot_dimension_numbers<[1], [0], [0], [1], [0, 0, 1, 1], [], []>} : vector<128x128xbf16>, vector<128x128xbf16>, vector<128x128xf32> -> vector<128x128xf32>
    %c0_3 = arith.constant 0 : index
    %c0_4 = arith.constant 0 : index
    %3 = vector.load %arg3[%c0_3, %c0_4] : memref<128x128xf32, #tpu.memory_space<vmem>>, vector<128x128xf32>
    tpu.vector_store %arg3[%c0_3, %c0_4], %2 {strides = array<i32>} : memref<128x128xf32, #tpu.memory_space<vmem>>, vector<128x128xf32>,
    %cst_5 = arith.constant dense<0.000000e+00> : vector<128xf32>
    %4 = vector.multi_reduction <add>, %2, %cst_5 [0] : vector<128x128xf32> to vector<128xf32>
    %5 = vector.shape_cast %4 : vector<128xf32> to vector<1x128xf32>
    %cst_6 = arith.constant 7.812500e-03 : f32
    %6 = vector.broadcast %cst_6 : f32 to vector<1x128xf32>
    %7 = arith.mulf %5, %6 : vector<1x128xf32>
    %8 = arith.mulf %2, %2 : vector<128x128xf32>
    %cst_7 = arith.constant dense<0.000000e+00> : vector<128xf32>
    %9 = vector.multi_reduction <add>, %8, %cst_7 [0] : vector<128x128xf32> to vector<128xf32>
    %10 = vector.shape_cast %9 : vector<128xf32> to vector<1x128xf32>
    %cst_8 = arith.constant 7.812500e-03 : f32
    %11 = vector.broadcast %cst_8 : f32 to vector<1x128xf32>
    %12 = arith.mulf %10, %11 : vector<1x128xf32>
    %c0_9 = arith.constant 0 : index
    %c0_10 = arith.constant 0 : index
    %13 = vector.load %arg4[%c0_9, %c0_10] : memref<1x128xf32, #tpu.memory_space<vmem>>, vector<1x128xf32>
    tpu.vector_store %arg4[%c0_9, %c0_10], %7 {strides = array<i32>} : memref<1x128xf32, #tpu.memory_space<vmem>>, vector<1x128xf32>,
    %14 = arith.mulf %7, %7 : vector<1x128xf32>
    %15 = arith.subf %12, %14 : vector<1x128xf32>
    %c0_11 = arith.constant 0 : index
    %c0_12 = arith.constant 0 : index
    %16 = vector.load %arg5[%c0_11, %c0_12] : memref<1x128xf32, #tpu.memory_space<vmem>>, vector<1x128xf32>
    tpu.vector_store %arg5[%c0_11, %c0_12], %15 {strides = array<i32>} : memref<1x128xf32, #tpu.memory_space<vmem>>, vector<1x128xf32>,
    return
  }
  func.func @transform_0(%arg0: i32) -> (i32, i32) {
    %c0_i32 = arith.constant 0 : i32
    %c0_i32_0 = arith.constant 0 : i32
    %c0_i32_1 = arith.constant 0 : i32
    return %c0_i32, %c0_i32_0 : i32, i32
  }
  func.func @transform_1(%arg0: i32) -> (i32, i32) {
    %c0_i32 = arith.constant 0 : i32
    %c0_i32_0 = arith.constant 0 : i32
    return %c0_i32, %arg0 : i32, i32
  }
  func.func @transform_2(%arg0: i32) -> (i32, i32) {
    %c0_i32 = arith.constant 0 : i32
    %c0_i32_0 = arith.constant 0 : i32
    return %c0_i32, %arg0 : i32, i32
  }
  func.func @transform_3(%arg0: i32) -> (i32, i32) {
    %c0_i32 = arith.constant 0 : i32
    %c0_i32_0 = arith.constant 0 : i32
    return %c0_i32, %arg0 : i32, i32
  }
  func.func @transform_4(%arg0: i32) -> (i32, i32) {
    %c0_i32 = arith.constant 0 : i32
    %c0_i32_0 = arith.constant 0 : i32
    return %c0_i32, %arg0 : i32, i32
  }
}

module attributes {stable_mosaic.version = 11 : i64} {
  func.func @_matmul_stats_kernel(%arg0: i32, %arg1: memref<32x256xbf16, #tpu.memory_space<vmem>>, %arg2: memref<256x128xbf16, #tpu.memory_space<vmem>>, %arg3: memref<32x128xf32, #tpu.memory_space<vmem>>, %arg4: memref<1x128xf32, #tpu.memory_space<vmem>>, %arg5: memref<1x128xf32, #tpu.memory_space<vmem>>) attributes {dimension_semantics = [#tpu.dimension_semantics<parallel>], iteration_bounds = array<i64: 1>, scalar_prefetch = 0 : i64, scratch_operands = 0 : i64, tpu.core_type = #tpu.core_type<tc>, window_params = [{pipeline_mode = #tpu.pipeline_mode<synchronous>, transform_indices = @transform_0, window_bounds = array<i64: 32, 256>}, {transform_indices = @transform_1, window_bounds = array<i64: 256, 128>}, {transform_indices = @transform_2, window_bounds = array<i64: 32, 128>}, {transform_indices = @transform_3, window_bounds = array<i64: 1, 128>}, {transform_indices = @transform_4, window_bounds = array<i64: 1, 128>}]} {
    %c0 = arith.constant 0 : index
    %c0_0 = arith.constant 0 : index
    %0 = vector.load %arg1[%c0, %c0_0] : memref<32x256xbf16, #tpu.memory_space<vmem>>, vector<32x256xbf16>
    %c0_1 = arith.constant 0 : index
    %c0_2 = arith.constant 0 : index
    %1 = vector.load %arg2[%c0_1, %c0_2] : memref<256x128xbf16, #tpu.memory_space<vmem>>, vector<256x128xbf16>
    %cst = arith.constant dense<0.000000e+00> : vector<32x128xf32>
    %2 = tpu.matmul %0, %1, %cst {dimension_numbers = #tpu.dot_dimension_numbers<[1], [0], [0], [1], [0, 0, 1, 1], [], []>} : vector<32x256xbf16>, vector<256x128xbf16>, vector<32x128xf32> -> vector<32x128xf32>
    %c0_3 = arith.constant 0 : index
    %c0_4 = arith.constant 0 : index
    %3 = vector.load %arg3[%c0_3, %c0_4] : memref<32x128xf32, #tpu.memory_space<vmem>>, vector<32x128xf32>
    tpu.vector_store %arg3[%c0_3, %c0_4], %2 {strides = array<i32>} : memref<32x128xf32, #tpu.memory_space<vmem>>, vector<32x128xf32>,
    %cst_5 = arith.constant dense<0.000000e+00> : vector<128xf32>
    %4 = vector.multi_reduction <add>, %2, %cst_5 [0] : vector<32x128xf32> to vector<128xf32>
    %5 = vector.shape_cast %4 : vector<128xf32> to vector<1x128xf32>
    %cst_6 = arith.constant 3.125000e-02 : f32
    %6 = vector.broadcast %cst_6 : f32 to vector<1x128xf32>
    %7 = arith.mulf %5, %6 : vector<1x128xf32>
    %8 = arith.mulf %2, %2 : vector<32x128xf32>
    %cst_7 = arith.constant dense<0.000000e+00> : vector<128xf32>
    %9 = vector.multi_reduction <add>, %8, %cst_7 [0] : vector<32x128xf32> to vector<128xf32>
    %10 = vector.shape_cast %9 : vector<128xf32> to vector<1x128xf32>
    %cst_8 = arith.constant 3.125000e-02 : f32
    %11 = vector.broadcast %cst_8 : f32 to vector<1x128xf32>
    %12 = arith.mulf %10, %11 : vector<1x128xf32>
    %c0_9 = arith.constant 0 : index
    %c0_10 = arith.constant 0 : index
    %13 = vector.load %arg4[%c0_9, %c0_10] : memref<1x128xf32, #tpu.memory_space<vmem>>, vector<1x128xf32>
    tpu.vector_store %arg4[%c0_9, %c0_10], %7 {strides = array<i32>} : memref<1x128xf32, #tpu.memory_space<vmem>>, vector<1x128xf32>,
    %14 = arith.mulf %7, %7 : vector<1x128xf32>
    %15 = arith.subf %12, %14 : vector<1x128xf32>
    %c0_11 = arith.constant 0 : index
    %c0_12 = arith.constant 0 : index
    %16 = vector.load %arg5[%c0_11, %c0_12] : memref<1x128xf32, #tpu.memory_space<vmem>>, vector<1x128xf32>
    tpu.vector_store %arg5[%c0_11, %c0_12], %15 {strides = array<i32>} : memref<1x128xf32, #tpu.memory_space<vmem>>, vector<1x128xf32>,
    return
  }
  func.func @transform_0(%arg0: i32) -> (i32, i32) {
    %c0_i32 = arith.constant 0 : i32
    %c0_i32_0 = arith.constant 0 : i32
    %c0_i32_1 = arith.constant 0 : i32
    return %c0_i32, %c0_i32_0 : i32, i32
  }
  func.func @transform_1(%arg0: i32) -> (i32, i32) {
    %c0_i32 = arith.constant 0 : i32
    %c0_i32_0 = arith.constant 0 : i32
    return %c0_i32, %arg0 : i32, i32
  }
  func.func @transform_2(%arg0: i32) -> (i32, i32) {
    %c0_i32 = arith.constant 0 : i32
    %c0_i32_0 = arith.constant 0 : i32
    return %c0_i32, %arg0 : i32, i32
  }
  func.func @transform_3(%arg0: i32) -> (i32, i32) {
    %c0_i32 = arith.constant 0 : i32
    %c0_i32_0 = arith.constant 0 : i32
    return %c0_i32, %arg0 : i32, i32
  }
  func.func @transform_4(%arg0: i32) -> (i32, i32) {
    %c0_i32 = arith.constant 0 : i32
    %c0_i32_0 = arith.constant 0 : i32
    return %c0_i32, %arg0 : i32, i32
  }
}

module attributes {stable_mosaic.version = 11 : i64} {
  func.func @_affine_act_kernel(%arg0: i32, %arg1: memref<32x128xf32, #tpu.memory_space<vmem>>, %arg2: memref<1x128xf32, #tpu.memory_space<vmem>>, %arg3: memref<1x128xf32, #tpu.memory_space<vmem>>, %arg4: memref<32x128xbf16, #tpu.memory_space<vmem>>) attributes {dimension_semantics = [#tpu.dimension_semantics<arbitrary>], iteration_bounds = array<i64: 1>, scalar_prefetch = 0 : i64, scratch_operands = 0 : i64, tpu.core_type = #tpu.core_type<tc>, window_params = [{pipeline_mode = #tpu.pipeline_mode<synchronous>, transform_indices = @transform_0, window_bounds = array<i64: 32, 128>}, {pipeline_mode = #tpu.pipeline_mode<synchronous>, transform_indices = @transform_1, window_bounds = array<i64: 1, 128>}, {pipeline_mode = #tpu.pipeline_mode<synchronous>, transform_indices = @transform_2, window_bounds = array<i64: 1, 128>}, {pipeline_mode = #tpu.pipeline_mode<synchronous>, transform_indices = @transform_3, window_bounds = array<i64: 32, 128>}]} {
    %c0 = arith.constant 0 : index
    %c0_0 = arith.constant 0 : index
    %0 = vector.load %arg1[%c0, %c0_0] : memref<32x128xf32, #tpu.memory_space<vmem>>, vector<32x128xf32>
    %c0_1 = arith.constant 0 : index
    %c0_2 = arith.constant 0 : index
    %1 = vector.load %arg2[%c0_1, %c0_2] : memref<1x128xf32, #tpu.memory_space<vmem>>, vector<1x128xf32>
    %2 = vector.broadcast %1 : vector<1x128xf32> to vector<32x128xf32>
    %3 = arith.mulf %0, %2 : vector<32x128xf32>
    %c0_3 = arith.constant 0 : index
    %c0_4 = arith.constant 0 : index
    %4 = vector.load %arg3[%c0_3, %c0_4] : memref<1x128xf32, #tpu.memory_space<vmem>>, vector<1x128xf32>
    %5 = vector.broadcast %4 : vector<1x128xf32> to vector<32x128xf32>
    %6 = arith.addf %3, %5 : vector<32x128xf32>
    %cst = arith.constant 0.000000e+00 : f32
    %7 = vector.broadcast %cst : f32 to vector<32x128xf32>
    %8 = arith.maximumf %6, %7 : vector<32x128xf32>
    %9 = arith.truncf %8 : vector<32x128xf32> to vector<32x128xbf16>
    %c0_5 = arith.constant 0 : index
    %c0_6 = arith.constant 0 : index
    %10 = vector.load %arg4[%c0_5, %c0_6] : memref<32x128xbf16, #tpu.memory_space<vmem>>, vector<32x128xbf16>
    tpu.vector_store %arg4[%c0_5, %c0_6], %9 {strides = array<i32>} : memref<32x128xbf16, #tpu.memory_space<vmem>>, vector<32x128xbf16>,
    return
  }
  func.func @transform_0(%arg0: i32) -> (i32, i32) {
    %c0_i32 = arith.constant 0 : i32
    %c0_i32_0 = arith.constant 0 : i32
    %c0_i32_1 = arith.constant 0 : i32
    return %c0_i32, %c0_i32_0 : i32, i32
  }
  func.func @transform_1(%arg0: i32) -> (i32, i32) {
    %c0_i32 = arith.constant 0 : i32
    %c0_i32_0 = arith.constant 0 : i32
    %c0_i32_1 = arith.constant 0 : i32
    return %c0_i32, %c0_i32_0 : i32, i32
  }
  func.func @transform_2(%arg0: i32) -> (i32, i32) {
    %c0_i32 = arith.constant 0 : i32
    %c0_i32_0 = arith.constant 0 : i32
    %c0_i32_1 = arith.constant 0 : i32
    return %c0_i32, %c0_i32_0 : i32, i32
  }
  func.func @transform_3(%arg0: i32) -> (i32, i32) {
    %c0_i32 = arith.constant 0 : i32
    %c0_i32_0 = arith.constant 0 : i32
    %c0_i32_1 = arith.constant 0 : i32
    return %c0_i32, %c0_i32_0 : i32, i32
  }
}

module attributes {stable_mosaic.version = 11 : i64} {
  func.func @_matmul_stats_kernel(%arg0: i32, %arg1: memref<32x384xbf16, #tpu.memory_space<vmem>>, %arg2: memref<384x128xbf16, #tpu.memory_space<vmem>>, %arg3: memref<32x128xf32, #tpu.memory_space<vmem>>, %arg4: memref<1x128xf32, #tpu.memory_space<vmem>>, %arg5: memref<1x128xf32, #tpu.memory_space<vmem>>) attributes {dimension_semantics = [#tpu.dimension_semantics<parallel>], iteration_bounds = array<i64: 1>, scalar_prefetch = 0 : i64, scratch_operands = 0 : i64, tpu.core_type = #tpu.core_type<tc>, window_params = [{pipeline_mode = #tpu.pipeline_mode<synchronous>, transform_indices = @transform_0, window_bounds = array<i64: 32, 384>}, {transform_indices = @transform_1, window_bounds = array<i64: 384, 128>}, {transform_indices = @transform_2, window_bounds = array<i64: 32, 128>}, {transform_indices = @transform_3, window_bounds = array<i64: 1, 128>}, {transform_indices = @transform_4, window_bounds = array<i64: 1, 128>}]} {
    %c0 = arith.constant 0 : index
    %c0_0 = arith.constant 0 : index
    %0 = vector.load %arg1[%c0, %c0_0] : memref<32x384xbf16, #tpu.memory_space<vmem>>, vector<32x384xbf16>
    %c0_1 = arith.constant 0 : index
    %c0_2 = arith.constant 0 : index
    %1 = vector.load %arg2[%c0_1, %c0_2] : memref<384x128xbf16, #tpu.memory_space<vmem>>, vector<384x128xbf16>
    %cst = arith.constant dense<0.000000e+00> : vector<32x128xf32>
    %2 = tpu.matmul %0, %1, %cst {dimension_numbers = #tpu.dot_dimension_numbers<[1], [0], [0], [1], [0, 0, 1, 1], [], []>} : vector<32x384xbf16>, vector<384x128xbf16>, vector<32x128xf32> -> vector<32x128xf32>
    %c0_3 = arith.constant 0 : index
    %c0_4 = arith.constant 0 : index
    %3 = vector.load %arg3[%c0_3, %c0_4] : memref<32x128xf32, #tpu.memory_space<vmem>>, vector<32x128xf32>
    tpu.vector_store %arg3[%c0_3, %c0_4], %2 {strides = array<i32>} : memref<32x128xf32, #tpu.memory_space<vmem>>, vector<32x128xf32>,
    %cst_5 = arith.constant dense<0.000000e+00> : vector<128xf32>
    %4 = vector.multi_reduction <add>, %2, %cst_5 [0] : vector<32x128xf32> to vector<128xf32>
    %5 = vector.shape_cast %4 : vector<128xf32> to vector<1x128xf32>
    %cst_6 = arith.constant 3.125000e-02 : f32
    %6 = vector.broadcast %cst_6 : f32 to vector<1x128xf32>
    %7 = arith.mulf %5, %6 : vector<1x128xf32>
    %8 = arith.mulf %2, %2 : vector<32x128xf32>
    %cst_7 = arith.constant dense<0.000000e+00> : vector<128xf32>
    %9 = vector.multi_reduction <add>, %8, %cst_7 [0] : vector<32x128xf32> to vector<128xf32>
    %10 = vector.shape_cast %9 : vector<128xf32> to vector<1x128xf32>
    %cst_8 = arith.constant 3.125000e-02 : f32
    %11 = vector.broadcast %cst_8 : f32 to vector<1x128xf32>
    %12 = arith.mulf %10, %11 : vector<1x128xf32>
    %c0_9 = arith.constant 0 : index
    %c0_10 = arith.constant 0 : index
    %13 = vector.load %arg4[%c0_9, %c0_10] : memref<1x128xf32, #tpu.memory_space<vmem>>, vector<1x128xf32>
    tpu.vector_store %arg4[%c0_9, %c0_10], %7 {strides = array<i32>} : memref<1x128xf32, #tpu.memory_space<vmem>>, vector<1x128xf32>,
    %14 = arith.mulf %7, %7 : vector<1x128xf32>
    %15 = arith.subf %12, %14 : vector<1x128xf32>
    %c0_11 = arith.constant 0 : index
    %c0_12 = arith.constant 0 : index
    %16 = vector.load %arg5[%c0_11, %c0_12] : memref<1x128xf32, #tpu.memory_space<vmem>>, vector<1x128xf32>
    tpu.vector_store %arg5[%c0_11, %c0_12], %15 {strides = array<i32>} : memref<1x128xf32, #tpu.memory_space<vmem>>, vector<1x128xf32>,
    return
  }
  func.func @transform_0(%arg0: i32) -> (i32, i32) {
    %c0_i32 = arith.constant 0 : i32
    %c0_i32_0 = arith.constant 0 : i32
    %c0_i32_1 = arith.constant 0 : i32
    return %c0_i32, %c0_i32_0 : i32, i32
  }
  func.func @transform_1(%arg0: i32) -> (i32, i32) {
    %c0_i32 = arith.constant 0 : i32
    %c0_i32_0 = arith.constant 0 : i32
    return %c0_i32, %arg0 : i32, i32
  }
  func.func @transform_2(%arg0: i32) -> (i32, i32) {
    %c0_i32 = arith.constant 0 : i32
    %c0_i32_0 = arith.constant 0 : i32
    return %c0_i32, %arg0 : i32, i32
  }
  func.func @transform_3(%arg0: i32) -> (i32, i32) {
    %c0_i32 = arith.constant 0 : i32
    %c0_i32_0 = arith.constant 0 : i32
    return %c0_i32, %arg0 : i32, i32
  }
  func.func @transform_4(%arg0: i32) -> (i32, i32) {
    %c0_i32 = arith.constant 0 : i32
    %c0_i32_0 = arith.constant 0 : i32
    return %c0_i32, %arg0 : i32, i32
  }
}

module attributes {stable_mosaic.version = 11 : i64} {
  func.func @_affine_act_res_kernel(%arg0: i32, %arg1: memref<32x128xf32, #tpu.memory_space<vmem>>, %arg2: memref<1x128xf32, #tpu.memory_space<vmem>>, %arg3: memref<1x128xf32, #tpu.memory_space<vmem>>, %arg4: memref<32x128xbf16, #tpu.memory_space<vmem>>, %arg5: memref<32x128xbf16, #tpu.memory_space<vmem>>) attributes {dimension_semantics = [#tpu.dimension_semantics<arbitrary>], iteration_bounds = array<i64: 1>, scalar_prefetch = 0 : i64, scratch_operands = 0 : i64, tpu.core_type = #tpu.core_type<tc>, window_params = [{pipeline_mode = #tpu.pipeline_mode<synchronous>, transform_indices = @transform_0, window_bounds = array<i64: 32, 128>}, {pipeline_mode = #tpu.pipeline_mode<synchronous>, transform_indices = @transform_1, window_bounds = array<i64: 1, 128>}, {pipeline_mode = #tpu.pipeline_mode<synchronous>, transform_indices = @transform_2, window_bounds = array<i64: 1, 128>}, {pipeline_mode = #tpu.pipeline_mode<synchronous>, transform_indices = @transform_3, window_bounds = array<i64: 32, 128>}, {pipeline_mode = #tpu.pipeline_mode<synchronous>, transform_indices = @transform_4, window_bounds = array<i64: 32, 128>}]} {
    %c0 = arith.constant 0 : index
    %c0_0 = arith.constant 0 : index
    %0 = vector.load %arg1[%c0, %c0_0] : memref<32x128xf32, #tpu.memory_space<vmem>>, vector<32x128xf32>
    %c0_1 = arith.constant 0 : index
    %c0_2 = arith.constant 0 : index
    %1 = vector.load %arg2[%c0_1, %c0_2] : memref<1x128xf32, #tpu.memory_space<vmem>>, vector<1x128xf32>
    %2 = vector.broadcast %1 : vector<1x128xf32> to vector<32x128xf32>
    %3 = arith.mulf %0, %2 : vector<32x128xf32>
    %c0_3 = arith.constant 0 : index
    %c0_4 = arith.constant 0 : index
    %4 = vector.load %arg3[%c0_3, %c0_4] : memref<1x128xf32, #tpu.memory_space<vmem>>, vector<1x128xf32>
    %5 = vector.broadcast %4 : vector<1x128xf32> to vector<32x128xf32>
    %6 = arith.addf %3, %5 : vector<32x128xf32>
    %c0_5 = arith.constant 0 : index
    %c0_6 = arith.constant 0 : index
    %7 = vector.load %arg4[%c0_5, %c0_6] : memref<32x128xbf16, #tpu.memory_space<vmem>>, vector<32x128xbf16>
    %8 = arith.extf %7 : vector<32x128xbf16> to vector<32x128xf32>
    %9 = arith.addf %6, %8 : vector<32x128xf32>
    %10 = arith.truncf %9 : vector<32x128xf32> to vector<32x128xbf16>
    %c0_7 = arith.constant 0 : index
    %c0_8 = arith.constant 0 : index
    %11 = vector.load %arg5[%c0_7, %c0_8] : memref<32x128xbf16, #tpu.memory_space<vmem>>, vector<32x128xbf16>
    tpu.vector_store %arg5[%c0_7, %c0_8], %10 {strides = array<i32>} : memref<32x128xbf16, #tpu.memory_space<vmem>>, vector<32x128xbf16>,
    return
  }
  func.func @transform_0(%arg0: i32) -> (i32, i32) {
    %c0_i32 = arith.constant 0 : i32
    %c0_i32_0 = arith.constant 0 : i32
    %c0_i32_1 = arith.constant 0 : i32
    return %c0_i32, %c0_i32_0 : i32, i32
  }
  func.func @transform_1(%arg0: i32) -> (i32, i32) {
    %c0_i32 = arith.constant 0 : i32
    %c0_i32_0 = arith.constant 0 : i32
    %c0_i32_1 = arith.constant 0 : i32
    return %c0_i32, %c0_i32_0 : i32, i32
  }
  func.func @transform_2(%arg0: i32) -> (i32, i32) {
    %c0_i32 = arith.constant 0 : i32
    %c0_i32_0 = arith.constant 0 : i32
    %c0_i32_1 = arith.constant 0 : i32
    return %c0_i32, %c0_i32_0 : i32, i32
  }
  func.func @transform_3(%arg0: i32) -> (i32, i32) {
    %c0_i32 = arith.constant 0 : i32
    %c0_i32_0 = arith.constant 0 : i32
    %c0_i32_1 = arith.constant 0 : i32
    return %c0_i32, %c0_i32_0 : i32, i32
  }
  func.func @transform_4(%arg0: i32) -> (i32, i32) {
    %c0_i32 = arith.constant 0 : i32
    %c0_i32_0 = arith.constant 0 : i32
    %c0_i32_1 = arith.constant 0 : i32
    return %c0_i32, %c0_i32_0 : i32, i32
  }
}

module attributes {stable_mosaic.version = 11 : i64} {
  func.func @_matmul_stats_kernel(%arg0: i32, %arg1: memref<32x128xbf16, #tpu.memory_space<vmem>>, %arg2: memref<128x128xbf16, #tpu.memory_space<vmem>>, %arg3: memref<32x128xf32, #tpu.memory_space<vmem>>, %arg4: memref<1x128xf32, #tpu.memory_space<vmem>>, %arg5: memref<1x128xf32, #tpu.memory_space<vmem>>) attributes {dimension_semantics = [#tpu.dimension_semantics<parallel>], iteration_bounds = array<i64: 1>, scalar_prefetch = 0 : i64, scratch_operands = 0 : i64, tpu.core_type = #tpu.core_type<tc>, window_params = [{pipeline_mode = #tpu.pipeline_mode<synchronous>, transform_indices = @transform_0, window_bounds = array<i64: 32, 128>}, {transform_indices = @transform_1, window_bounds = array<i64: 128, 128>}, {transform_indices = @transform_2, window_bounds = array<i64: 32, 128>}, {transform_indices = @transform_3, window_bounds = array<i64: 1, 128>}, {transform_indices = @transform_4, window_bounds = array<i64: 1, 128>}]} {
    %c0 = arith.constant 0 : index
    %c0_0 = arith.constant 0 : index
    %0 = vector.load %arg1[%c0, %c0_0] : memref<32x128xbf16, #tpu.memory_space<vmem>>, vector<32x128xbf16>
    %c0_1 = arith.constant 0 : index
    %c0_2 = arith.constant 0 : index
    %1 = vector.load %arg2[%c0_1, %c0_2] : memref<128x128xbf16, #tpu.memory_space<vmem>>, vector<128x128xbf16>
    %cst = arith.constant dense<0.000000e+00> : vector<32x128xf32>
    %2 = tpu.matmul %0, %1, %cst {dimension_numbers = #tpu.dot_dimension_numbers<[1], [0], [0], [1], [0, 0, 1, 1], [], []>} : vector<32x128xbf16>, vector<128x128xbf16>, vector<32x128xf32> -> vector<32x128xf32>
    %c0_3 = arith.constant 0 : index
    %c0_4 = arith.constant 0 : index
    %3 = vector.load %arg3[%c0_3, %c0_4] : memref<32x128xf32, #tpu.memory_space<vmem>>, vector<32x128xf32>
    tpu.vector_store %arg3[%c0_3, %c0_4], %2 {strides = array<i32>} : memref<32x128xf32, #tpu.memory_space<vmem>>, vector<32x128xf32>,
    %cst_5 = arith.constant dense<0.000000e+00> : vector<128xf32>
    %4 = vector.multi_reduction <add>, %2, %cst_5 [0] : vector<32x128xf32> to vector<128xf32>
    %5 = vector.shape_cast %4 : vector<128xf32> to vector<1x128xf32>
    %cst_6 = arith.constant 3.125000e-02 : f32
    %6 = vector.broadcast %cst_6 : f32 to vector<1x128xf32>
    %7 = arith.mulf %5, %6 : vector<1x128xf32>
    %8 = arith.mulf %2, %2 : vector<32x128xf32>
    %cst_7 = arith.constant dense<0.000000e+00> : vector<128xf32>
    %9 = vector.multi_reduction <add>, %8, %cst_7 [0] : vector<32x128xf32> to vector<128xf32>
    %10 = vector.shape_cast %9 : vector<128xf32> to vector<1x128xf32>
    %cst_8 = arith.constant 3.125000e-02 : f32
    %11 = vector.broadcast %cst_8 : f32 to vector<1x128xf32>
    %12 = arith.mulf %10, %11 : vector<1x128xf32>
    %c0_9 = arith.constant 0 : index
    %c0_10 = arith.constant 0 : index
    %13 = vector.load %arg4[%c0_9, %c0_10] : memref<1x128xf32, #tpu.memory_space<vmem>>, vector<1x128xf32>
    tpu.vector_store %arg4[%c0_9, %c0_10], %7 {strides = array<i32>} : memref<1x128xf32, #tpu.memory_space<vmem>>, vector<1x128xf32>,
    %14 = arith.mulf %7, %7 : vector<1x128xf32>
    %15 = arith.subf %12, %14 : vector<1x128xf32>
    %c0_11 = arith.constant 0 : index
    %c0_12 = arith.constant 0 : index
    %16 = vector.load %arg5[%c0_11, %c0_12] : memref<1x128xf32, #tpu.memory_space<vmem>>, vector<1x128xf32>
    tpu.vector_store %arg5[%c0_11, %c0_12], %15 {strides = array<i32>} : memref<1x128xf32, #tpu.memory_space<vmem>>, vector<1x128xf32>,
    return
  }
  func.func @transform_0(%arg0: i32) -> (i32, i32) {
    %c0_i32 = arith.constant 0 : i32
    %c0_i32_0 = arith.constant 0 : i32
    %c0_i32_1 = arith.constant 0 : i32
    return %c0_i32, %c0_i32_0 : i32, i32
  }
  func.func @transform_1(%arg0: i32) -> (i32, i32) {
    %c0_i32 = arith.constant 0 : i32
    %c0_i32_0 = arith.constant 0 : i32
    return %c0_i32, %arg0 : i32, i32
  }
  func.func @transform_2(%arg0: i32) -> (i32, i32) {
    %c0_i32 = arith.constant 0 : i32
    %c0_i32_0 = arith.constant 0 : i32
    return %c0_i32, %arg0 : i32, i32
  }
  func.func @transform_3(%arg0: i32) -> (i32, i32) {
    %c0_i32 = arith.constant 0 : i32
    %c0_i32_0 = arith.constant 0 : i32
    return %c0_i32, %arg0 : i32, i32
  }
  func.func @transform_4(%arg0: i32) -> (i32, i32) {
    %c0_i32 = arith.constant 0 : i32
    %c0_i32_0 = arith.constant 0 : i32
    return %c0_i32, %arg0 : i32, i32
  }
}

module attributes {stable_mosaic.version = 11 : i64} {
  func.func @_matmul_bias_act_kernel(%arg0: i32, %arg1: memref<512x512xbf16, #tpu.memory_space<vmem>>, %arg2: memref<512x128xbf16, #tpu.memory_space<vmem>>, %arg3: memref<1x128xf32, #tpu.memory_space<vmem>>, %arg4: memref<512x128xf32, #tpu.memory_space<vmem>>) attributes {dimension_semantics = [#tpu.dimension_semantics<parallel>], iteration_bounds = array<i64: 1>, scalar_prefetch = 0 : i64, scratch_operands = 0 : i64, tpu.core_type = #tpu.core_type<tc>, window_params = [{pipeline_mode = #tpu.pipeline_mode<synchronous>, transform_indices = @transform_0, window_bounds = array<i64: 512, 512>}, {transform_indices = @transform_1, window_bounds = array<i64: 512, 128>}, {transform_indices = @transform_2, window_bounds = array<i64: 1, 128>}, {transform_indices = @transform_3, window_bounds = array<i64: 512, 128>}]} {
    %c0 = arith.constant 0 : index
    %c0_0 = arith.constant 0 : index
    %0 = vector.load %arg1[%c0, %c0_0] : memref<512x512xbf16, #tpu.memory_space<vmem>>, vector<512x512xbf16>
    %c0_1 = arith.constant 0 : index
    %c0_2 = arith.constant 0 : index
    %1 = vector.load %arg2[%c0_1, %c0_2] : memref<512x128xbf16, #tpu.memory_space<vmem>>, vector<512x128xbf16>
    %cst = arith.constant dense<0.000000e+00> : vector<512x128xf32>
    %2 = tpu.matmul %0, %1, %cst {dimension_numbers = #tpu.dot_dimension_numbers<[1], [0], [0], [1], [0, 0, 1, 1], [], []>} : vector<512x512xbf16>, vector<512x128xbf16>, vector<512x128xf32> -> vector<512x128xf32>
    %c0_3 = arith.constant 0 : index
    %c0_4 = arith.constant 0 : index
    %3 = vector.load %arg3[%c0_3, %c0_4] : memref<1x128xf32, #tpu.memory_space<vmem>>, vector<1x128xf32>
    %4 = vector.broadcast %3 : vector<1x128xf32> to vector<512x128xf32>
    %5 = arith.addf %2, %4 : vector<512x128xf32>
    %6 = math.tanh %5 : vector<512x128xf32>
    %c0_5 = arith.constant 0 : index
    %c0_6 = arith.constant 0 : index
    %7 = vector.load %arg4[%c0_5, %c0_6] : memref<512x128xf32, #tpu.memory_space<vmem>>, vector<512x128xf32>
    tpu.vector_store %arg4[%c0_5, %c0_6], %6 {strides = array<i32>} : memref<512x128xf32, #tpu.memory_space<vmem>>, vector<512x128xf32>,
    return
  }
  func.func @transform_0(%arg0: i32) -> (i32, i32) {
    %c0_i32 = arith.constant 0 : i32
    %c0_i32_0 = arith.constant 0 : i32
    %c0_i32_1 = arith.constant 0 : i32
    return %c0_i32, %c0_i32_0 : i32, i32
  }
  func.func @transform_1(%arg0: i32) -> (i32, i32) {
    %c0_i32 = arith.constant 0 : i32
    %c0_i32_0 = arith.constant 0 : i32
    return %c0_i32, %arg0 : i32, i32
  }
  func.func @transform_2(%arg0: i32) -> (i32, i32) {
    %c0_i32 = arith.constant 0 : i32
    %c0_i32_0 = arith.constant 0 : i32
    return %c0_i32, %arg0 : i32, i32
  }
  func.func @transform_3(%arg0: i32) -> (i32, i32) {
    %c0_i32 = arith.constant 0 : i32
    %c0_i32_0 = arith.constant 0 : i32
    return %c0_i32, %arg0 : i32, i32
  }
}

</mosaic_0001>

<bundles_post_ra>
// kernel: resnet_generator_forward.20
= control target key start
LH: loop header
LB: loop body
LE: loop exit
PB: predicated region body
PF: predicated region fallthrough
CT: control target
= control target key end

     0   :  { %s1049_s0 = inlined_call_operand.vmem [shape: f32[512,128], index: 0, kind: input, shape index: {}]   ;;  %s1050_s1 = inlined_call_operand.vmem [shape: f32[1,128], index: 1, kind: input, shape index: {}]   ;;  %s1051_s2 = inlined_call_operand.vmem [shape: f32[1,128], index: 2, kind: input, shape index: {}]   ;;  %s1052_s3 = inlined_call_operand.vmem [shape: bf16[512,128], index: 3, kind: output, shape index: {}]  }
   0x1   :  { %v14_v0 = vld [vmem:[%s1049_s0] sm:$0xff]  ;;  %v15_v1 = vld [vmem:[%s1049_s0 + $0x8] sm:$0xff]  ;;  %v16_v4 = vld [vmem:[%s1049_s0 + $0x10] sm:$0xff] }
   0x2   :  { %v632_v2 = vld [vmem:[%s1050_s1] ss:$0 sm:$0xff]  ;;  %v17_v5 = vld [vmem:[%s1049_s0 + $0x18] sm:$0xff]  ;;  %v19_v11 = vld [vmem:[%s1049_s0 + $0x28] sm:$0xff] }
   0x3   :  { %v637_v3 = vld [vmem:[%s1051_s2] ss:$0 sm:$0xff]  ;;  %v82_v7 = vmul.f32 %v632_v2, %v14_v0  ;;  %v83_v8 = vmul.f32 %v632_v2, %v15_v1  ;;  %v84_v9 = vmul.f32 %v632_v2, %v16_v4  ;;  %v85_v10 = vmul.f32 %v632_v2, %v17_v5  ;;  %v20_v12 = vld [vmem:[%s1049_s0 + $0x30] sm:$0xff]  ;;  %v21_v13 = vld [vmem:[%s1049_s0 + $0x38] sm:$0xff] }
   0x4   :  { %v18_v6 = vld [vmem:[%s1049_s0 + $0x20] sm:$0xff]  ;;  %v87_v15 = vmul.f32 %v632_v2, %v19_v11  ;;  %v88_v16 = vmul.f32 %v632_v2, %v20_v12  ;;  %v89_v17 = vmul.f32 %v632_v2, %v21_v13  ;;  %v23_v27 = vld [vmem:[%s1049_s0 + $0x48] sm:$0xff]  ;;  %v24_v32 = vld [vmem:[%s1049_s0 + $0x50] sm:$0xff] }
   0x5   :  { %v86_v14 = vmul.f32 %v632_v2, %v18_v6  ;;  %v150_v18 = vadd.f32 %v637_v3, %v82_v7  ;;  %v151_v19 = vadd.f32 %v637_v3, %v83_v8  ;;  %v152_v20 = vadd.f32 %v637_v3, %v84_v9  ;;  %v22_v26 = vld [vmem:[%s1049_s0 + $0x40] sm:$0xff]  ;;  %v25_v33 = vld [vmem:[%s1049_s0 + $0x58] sm:$0xff]  ;;  %v27_v39 = vld [vmem:[%s1049_s0 + $0x68] sm:$0xff] }
   0x6   :  { %v153_v21 = vadd.f32 %v637_v3, %v85_v10  ;;  %v155_v23 = vadd.f32 %v637_v3, %v87_v15  ;;  %v156_v24 = vadd.f32 %v637_v3, %v88_v16  ;;  %v157_v25 = vadd.f32 %v637_v3, %v89_v17  ;;  %v26_v38 = vld [vmem:[%s1049_s0 + $0x60] sm:$0xff]  ;;  %v28_v44 = vld [vmem:[%s1049_s0 + $0x70] sm:$0xff]  ;;  %v29_v45 = vld [vmem:[%s1049_s0 + $0x78] sm:$0xff] }
   0x7   :  { %v154_v22 = vadd.f32 %v637_v3, %v86_v14  ;;  %v214_v28 = vmax.f32 %v150_v18, 0.0  ;;  %v215_v29 = vmax.f32 %v151_v19, 0.0  ;;  %v216_v30 = vmax.f32 %v152_v20, 0.0  ;;  %v30_v58 = vld [vmem:[%s1049_s0 + $0x80] sm:$0xff]  ;;  %v31_v63 = vld [vmem:[%s1049_s0 + $0x88] sm:$0xff]  ;;  %v32_v6 = vld [vmem:[%s1049_s0 + $0x90] sm:$0xff] }
   0x8   :  { %v217_v31 = vmax.f32 %v153_v21, 0.0  ;;  %v219_v35 = vmax.f32 %v155_v23, 0.0  ;;  %v220_v36 = vmax.f32 %v156_v24, 0.0  ;;  %v221_v37 = vmax.f32 %v157_v25, 0.0  ;;  %v33_v7 = vld [vmem:[%s1049_s0 + $0x98] sm:$0xff]  ;;  %v34_v12 = vld [vmem:[%s1049_s0 + $0xa0] sm:$0xff] }
   0x9   :  { %v218_v34 = vmax.f32 %v154_v22, 0.0  ;;  %v413_v40 = vpack.c.bf16 %v215_v29, %v214_v28  ;;  %v90_v42 = vmul.f32 %v632_v2, %v22_v26  ;;  %v91_v43 = vmul.f32 %v632_v2, %v23_v27  ;;  %v35_v13 = vld [vmem:[%s1049_s0 + $0xa8] sm:$0xff]  ;;  %v36_v18 = vld [vmem:[%s1049_s0 + $0xb0] sm:$0xff]  ;;  %v37_v23 = vld [vmem:[%s1049_s0 + $0xb8] sm:$0xff] }
   0xa   :  { %v418_v41 = vpack.c.bf16 %v217_v31, %v216_v30  ;;  %v428_v47 = vpack.c.bf16 %v221_v37, %v220_v36  ;;  %v92_v48 = vmul.f32 %v632_v2, %v24_v32  ;;  %v93_v49 = vmul.f32 %v632_v2, %v25_v33  ;;  %v38_v28 = vld [vmem:[%s1049_s0 + $0xc0] sm:$0xff]  ;;  %v39_v37 = vld [vmem:[%s1049_s0 + $0xc8] sm:$0xff] }
   0xb   :  { %v423_v46 = vpack.c.bf16 %v219_v35, %v218_v34  ;;  %414 = vst [vmem:[%s1052_s3] sm:$0xff] %v413_v40   ;;  %v158_v50 = vadd.f32 %v637_v3, %v90_v42  ;;  %v159_v51 = vadd.f32 %v637_v3, %v91_v43  ;;  %v94_v52 = vmul.f32 %v632_v2, %v26_v38  ;;  %v40_v42 = vld [vmem:[%s1049_s0 + $0xd0] sm:$0xff]  ;;  %v41_v43 = vld [vmem:[%s1049_s0 + $0xd8] sm:$0xff] }
   0xc   :  { %v95_v53 = vmul.f32 %v632_v2, %v27_v39  ;;  %570 = vst [vmem:[%s1052_s3 + $0x8] sm:$0xff] %v418_v41   ;;  %v160_v54 = vadd.f32 %v637_v3, %v92_v48  ;;  %v161_v55 = vadd.f32 %v637_v3, %v93_v49  ;;  %v96_v56 = vmul.f32 %v632_v2, %v28_v44  ;;  %v42_v48 = vld [vmem:[%s1049_s0 + $0xe0] sm:$0xff]  ;;  %v43_v49 = vld [vmem:[%s1049_s0 + $0xe8] sm:$0xff] }
   0xd   :  { %v97_v57 = vmul.f32 %v632_v2, %v29_v45  ;;  %571 = vst [vmem:[%s1052_s3 + $0x10] sm:$0xff] %v423_v46   ;;  %v222_v59 = vmax.f32 %v158_v50, 0.0  ;;  %v223_v60 = vmax.f32 %v159_v51, 0.0  ;;  %v162_v61 = vadd.f32 %v637_v3, %v94_v52 }
   0xe   :  { %v163_v62 = vadd.f32 %v637_v3, %v95_v53  ;;  %572 = vst [vmem:[%s1052_s3 + $0x18] sm:$0xff] %v428_v47   ;;  %v224_v0 = vmax.f32 %v160_v54, 0.0  ;;  %v225_v1 = vmax.f32 %v161_v55, 0.0  ;;  %v164_v4 = vadd.f32 %v637_v3, %v96_v56  ;;  %v44_v54 = vld [vmem:[%s1049_s0 + $0xf0] sm:$0xff] }
   0xf   :  { %v165_v5 = vadd.f32 %v637_v3, %v97_v57  ;;  %v433_v8 = vpack.c.bf16 %v223_v60, %v222_v59  ;;  %v226_v9 = vmax.f32 %v162_v61, 0.0  ;;  %v98_v11 = vmul.f32 %v632_v2, %v30_v58  ;;  %v45_v59 = vld [vmem:[%s1049_s0 + $0xf8] sm:$0xff] }
  0x10   :  { %v227_v10 = vmax.f32 %v163_v62, 0.0  ;;  %v438_v14 = vpack.c.bf16 %v225_v1, %v224_v0  ;;  %v228_v15 = vmax.f32 %v164_v4, 0.0  ;;  %v99_v17 = vmul.f32 %v632_v2, %v31_v63  ;;  %v46_v0 = vld [vmem:[%s1049_s0 + $0x100] sm:$0xff] }
  0x11   :  { %v229_v16 = vmax.f32 %v165_v5, 0.0  ;;  %573 = vst [vmem:[%s1052_s3 + $0x20] sm:$0xff] %v433_v8   ;;  %v166_v20 = vadd.f32 %v637_v3, %v98_v11  ;;  %v100_v21 = vmul.f32 %v632_v2, %v32_v6  ;;  %v101_v22 = vmul.f32 %v632_v2, %v33_v7  ;;  %v47_v11 = vld [vmem:[%s1049_s0 + $0x108] sm:$0xff] }
  0x12   :  { %v443_v19 = vpack.c.bf16 %v227_v10, %v226_v9  ;;  %574 = vst [vmem:[%s1052_s3 + $0x28] sm:$0xff] %v438_v14   ;;  %v167_v25 = vadd.f32 %v637_v3, %v99_v17  ;;  %v102_v26 = vmul.f32 %v632_v2, %v34_v12  ;;  %v103_v27 = vmul.f32 %v632_v2, %v35_v13  ;;  %v49_v17 = vld [vmem:[%s1049_s0 + $0x118] sm:$0xff] }
  0x13   :  { %v448_v24 = vpack.c.bf16 %v229_v16, %v228_v15  ;;  %v230_v29 = vmax.f32 %v166_v20, 0.0  ;;  %v168_v30 = vadd.f32 %v637_v3, %v100_v21  ;;  %v169_v31 = vadd.f32 %v637_v3, %v101_v22  ;;  %v48_v16 = vld [vmem:[%s1049_s0 + $0x110] sm:$0xff]  ;;  %v50_v22 = vld [vmem:[%s1049_s0 + $0x120] sm:$0xff] }
  0x14   :  { %575 = vst [vmem:[%s1052_s3 + $0x30] sm:$0xff] %v443_v19   ;;  %v104_v32 = vmul.f32 %v632_v2, %v36_v18  ;;  %v231_v33 = vmax.f32 %v167_v25, 0.0  ;;  %v170_v34 = vadd.f32 %v637_v3, %v102_v26  ;;  %v171_v35 = vadd.f32 %v637_v3, %v103_v27 }
  0x15   :  { %576 = vst [vmem:[%s1052_s3 + $0x38] sm:$0xff] %v448_v24   ;;  %v105_v36 = vmul.f32 %v632_v2, %v37_v23  ;;  %v232_v38 = vmax.f32 %v168_v30, 0.0  ;;  %v233_v39 = vmax.f32 %v169_v31, 0.0  ;;  %v106_v41 = vmul.f32 %v632_v2, %v38_v28  ;;  %v51_v23 = vld [vmem:[%s1049_s0 + $0x128] sm:$0xff]  ;;  %v52_v28 = vld [vmem:[%s1049_s0 + $0x130] sm:$0xff] }
  0x16   :  { %v172_v40 = vadd.f32 %v637_v3, %v104_v32  ;;  %v453_v44 = vpack.c.bf16 %v231_v33, %v230_v29  ;;  %v234_v45 = vmax.f32 %v170_v34, 0.0  ;;  %v235_v46 = vmax.f32 %v171_v35, 0.0  ;;  %v53_v33 = vld [vmem:[%s1049_s0 + $0x138] sm:$0xff] }
  0x17   :  { %v173_v47 = vadd.f32 %v637_v3, %v105_v36  ;;  %v458_v50 = vpack.c.bf16 %v233_v39, %v232_v38  ;;  %v107_v52 = vmul.f32 %v632_v2, %v39_v37  ;;  %v174_v53 = vadd.f32 %v637_v3, %v106_v41  ;;  %v54_v38 = vld [vmem:[%s1049_s0 + $0x140] sm:$0xff] }
  0x18   :  { %v236_v51 = vmax.f32 %v172_v40, 0.0  ;;  %577 = vst [vmem:[%s1052_s3 + $0x40] sm:$0xff] %v453_v44   ;;  %v463_v55 = vpack.c.bf16 %v235_v46, %v234_v45  ;;  %v108_v57 = vmul.f32 %v632_v2, %v40_v42  ;;  %v109_v58 = vmul.f32 %v632_v2, %v41_v43 }
  0x19   :  { %v237_v56 = vmax.f32 %v173_v47, 0.0  ;;  %578 = vst [vmem:[%s1052_s3 + $0x48] sm:$0xff] %v458_v50   ;;  %v175_v60 = vadd.f32 %v637_v3, %v107_v52  ;;  %v238_v61 = vmax.f32 %v174_v53, 0.0  ;;  %v110_v62 = vmul.f32 %v632_v2, %v42_v48  ;;  %v55_v47 = vld [vmem:[%s1049_s0 + $0x148] sm:$0xff]  ;;  %v56_v52 = vld [vmem:[%s1049_s0 + $0x150] sm:$0xff]  ;;  %v57_v53 = vld [vmem:[%s1049_s0 + $0x158] sm:$0xff] }
  0x1a   :  { %v111_v63 = vmul.f32 %v632_v2, %v43_v49  ;;  %579 = vst [vmem:[%s1052_s3 + $0x50] sm:$0xff] %v463_v55   ;;  %v176_v4 = vadd.f32 %v637_v3, %v108_v57  ;;  %v177_v5 = vadd.f32 %v637_v3, %v109_v58  ;;  %v112_v6 = vmul.f32 %v632_v2, %v44_v54  ;;  %v58_v58 = vld [vmem:[%s1049_s0 + $0x160] sm:$0xff] }
  0x1b   :  { %v468_v1 = vpack.c.bf16 %v237_v56, %v236_v51  ;;  %v239_v7 = vmax.f32 %v175_v60, 0.0  ;;  %v178_v8 = vadd.f32 %v637_v3, %v110_v62  ;;  %v113_v10 = vmul.f32 %v632_v2, %v45_v59  ;;  %v59_v59 = vld [vmem:[%s1049_s0 + $0x168] sm:$0xff] }
  0x1c   :  { %v179_v9 = vadd.f32 %v637_v3, %v111_v63  ;;  %v240_v12 = vmax.f32 %v176_v4, 0.0  ;;  %v241_v13 = vmax.f32 %v177_v5, 0.0  ;;  %v180_v14 = vadd.f32 %v637_v3, %v112_v6 }
  0x1d   :  { %580 = vst [vmem:[%s1052_s3 + $0x58] sm:$0xff] %v468_v1   ;;  %v114_v15 = vmul.f32 %v632_v2, %v46_v0  ;;  %v473_v18 = vpack.c.bf16 %v239_v7, %v238_v61  ;;  %v242_v19 = vmax.f32 %v178_v8, 0.0  ;;  %v181_v21 = vadd.f32 %v637_v3, %v113_v10  ;;  %v60_v0 = vld [vmem:[%s1049_s0 + $0x170] sm:$0xff]  ;;  %v61_v7 = vld [vmem:[%s1049_s0 + $0x178] sm:$0xff] }
  0x1e   :  { %v243_v20 = vmax.f32 %v179_v9, 0.0  ;;  %v478_v24 = vpack.c.bf16 %v241_v13, %v240_v12  ;;  %v244_v25 = vmax.f32 %v180_v14, 0.0  ;;  %v115_v26 = vmul.f32 %v632_v2, %v47_v11  ;;  %v62_v12 = vld [vmem:[%s1049_s0 + $0x180] sm:$0xff] }
  0x1f   :  { %v182_v27 = vadd.f32 %v637_v3, %v114_v15  ;;  %581 = vst [vmem:[%s1052_s3 + $0x60] sm:$0xff] %v473_v18   ;;  %v245_v30 = vmax.f32 %v181_v21, 0.0  ;;  %v116_v31 = vmul.f32 %v632_v2, %v48_v16  ;;  %v117_v32 = vmul.f32 %v632_v2, %v49_v17  ;;  %v63_v21 = vld [vmem:[%s1049_s0 + $0x188] sm:$0xff] }
  0x20   :  { %v483_v29 = vpack.c.bf16 %v243_v20, %v242_v19  ;;  %582 = vst [vmem:[%s1052_s3 + $0x68] sm:$0xff] %v478_v24   ;;  %v183_v34 = vadd.f32 %v637_v3, %v115_v26  ;;  %v118_v36 = vmul.f32 %v632_v2, %v50_v22  ;;  %v119_v37 = vmul.f32 %v632_v2, %v51_v23  ;;  %v64_v26 = vld [vmem:[%s1049_s0 + $0x190] sm:$0xff] }
  0x21   :  { %v246_v35 = vmax.f32 %v182_v27, 0.0  ;;  %v488_v39 = vpack.c.bf16 %v245_v30, %v244_v25  ;;  %v184_v40 = vadd.f32 %v637_v3, %v116_v31  ;;  %v185_v41 = vadd.f32 %v637_v3, %v117_v32  ;;  %v65_v27 = vld [vmem:[%s1049_s0 + $0x198] sm:$0xff]  ;;  %v66_v32 = vld [vmem:[%s1049_s0 + $0x1a0] sm:$0xff] }
  0x22   :  { %583 = vst [vmem:[%s1052_s3 + $0x70] sm:$0xff] %v483_v29   ;;  %v120_v42 = vmul.f32 %v632_v2, %v52_v28  ;;  %v247_v43 = vmax.f32 %v183_v34, 0.0  ;;  %v186_v44 = vadd.f32 %v637_v3, %v118_v36  ;;  %v187_v45 = vadd.f32 %v637_v3, %v119_v37 }
  0x23   :  { %v121_v46 = vmul.f32 %v632_v2, %v53_v33  ;;  %584 = vst [vmem:[%s1052_s3 + $0x78] sm:$0xff] %v488_v39   ;;  %v248_v48 = vmax.f32 %v184_v40, 0.0  ;;  %v249_v49 = vmax.f32 %v185_v41, 0.0  ;;  %v122_v51 = vmul.f32 %v632_v2, %v54_v38  ;;  %v67_v33 = vld [vmem:[%s1049_s0 + $0x1a8] sm:$0xff]  ;;  %v68_v38 = vld [vmem:[%s1049_s0 + $0x1b0] sm:$0xff] }
  0x24   :  { %v188_v50 = vadd.f32 %v637_v3, %v120_v42  ;;  %v493_v54 = vpack.c.bf16 %v247_v43, %v246_v35  ;;  %v250_v55 = vmax.f32 %v186_v44, 0.0  ;;  %v251_v56 = vmax.f32 %v187_v45, 0.0  ;;  %v69_v43 = vld [vmem:[%s1049_s0 + $0x1b8] sm:$0xff] }
  0x25   :  { %v189_v57 = vadd.f32 %v637_v3, %v121_v46  ;;  %v498_v60 = vpack.c.bf16 %v249_v49, %v248_v48  ;;  %v123_v62 = vmul.f32 %v632_v2, %v55_v47  ;;  %v190_v63 = vadd.f32 %v637_v3, %v122_v51  ;;  %v70_v48 = vld [vmem:[%s1049_s0 + $0x1c0] sm:$0xff] }
  0x26   :  { %v252_v61 = vmax.f32 %v188_v50, 0.0  ;;  %585 = vst [vmem:[%s1052_s3 + $0x80] sm:$0xff] %v493_v54   ;;  %v503_v1 = vpack.c.bf16 %v251_v56, %v250_v55  ;;  %v124_v5 = vmul.f32 %v632_v2, %v56_v52  ;;  %v125_v6 = vmul.f32 %v632_v2, %v57_v53 }
  0x27   :  { %v253_v4 = vmax.f32 %v189_v57, 0.0  ;;  %586 = vst [vmem:[%s1052_s3 + $0x88] sm:$0xff] %v498_v60   ;;  %v191_v8 = vadd.f32 %v637_v3, %v123_v62  ;;  %v254_v9 = vmax.f32 %v190_v63, 0.0  ;;  %v126_v10 = vmul.f32 %v632_v2, %v58_v58  ;;  %v71_v57 = vld [vmem:[%s1049_s0 + $0x1c8] sm:$0xff]  ;;  %v72_v62 = vld [vmem:[%s1049_s0 + $0x1d0] sm:$0xff]  ;;  %v73_v63 = vld [vmem:[%s1049_s0 + $0x1d8] sm:$0xff] }
  0x28   :  { %v127_v11 = vmul.f32 %v632_v2, %v59_v59  ;;  %587 = vst [vmem:[%s1052_s3 + $0x90] sm:$0xff] %v503_v1   ;;  %v192_v14 = vadd.f32 %v637_v3, %v124_v5  ;;  %v193_v15 = vadd.f32 %v637_v3, %v125_v6  ;;  %v128_v16 = vmul.f32 %v632_v2, %v60_v0  ;;  %v74_v6 = vld [vmem:[%s1049_s0 + $0x1e0] sm:$0xff] }
  0x29   :  { %v508_v13 = vpack.c.bf16 %v253_v4, %v252_v61  ;;  %v255_v17 = vmax.f32 %v191_v8, 0.0  ;;  %v194_v18 = vadd.f32 %v637_v3, %v126_v10  ;;  %v129_v20 = vmul.f32 %v632_v2, %v61_v7  ;;  %v75_v7 = vld [vmem:[%s1049_s0 + $0x1e8] sm:$0xff] }
  0x2a   :  { %v195_v19 = vadd.f32 %v637_v3, %v127_v11  ;;  %v256_v22 = vmax.f32 %v192_v14, 0.0  ;;  %v257_v23 = vmax.f32 %v193_v15, 0.0  ;;  %v196_v24 = vadd.f32 %v637_v3, %v128_v16 }
  0x2b   :  { %588 = vst [vmem:[%s1052_s3 + $0x98] sm:$0xff] %v508_v13   ;;  %v130_v25 = vmul.f32 %v632_v2, %v62_v12  ;;  %v513_v28 = vpack.c.bf16 %v255_v17, %v254_v9  ;;  %v258_v29 = vmax.f32 %v194_v18, 0.0  ;;  %v197_v31 = vadd.f32 %v637_v3, %v129_v20  ;;  %v76_v12 = vld [vmem:[%s1049_s0 + $0x1f0] sm:$0xff]  ;;  %v77_v17 = vld [vmem:[%s1049_s0 + $0x1f8] sm:$0xff] }
  0x2c   :  { %v259_v30 = vmax.f32 %v195_v19, 0.0  ;;  %v518_v34 = vpack.c.bf16 %v257_v23, %v256_v22  ;;  %v260_v35 = vmax.f32 %v196_v24, 0.0  ;;  %v131_v36 = vmul.f32 %v632_v2, %v63_v21 }
  0x2d   :  { %v198_v37 = vadd.f32 %v637_v3, %v130_v25  ;;  %589 = vst [vmem:[%s1052_s3 + $0xa0] sm:$0xff] %v513_v28   ;;  %v261_v40 = vmax.f32 %v197_v31, 0.0  ;;  %v132_v41 = vmul.f32 %v632_v2, %v64_v26  ;;  %v133_v42 = vmul.f32 %v632_v2, %v65_v27 }
  0x2e   :  { %v523_v39 = vpack.c.bf16 %v259_v30, %v258_v29  ;;  %590 = vst [vmem:[%s1052_s3 + $0xa8] sm:$0xff] %v518_v34   ;;  %v199_v44 = vadd.f32 %v637_v3, %v131_v36  ;;  %v134_v46 = vmul.f32 %v632_v2, %v66_v32  ;;  %v135_v47 = vmul.f32 %v632_v2, %v67_v33 }
  0x2f   :  { %v262_v45 = vmax.f32 %v198_v37, 0.0  ;;  %v528_v49 = vpack.c.bf16 %v261_v40, %v260_v35  ;;  %v200_v50 = vadd.f32 %v637_v3, %v132_v41  ;;  %v201_v51 = vadd.f32 %v637_v3, %v133_v42 }
  0x30   :  { %591 = vst [vmem:[%s1052_s3 + $0xb0] sm:$0xff] %v523_v39   ;;  %v136_v52 = vmul.f32 %v632_v2, %v68_v38  ;;  %v263_v53 = vmax.f32 %v199_v44, 0.0  ;;  %v202_v54 = vadd.f32 %v637_v3, %v134_v46  ;;  %v203_v55 = vadd.f32 %v637_v3, %v135_v47 }
  0x31   :  { %v137_v56 = vmul.f32 %v632_v2, %v69_v43  ;;  %592 = vst [vmem:[%s1052_s3 + $0xb8] sm:$0xff] %v528_v49   ;;  %v264_v58 = vmax.f32 %v200_v50, 0.0  ;;  %v265_v59 = vmax.f32 %v201_v51, 0.0  ;;  %v138_v61 = vmul.f32 %v632_v2, %v70_v48 }
  0x32   :  { %v204_v60 = vadd.f32 %v637_v3, %v136_v52  ;;  %v533_v0 = vpack.c.bf16 %v263_v53, %v262_v45  ;;  %v266_v1 = vmax.f32 %v202_v54, 0.0  ;;  %v267_v4 = vmax.f32 %v203_v55, 0.0 }
  0x33   :  { %v205_v5 = vadd.f32 %v637_v3, %v137_v56  ;;  %v538_v8 = vpack.c.bf16 %v265_v59, %v264_v58  ;;  %v139_v10 = vmul.f32 %v632_v2, %v71_v57  ;;  %v206_v11 = vadd.f32 %v637_v3, %v138_v61 }
  0x34   :  { %v268_v9 = vmax.f32 %v204_v60, 0.0  ;;  %593 = vst [vmem:[%s1052_s3 + $0xc0] sm:$0xff] %v533_v0   ;;  %v543_v13 = vpack.c.bf16 %v267_v4, %v266_v1  ;;  %v140_v15 = vmul.f32 %v632_v2, %v72_v62  ;;  %v141_v16 = vmul.f32 %v632_v2, %v73_v63 }
  0x35   :  { %v269_v14 = vmax.f32 %v205_v5, 0.0  ;;  %594 = vst [vmem:[%s1052_s3 + $0xc8] sm:$0xff] %v538_v8   ;;  %v207_v18 = vadd.f32 %v637_v3, %v139_v10  ;;  %v270_v19 = vmax.f32 %v206_v11, 0.0  ;;  %v142_v20 = vmul.f32 %v632_v2, %v74_v6 }
  0x36   :  { %v143_v21 = vmul.f32 %v632_v2, %v75_v7  ;;  %595 = vst [vmem:[%s1052_s3 + $0xd0] sm:$0xff] %v543_v13   ;;  %v208_v23 = vadd.f32 %v637_v3, %v140_v15  ;;  %v209_v24 = vadd.f32 %v637_v3, %v141_v16  ;;  %v144_v25 = vmul.f32 %v632_v2, %v76_v12 }
  0x37   :  { %v548_v22 = vpack.c.bf16 %v269_v14, %v268_v9  ;;  %v271_v26 = vmax.f32 %v207_v18, 0.0  ;;  %v210_v27 = vadd.f32 %v637_v3, %v142_v20  ;;  %v145_v29 = vmul.f32 %v632_v2, %v77_v17 }
  0x38   :  { %v211_v28 = vadd.f32 %v637_v3, %v143_v21  ;;  %v272_v30 = vmax.f32 %v208_v23, 0.0  ;;  %v273_v31 = vmax.f32 %v209_v24, 0.0  ;;  %v212_v32 = vadd.f32 %v637_v3, %v144_v25 }
  0x39   :  { %596 = vst [vmem:[%s1052_s3 + $0xd8] sm:$0xff] %v548_v22   ;;  %v553_v33 = vpack.c.bf16 %v271_v26, %v270_v19  ;;  %v274_v34 = vmax.f32 %v210_v27, 0.0  ;;  %v213_v36 = vadd.f32 %v637_v3, %v145_v29 }
  0x3a   :  { %v275_v35 = vmax.f32 %v211_v28, 0.0  ;;  %v558_v37 = vpack.c.bf16 %v273_v31, %v272_v30  ;;  %v276_v38 = vmax.f32 %v212_v32, 0.0 }
  0x3b   :  { %597 = vst [vmem:[%s1052_s3 + $0xe0] sm:$0xff] %v553_v33   ;;  %v277_v39 = vmax.f32 %v213_v36, 0.0 }
  0x3c   :  { %v563_v2 = vpack.c.bf16 %v275_v35, %v274_v34  ;;  %598 = vst [vmem:[%s1052_s3 + $0xe8] sm:$0xff] %v558_v37  }
  0x3d   :  { %v568_v40 = vpack.c.bf16 %v277_v39, %v276_v38 }
  0x3e   :  { %599 = vst [vmem:[%s1052_s3 + $0xf0] sm:$0xff] %v563_v2  }
  0x3f   :  { %600 = vst [vmem:[%s1052_s3 + $0xf8] sm:$0xff] %v568_v40  }

// kernel: resnet_generator_forward.19
= control target key start
LH: loop header
LB: loop body
LE: loop exit
PB: predicated region body
PF: predicated region fallthrough
CT: control target
= control target key end

     0   :  { %s2423_s1 = inlined_call_operand.vmem [shape: bf16[256,128], index: 1, kind: input, shape index: {}]   ;;  %s2424_s0 = inlined_call_operand.vmem [shape: bf16[512,256], index: 0, kind: input, shape index: {}]   ;;  %s2425_s2 = inlined_call_operand.vmem [shape: f32[512,128], index: 2, kind: output, shape index: {0}]   ;;  %s2426_s3 = inlined_call_operand.vmem [shape: f32[1,128], index: 3, kind: output, shape index: {1}]   ;;  %s2427_s4 = inlined_call_operand.vmem [shape: f32[1,128], index: 4, kind: output, shape index: {2}]  }
   0x1   :  { %v1539_v0 = vld [vmem:[%s2423_s1 + $0x38] sm:$0xff]  ;;  %v1538_v2 = vld [vmem:[%s2423_s1 + $0x30] sm:$0xff]  ;;  %v1537_v4 = vld [vmem:[%s2423_s1 + $0x28] sm:$0xff] }
   0x2   :  { %v1547_v1 = vld [vmem:[%s2423_s1 + $0x78] sm:$0xff]  ;;  %526 = vmatpush.bf16.msra.mxu0 %v1539_v0  ;;  %v1546_v3 = vld [vmem:[%s2423_s1 + $0x70] sm:$0xff]  ;;  %1548 = vmatpush.bf16.msra.mxu2 %v1539_v0  ;;  %v1545_v5 = vld [vmem:[%s2423_s1 + $0x68] sm:$0xff] }
   0x3   :  { %695 = vmatpush.bf16.msra.mxu1 %v1547_v1  ;;  %1556 = vmatpush.bf16.msra.mxu3 %v1547_v1  ;;  %v1536_v6 = vld [vmem:[%s2423_s1 + $0x20] sm:$0xff]  ;;  %v1535_v8 = vld [vmem:[%s2423_s1 + $0x18] sm:$0xff]  ;;  %v1534_v10 = vld [vmem:[%s2423_s1 + $0x10] sm:$0xff] }
   0x4   :  { %v1544_v7 = vld [vmem:[%s2423_s1 + $0x60] sm:$0xff]  ;;  %v1543_v9 = vld [vmem:[%s2423_s1 + $0x58] sm:$0xff]  ;;  %v1542_v11 = vld [vmem:[%s2423_s1 + $0x50] sm:$0xff] }
   0x5   :  { %v1533_v12 = vld [vmem:[%s2423_s1 + $0x8] sm:$0xff]  ;;  %v1532_v14 = vld [vmem:[%s2423_s1] sm:$0xff]  ;;  %v1158_v22 = vld [vmem:[%s2424_s0 + $0x10] sm:$0xf] }
   0x6   :  { %527 = vmatpush.bf16.msra.mxu0 %v1538_v2  ;;  %1549 = vmatpush.bf16.msra.mxu2 %v1538_v2  ;;  %v1541_v13 = vld [vmem:[%s2423_s1 + $0x48] sm:$0xff]  ;;  %v1540_v15 = vld [vmem:[%s2423_s1 + $0x40] sm:$0xff]  ;;  %v1471_v23 = vld [vmem:[%s2424_s0 + $0x14] sm:$0xf0] }
   0x7   :  { %696 = vmatpush.bf16.msra.mxu1 %v1546_v3  ;;  %1557 = vmatpush.bf16.msra.mxu3 %v1546_v3  ;;  %v1150_v16 = vld [vmem:[%s2424_s0] sm:$0xf]  ;;  %v1469_v17 = vld [vmem:[%s2424_s0 + $0x4] sm:$0xf0]  ;;  %v1468_v18 = vld [vmem:[%s2424_s0 + $0x4] sm:$0xf]  ;;  %v1159_v26 = vor.u32 %v1471_v23, %v1158_v22 }
   0x8   :  { %v1152_v19 = vld [vmem:[%s2424_s0 + $0x8] sm:$0xf0]  ;;  %v1151_v20 = vor.u32 %v1469_v17, %v1150_v16  ;;  %v1470_v24 = vld [vmem:[%s2424_s0 + $0x14] sm:$0xf]  ;;  %v1160_v25 = vld [vmem:[%s2424_s0 + $0x18] sm:$0xf0] }
   0x9   :  { %v1155_v21 = vor.u32 %v1468_v18, %v1152_v19  ;;  %v1163_v27 = vor.u32 %v1470_v24, %v1160_v25  ;;  %v1278_v28 = vld [vmem:[%s2424_s0 + $0x100] sm:$0xf]  ;;  %v1501_v29 = vld [vmem:[%s2424_s0 + $0x104] sm:$0xf0]  ;;  %v1500_v30 = vld [vmem:[%s2424_s0 + $0x104] sm:$0xf] }
   0xa   :  { %528 = vmatpush.bf16.msra.mxu0 %v1537_v4  ;;  %1550 = vmatpush.bf16.msra.mxu2 %v1537_v4  ;;  %v1279_v31 = vor.u32 %v1501_v29, %v1278_v28  ;;  %v1280_v32 = vld [vmem:[%s2424_s0 + $0x108] sm:$0xf0]  ;;  %v1166_v34 = vld [vmem:[%s2424_s0 + $0x20] sm:$0xf]  ;;  %v1473_v35 = vld [vmem:[%s2424_s0 + $0x24] sm:$0xf0] }
   0xb   :  { %697 = vmatpush.bf16.msra.mxu1 %v1545_v5  ;;  %1558 = vmatpush.bf16.msra.mxu3 %v1545_v5  ;;  %v1283_v33 = vor.u32 %v1500_v30, %v1280_v32  ;;  %v1472_v36 = vld [vmem:[%s2424_s0 + $0x24] sm:$0xf]  ;;  %v1168_v37 = vld [vmem:[%s2424_s0 + $0x28] sm:$0xf0]  ;;  %v1167_v38 = vor.u32 %v1473_v35, %v1166_v34  ;;  %v1286_v40 = vld [vmem:[%s2424_s0 + $0x110] sm:$0xf] }
   0xc   :  { %v1171_v39 = vor.u32 %v1472_v36, %v1168_v37  ;;  %v1503_v41 = vld [vmem:[%s2424_s0 + $0x114] sm:$0xf0]  ;;  %v1502_v42 = vld [vmem:[%s2424_s0 + $0x114] sm:$0xf]  ;;  %v1288_v44 = vld [vmem:[%s2424_s0 + $0x118] sm:$0xf0] }
   0xd   :  { %v1287_v43 = vor.u32 %v1503_v41, %v1286_v40  ;;  %v1291_v45 = vor.u32 %v1502_v42, %v1288_v44  ;;  %v1174_v46 = vld [vmem:[%s2424_s0 + $0x30] sm:$0xf]  ;;  %v1475_v47 = vld [vmem:[%s2424_s0 + $0x34] sm:$0xf0]  ;;  %v1474_v48 = vld [vmem:[%s2424_s0 + $0x34] sm:$0xf] }
   0xe   :  { %529 = vmatpush.bf16.msra.mxu0 %v1536_v6  ;;  %1551 = vmatpush.bf16.msra.mxu2 %v1536_v6  ;;  %v1176_v49 = vld [vmem:[%s2424_s0 + $0x38] sm:$0xf0]  ;;  %v1175_v50 = vor.u32 %v1475_v47, %v1174_v46  ;;  %v1294_v52 = vld [vmem:[%s2424_s0 + $0x120] sm:$0xf]  ;;  %v1505_v53 = vld [vmem:[%s2424_s0 + $0x124] sm:$0xf0] }
   0xf   :  { %698 = vmatpush.bf16.msra.mxu1 %v1544_v7  ;;  %1559 = vmatpush.bf16.msra.mxu3 %v1544_v7  ;;  %v1179_v51 = vor.u32 %v1474_v48, %v1176_v49  ;;  %v1504_v54 = vld [vmem:[%s2424_s0 + $0x124] sm:$0xf]  ;;  %v1295_v55 = vor.u32 %v1505_v53, %v1294_v52  ;;  %v1296_v56 = vld [vmem:[%s2424_s0 + $0x128] sm:$0xf0]  ;;  %v1182_v58 = vld [vmem:[%s2424_s0 + $0x40] sm:$0xf] }
  0x10   :  { %v1299_v57 = vor.u32 %v1504_v54, %v1296_v56  ;;  %v1477_v59 = vld [vmem:[%s2424_s0 + $0x44] sm:$0xf0]  ;;  %v1476_v60 = vld [vmem:[%s2424_s0 + $0x44] sm:$0xf]  ;;  %v1184_v61 = vld [vmem:[%s2424_s0 + $0x48] sm:$0xf0] }
  0x11   :  { %v1183_v62 = vor.u32 %v1477_v59, %v1182_v58  ;;  %v1187_v63 = vor.u32 %v1476_v60, %v1184_v61  ;;  %v1302_v0 = vld [vmem:[%s2424_s0 + $0x130] sm:$0xf]  ;;  %v1507_v1 = vld [vmem:[%s2424_s0 + $0x134] sm:$0xf0]  ;;  %v1506_v2 = vld [vmem:[%s2424_s0 + $0x134] sm:$0xf] }
  0x12   :  { %530 = vmatpush.bf16.msra.mxu0 %v1535_v8  ;;  %1552 = vmatpush.bf16.msra.mxu2 %v1535_v8  ;;  %v1303_v3 = vor.u32 %v1507_v1, %v1302_v0  ;;  %v1304_v4 = vld [vmem:[%s2424_s0 + $0x138] sm:$0xf0]  ;;  %v1190_v6 = vld [vmem:[%s2424_s0 + $0x50] sm:$0xf]  ;;  %v1479_v7 = vld [vmem:[%s2424_s0 + $0x54] sm:$0xf0] }
  0x13   :  { %699 = vmatpush.bf16.msra.mxu1 %v1543_v9  ;;  %1560 = vmatpush.bf16.msra.mxu3 %v1543_v9  ;;  %v1307_v5 = vor.u32 %v1506_v2, %v1304_v4  ;;  %v1478_v8 = vld [vmem:[%s2424_s0 + $0x54] sm:$0xf]  ;;  %v1192_v9 = vld [vmem:[%s2424_s0 + $0x58] sm:$0xf0]  ;;  %v1312_v16 = vld [vmem:[%s2424_s0 + $0x148] sm:$0xf0] }
  0x14   :  { %v1198_v18 = vld [vmem:[%s2424_s0 + $0x60] sm:$0xf]  ;;  %v1481_v19 = vld [vmem:[%s2424_s0 + $0x64] sm:$0xf0]  ;;  %v1318_v24 = vld [vmem:[%s2424_s0 + $0x150] sm:$0xf] }
  0x15   :  { %v1199_v22 = vor.u32 %v1481_v19, %v1198_v18  ;;  %v1511_v25 = vld [vmem:[%s2424_s0 + $0x154] sm:$0xf0]  ;;  %v1320_v28 = vld [vmem:[%s2424_s0 + $0x158] sm:$0xf0]  ;;  %v1206_v30 = vld [vmem:[%s2424_s0 + $0x70] sm:$0xf] }
  0x16   :  { %531 = vmatpush.bf16.msra.mxu0 %v1534_v10  ;;  %1553 = vmatpush.bf16.msra.mxu2 %v1534_v10  ;;  %v1191_v10 = vor.u32 %v1479_v7, %v1190_v6  ;;  %v1482_v32 = vld [vmem:[%s2424_s0 + $0x74] sm:$0xf]  ;;  %v1326_v36 = vld [vmem:[%s2424_s0 + $0x160] sm:$0xf]  ;;  %v1513_v37 = vld [vmem:[%s2424_s0 + $0x164] sm:$0xf0] }
  0x17   :  { %700 = vmatpush.bf16.msra.mxu1 %v1542_v11  ;;  %1561 = vmatpush.bf16.msra.mxu3 %v1542_v11  ;;  %v1195_v11 = vor.u32 %v1478_v8, %v1192_v9  ;;  %v1328_v40 = vld [vmem:[%s2424_s0 + $0x168] sm:$0xf0]  ;;  %v1214_v42 = vld [vmem:[%s2424_s0 + $0x80] sm:$0xf]  ;;  %v1484_v44 = vld [vmem:[%s2424_s0 + $0x84] sm:$0xf] }
  0x18   :  { %v1515_v52 = vld [vmem:[%s2424_s0 + $0x174] sm:$0xf0]  ;;  %v1514_v53 = vld [vmem:[%s2424_s0 + $0x174] sm:$0xf]  ;;  %v1224_v2 = vld [vmem:[%s2424_s0 + $0x98] sm:$0xf0] }
  0x19   :  { %v1487_v0 = vld [vmem:[%s2424_s0 + $0x94] sm:$0xf0]  ;;  %v1486_v1 = vld [vmem:[%s2424_s0 + $0x94] sm:$0xf]  ;;  %v1342_v9 = vld [vmem:[%s2424_s0 + $0x180] sm:$0xf] }
  0x1a   :  { %532 = vmatpush.bf16.msra.mxu0 %v1533_v12  ;;  %1554 = vmatpush.bf16.msra.mxu2 %v1533_v12  ;;  %v1310_v12 = vld [vmem:[%s2424_s0 + $0x140] sm:$0xf] }
  0x1b   :  { %701 = vmatpush.bf16.msra.mxu1 %v1541_v13  ;;  %1562 = vmatpush.bf16.msra.mxu3 %v1541_v13  ;;  %v1509_v13 = vld [vmem:[%s2424_s0 + $0x144] sm:$0xf0] }
  0x1e   :  { %533 = vmatpush.bf16.msra.mxu0 %v1532_v14  ;;  %1555 = vmatpush.bf16.msra.mxu2 %v1532_v14  ;;  %v1508_v14 = vld [vmem:[%s2424_s0 + $0x144] sm:$0xf] }
  0x1f   :  { %702 = vmatpush.bf16.msra.mxu1 %v1540_v15  ;;  %1563 = vmatpush.bf16.msra.mxu3 %v1540_v15  ;;  %v1311_v15 = vor.u32 %v1509_v13, %v1310_v12  ;;  %v1315_v17 = vor.u32 %v1508_v14, %v1312_v16 }
  0x21   :  { %534 = vmatmul.bf16.vlgmr.msra.gmra.mxu0 %v1151_v20  ;;  %614 = vmatmul.bf16.vlgmr.msra.gmra.mxu2 %v1279_v31  ;;  %v1480_v20 = vld [vmem:[%s2424_s0 + $0x64] sm:$0xf]  ;;  %v1483_v31 = vld [vmem:[%s2424_s0 + $0x74] sm:$0xf0] }
  0x22   :  { %703 = vmatmul.bf16.vlgmr.msra.gmra.mxu1 %v1155_v21  ;;  %783 = vmatmul.bf16.vlgmr.msra.gmra.mxu3 %v1283_v33  ;;  %v1200_v21 = vld [vmem:[%s2424_s0 + $0x68] sm:$0xf0]  ;;  %v1208_v33 = vld [vmem:[%s2424_s0 + $0x78] sm:$0xf0]  ;;  %v1207_v34 = vor.u32 %v1483_v31, %v1206_v30 }
  0x23   :  { %v1203_v23 = vor.u32 %v1480_v20, %v1200_v21  ;;  %v1211_v35 = vor.u32 %v1482_v32, %v1208_v33 }
  0x31   :  { %539 = vmatmul.bf16.gmra.mxu0 %v1159_v26  ;;  %619 = vmatmul.bf16.gmra.mxu2 %v1287_v43  ;;  %v1510_v26 = vld [vmem:[%s2424_s0 + $0x154] sm:$0xf]  ;;  %v1485_v43 = vld [vmem:[%s2424_s0 + $0x84] sm:$0xf0] }
  0x32   :  { %708 = vmatmul.bf16.gmra.mxu1 %v1163_v27  ;;  %788 = vmatmul.bf16.gmra.mxu3 %v1291_v45  ;;  %v1319_v27 = vor.u32 %v1511_v25, %v1318_v24  ;;  %v1323_v29 = vor.u32 %v1510_v26, %v1320_v28  ;;  %v1216_v45 = vld [vmem:[%s2424_s0 + $0x88] sm:$0xf0]  ;;  %v1215_v46 = vor.u32 %v1485_v43, %v1214_v42  ;;  %v1230_v25 = vld [vmem:[%s2424_s0 + $0xa0] sm:$0xf]  ;;  %v1489_v26 = vld [vmem:[%s2424_s0 + $0xa4] sm:$0xf0] }
  0x33   :  { %v1219_v47 = vor.u32 %v1484_v44, %v1216_v45  ;;  %v1232_v28 = vld [vmem:[%s2424_s0 + $0xa8] sm:$0xf0]  ;;  %v1231_v31 = vor.u32 %v1489_v26, %v1230_v25  ;;  %v1352_v45 = vld [vmem:[%s2424_s0 + $0x198] sm:$0xf0] }
  0x41   :  { %544 = vmatmul.bf16.gmra.mxu0 %v1167_v38  ;;  %624 = vmatmul.bf16.gmra.mxu2 %v1295_v55  ;;  %v1512_v38 = vld [vmem:[%s2424_s0 + $0x164] sm:$0xf]  ;;  %v1336_v55 = vld [vmem:[%s2424_s0 + $0x178] sm:$0xf0] }
  0x42   :  { %713 = vmatmul.bf16.gmra.mxu1 %v1171_v39  ;;  %793 = vmatmul.bf16.gmra.mxu3 %v1299_v57  ;;  %v1327_v39 = vor.u32 %v1513_v37, %v1326_v36  ;;  %v1331_v41 = vor.u32 %v1512_v38, %v1328_v40  ;;  %v1339_v56 = vor.u32 %v1514_v53, %v1336_v55  ;;  %v1519_v40 = vld [vmem:[%s2424_s0 + $0x194] sm:$0xf0]  ;;  %v1238_v55 = vld [vmem:[%s2424_s0 + $0xb0] sm:$0xf] }
  0x51   :  { %549 = vmatmul.bf16.gmra.mxu0 %v1175_v50  ;;  %629 = vmatmul.bf16.gmra.mxu2 %v1303_v3 }
  0x52   :  { %718 = vmatmul.bf16.gmra.mxu1 %v1179_v51  ;;  %798 = vmatmul.bf16.gmra.mxu3 %v1307_v5  ;;  %v1334_v51 = vld [vmem:[%s2424_s0 + $0x170] sm:$0xf]  ;;  %v1227_v5 = vor.u32 %v1486_v1, %v1224_v2 }
  0x53   :  { %v1335_v54 = vor.u32 %v1515_v52, %v1334_v51 }
  0x61   :  { %554 = vmatmul.bf16.gmra.mxu0 %v1183_v62  ;;  %634 = vmatmul.bf16.gmra.mxu2 %v1311_v15  ;;  %v1344_v15 = vld [vmem:[%s2424_s0 + $0x188] sm:$0xf0] }
  0x62   :  { %723 = vmatmul.bf16.gmra.mxu1 %v1187_v63  ;;  %803 = vmatmul.bf16.gmra.mxu3 %v1315_v17  ;;  %v1222_v63 = vld [vmem:[%s2424_s0 + $0x90] sm:$0xf] }
  0x63   :  { %v1223_v4 = vor.u32 %v1487_v0, %v1222_v63 }
  0x71   :  { %559 = vmatmul.bf16.gmra.mxu0 %v1191_v10  ;;  %639 = vmatmul.bf16.gmra.mxu2 %v1319_v27  ;;  %v1517_v10 = vld [vmem:[%s2424_s0 + $0x184] sm:$0xf0]  ;;  %v1488_v27 = vld [vmem:[%s2424_s0 + $0xa4] sm:$0xf] }
  0x72   :  { %728 = vmatmul.bf16.gmra.mxu1 %v1195_v11  ;;  %808 = vmatmul.bf16.gmra.mxu3 %v1323_v29  ;;  %v1516_v11 = vld [vmem:[%s2424_s0 + $0x184] sm:$0xf]  ;;  %v1343_v14 = vor.u32 %v1517_v10, %v1342_v9  ;;  %v1235_v32 = vor.u32 %v1488_v27, %v1232_v28 }
  0x73   :  { %v1347_v16 = vor.u32 %v1516_v11, %v1344_v15  ;;  %v1360_v11 = vld [vmem:[%s2424_s0 + $0x1a8] sm:$0xf0] }
  0x81   :  { %564 = vmatmul.bf16.gmra.mxu0 %v1199_v22  ;;  %644 = vmatmul.bf16.gmra.mxu2 %v1327_v39  ;;  %v1350_v39 = vld [vmem:[%s2424_s0 + $0x190] sm:$0xf] }
  0x82   :  { %733 = vmatmul.bf16.gmra.mxu1 %v1203_v23  ;;  %813 = vmatmul.bf16.gmra.mxu3 %v1331_v41  ;;  %v1518_v41 = vld [vmem:[%s2424_s0 + $0x194] sm:$0xf]  ;;  %v1351_v44 = vor.u32 %v1519_v40, %v1350_v39 }
  0x83   :  { %v1522_v39 = vld [vmem:[%s2424_s0 + $0x1b4] sm:$0xf] }
  0x91   :  { %569 = vmatmul.bf16.gmra.mxu0 %v1207_v34  ;;  %649 = vmatmul.bf16.gmra.mxu2 %v1335_v54 }
  0x92   :  { %738 = vmatmul.bf16.gmra.mxu1 %v1211_v35  ;;  %818 = vmatmul.bf16.gmra.mxu3 %v1339_v56  ;;  %v1491_v56 = vld [vmem:[%s2424_s0 + $0xb4] sm:$0xf0] }
  0x9e   :  { %v535_v48 = vpop.f32.mrf.mxu0 }
  0x9f   :  { %v704_v49 = vpop.f32.mrf.mxu1 }
  0xa0   :  { %v705_v50 = vadd.f32 %v704_v49, %v535_v48 }
  0xa1   :  { %574 = vmatmul.bf16.gmra.mxu0 %v1215_v46  ;;  %654 = vmatmul.bf16.gmra.mxu2 %v1343_v14  ;;  %v1355_v46 = vor.u32 %v1518_v41, %v1352_v45 }
  0xa2   :  { %864 = vst [vmem:[%s2425_s2] sm:$0xff] %v705_v50  ;;  %743 = vmatmul.bf16.gmra.mxu1 %v1219_v47  ;;  %v998_v60 = vmul.f32 %v705_v50, %v705_v50  ;;  %823 = vmatmul.bf16.gmra.mxu3 %v1347_v16 }
  0xa4   :  { %v615_v21 = vpop.f32.mrf.mxu2 }
  0xa5   :  { %v784_v22 = vpop.f32.mrf.mxu3 }
  0xa6   :  { %v537_v57 = vpop.f32.mrf.mxu0  ;;  %v1889_v30 = vadd.f32 %v784_v22, %v615_v21  ;;  %v1246_v21 = vld [vmem:[%s2424_s0 + $0xc0] sm:$0xf]  ;;  %v1493_v22 = vld [vmem:[%s2424_s0 + $0xc4] sm:$0xf0] }
  0xa7   :  { %v706_v58 = vpop.f32.mrf.mxu1  ;;  %v1247_v27 = vor.u32 %v1493_v22, %v1246_v21  ;;  %v1262_v21 = vld [vmem:[%s2424_s0 + $0xe0] sm:$0xf]  ;;  %v1497_v22 = vld [vmem:[%s2424_s0 + $0xe4] sm:$0xf0] }
  0xa8   :  { %v707_v59 = vadd.f32 %v706_v58, %v537_v57  ;;  %896 = vst [vmem:[%s2425_s2 + $0x100] sm:$0xff] %v1889_v30  ;;  %v1490_v57 = vld [vmem:[%s2424_s0 + $0xb4] sm:$0xf]  ;;  %v1240_v58 = vld [vmem:[%s2424_s0 + $0xb8] sm:$0xf0] }
  0xaa   :  { %865 = vst [vmem:[%s2425_s2 + $0x8] sm:$0xff] %v707_v59  ;;  %v928_v61 = vadd.f32 %v707_v59, %v705_v50  ;;  %v999_v62 = vmul.f32 %v707_v59, %v707_v59 }
  0xac   :  { %v1062_v3 = vadd.f32 %v999_v62, %v998_v60  ;;  %v617_v36 = vpop.f32.mrf.mxu2  ;;  %v1243_v62 = vor.u32 %v1490_v57, %v1240_v58 }
  0xad   :  { %v786_v37 = vpop.f32.mrf.mxu3 }
  0xae   :  { %v540_v6 = vpop.f32.mrf.mxu0  ;;  %v1895_v38 = vadd.f32 %v786_v37, %v617_v36  ;;  %v1366_v36 = vld [vmem:[%s2424_s0 + $0x1b0] sm:$0xf]  ;;  %v1523_v37 = vld [vmem:[%s2424_s0 + $0x1b4] sm:$0xf0] }
  0xaf   :  { %v709_v7 = vpop.f32.mrf.mxu1 }
  0xb0   :  { %v710_v8 = vadd.f32 %v709_v7, %v540_v6  ;;  %897 = vst [vmem:[%s2425_s2 + $0x108] sm:$0xff] %v1895_v38  ;;  %v1521_v6 = vld [vmem:[%s2424_s0 + $0x1a4] sm:$0xf0]  ;;  %v1520_v7 = vld [vmem:[%s2424_s0 + $0x1a4] sm:$0xf] }
  0xb1   :  { %579 = vmatmul.bf16.gmra.mxu0 %v1223_v4  ;;  %659 = vmatmul.bf16.gmra.mxu2 %v1351_v44 }
  0xb2   :  { %866 = vst [vmem:[%s2425_s2 + $0x10] sm:$0xff] %v710_v8  ;;  %v929_v12 = vadd.f32 %v928_v61, %v710_v8  ;;  %v1000_v13 = vmul.f32 %v710_v8, %v710_v8  ;;  %748 = vmatmul.bf16.gmra.mxu1 %v1227_v5  ;;  %828 = vmatmul.bf16.gmra.mxu3 %v1355_v46  ;;  %v1358_v5 = vld [vmem:[%s2424_s0 + $0x1a0] sm:$0xf] }
  0xb3   :  { %v1239_v61 = vor.u32 %v1491_v56, %v1238_v55  ;;  %v1359_v10 = vor.u32 %v1521_v6, %v1358_v5  ;;  %v1494_v55 = vld [vmem:[%s2424_s0 + $0xd4] sm:$0xf]  ;;  %v1256_v56 = vld [vmem:[%s2424_s0 + $0xd8] sm:$0xf0]  ;;  %v1374_v5 = vld [vmem:[%s2424_s0 + $0x1c0] sm:$0xf] }
  0xb4   :  { %v1063_v17 = vadd.f32 %v1062_v3, %v1000_v13  ;;  %v620_v51 = vpop.f32.mrf.mxu2  ;;  %v1525_v6 = vld [vmem:[%s2424_s0 + $0x1c4] sm:$0xf0] }
  0xb5   :  { %v789_v52 = vpop.f32.mrf.mxu3 }
  0xb6   :  { %v542_v18 = vpop.f32.mrf.mxu0  ;;  %v1931_v60 = vadd.f32 %v789_v52, %v620_v51 }
  0xb7   :  { %v711_v19 = vpop.f32.mrf.mxu1 }
  0xb8   :  { %v712_v20 = vadd.f32 %v711_v19, %v542_v18  ;;  %898 = vst [vmem:[%s2425_s2 + $0x110] sm:$0xff] %v1931_v60 }
  0xba   :  { %867 = vst [vmem:[%s2425_s2 + $0x18] sm:$0xff] %v712_v20  ;;  %v930_v23 = vadd.f32 %v929_v12, %v712_v20  ;;  %v1001_v24 = vmul.f32 %v712_v20, %v712_v20  ;;  %v1363_v12 = vor.u32 %v1520_v7, %v1360_v11  ;;  %v1524_v7 = vld [vmem:[%s2424_s0 + $0x1c4] sm:$0xf]  ;;  %v1376_v11 = vld [vmem:[%s2424_s0 + $0x1c8] sm:$0xf0] }
  0xbc   :  { %v1064_v29 = vadd.f32 %v1063_v17, %v1001_v24  ;;  %v622_v2 = vpop.f32.mrf.mxu2  ;;  %v1248_v24 = vld [vmem:[%s2424_s0 + $0xc8] sm:$0xf0] }
  0xbd   :  { %v791_v3 = vpop.f32.mrf.mxu3 }
  0xbe   :  { %v545_v33 = vpop.f32.mrf.mxu0  ;;  %v1937_v4 = vadd.f32 %v791_v3, %v622_v2 }
  0xbf   :  { %v714_v34 = vpop.f32.mrf.mxu1 }
  0xc0   :  { %v715_v35 = vadd.f32 %v714_v34, %v545_v33  ;;  %899 = vst [vmem:[%s2425_s2 + $0x118] sm:$0xff] %v1937_v4 }
  0xc1   :  { %584 = vmatmul.bf16.gmra.mxu0 %v1231_v31  ;;  %664 = vmatmul.bf16.gmra.mxu2 %v1359_v10  ;;  %v1375_v10 = vor.u32 %v1525_v6, %v1374_v5 }
  0xc2   :  { %868 = vst [vmem:[%s2425_s2 + $0x20] sm:$0xff] %v715_v35  ;;  %v931_v42 = vadd.f32 %v930_v23, %v715_v35  ;;  %v1002_v43 = vmul.f32 %v715_v35, %v715_v35  ;;  %753 = vmatmul.bf16.gmra.mxu1 %v1235_v32  ;;  %833 = vmatmul.bf16.gmra.mxu3 %v1363_v12  ;;  %v1492_v23 = vld [vmem:[%s2424_s0 + $0xc4] sm:$0xf] }
  0xc3   :  { %v1251_v28 = vor.u32 %v1492_v23, %v1248_v24  ;;  %v1379_v12 = vor.u32 %v1524_v7, %v1376_v11  ;;  %v1496_v23 = vld [vmem:[%s2424_s0 + $0xe4] sm:$0xf]  ;;  %v1264_v24 = vld [vmem:[%s2424_s0 + $0xe8] sm:$0xf0] }
  0xc4   :  { %v1065_v47 = vadd.f32 %v1064_v29, %v1002_v43  ;;  %v625_v17 = vpop.f32.mrf.mxu2  ;;  %v1368_v43 = vld [vmem:[%s2424_s0 + $0x1b8] sm:$0xf0]  ;;  %v1528_v11 = vld [vmem:[%s2424_s0 + $0x1e4] sm:$0xf] }
  0xc5   :  { %v794_v18 = vpop.f32.mrf.mxu3  ;;  %v1371_v44 = vor.u32 %v1522_v39, %v1368_v43  ;;  %v1382_v39 = vld [vmem:[%s2424_s0 + $0x1d0] sm:$0xf] }
  0xc6   :  { %v547_v48 = vpop.f32.mrf.mxu0  ;;  %v1973_v26 = vadd.f32 %v794_v18, %v625_v17 }
  0xc7   :  { %v716_v49 = vpop.f32.mrf.mxu1 }
  0xc8   :  { %v717_v50 = vadd.f32 %v716_v49, %v547_v48  ;;  %900 = vst [vmem:[%s2425_s2 + $0x120] sm:$0xff] %v1973_v26 }
  0xca   :  { %869 = vst [vmem:[%s2425_s2 + $0x28] sm:$0xff] %v717_v50  ;;  %v932_v53 = vadd.f32 %v931_v42, %v717_v50  ;;  %v1003_v54 = vmul.f32 %v717_v50, %v717_v50  ;;  %v1367_v42 = vor.u32 %v1523_v37, %v1366_v36 }
  0xcc   :  { %v1066_v59 = vadd.f32 %v1065_v47, %v1003_v54  ;;  %v627_v33 = vpop.f32.mrf.mxu2  ;;  %v1495_v54 = vld [vmem:[%s2424_s0 + $0xd4] sm:$0xf0] }
  0xcd   :  { %v796_v34 = vpop.f32.mrf.mxu3 }
  0xce   :  { %v550_v63 = vpop.f32.mrf.mxu0  ;;  %v1979_v35 = vadd.f32 %v796_v34, %v627_v33 }
  0xcf   :  { %v719_v0 = vpop.f32.mrf.mxu1 }
  0xd0   :  { %v720_v1 = vadd.f32 %v719_v0, %v550_v63  ;;  %901 = vst [vmem:[%s2425_s2 + $0x128] sm:$0xff] %v1979_v35 }
  0xd1   :  { %589 = vmatmul.bf16.gmra.mxu0 %v1239_v61  ;;  %669 = vmatmul.bf16.gmra.mxu2 %v1367_v42  ;;  %v1259_v61 = vor.u32 %v1494_v55, %v1256_v56  ;;  %v1270_v55 = vld [vmem:[%s2424_s0 + $0xf0] sm:$0xf]  ;;  %v1499_v56 = vld [vmem:[%s2424_s0 + $0xf4] sm:$0xf0] }
  0xd2   :  { %870 = vst [vmem:[%s2425_s2 + $0x30] sm:$0xff] %v720_v1  ;;  %v933_v8 = vadd.f32 %v932_v53, %v720_v1  ;;  %v1004_v9 = vmul.f32 %v720_v1, %v720_v1  ;;  %758 = vmatmul.bf16.gmra.mxu1 %v1243_v62  ;;  %838 = vmatmul.bf16.gmra.mxu3 %v1371_v44  ;;  %v1254_v53 = vld [vmem:[%s2424_s0 + $0xd0] sm:$0xf] }
  0xd4   :  { %v1067_v13 = vadd.f32 %v1066_v59, %v1004_v9  ;;  %v630_v49 = vpop.f32.mrf.mxu2  ;;  %v1255_v59 = vor.u32 %v1495_v54, %v1254_v53 }
  0xd5   :  { %v799_v50 = vpop.f32.mrf.mxu3 }
  0xd6   :  { %v552_v14 = vpop.f32.mrf.mxu0  ;;  %v2015_v58 = vadd.f32 %v799_v50, %v630_v49 }
  0xd7   :  { %v721_v15 = vpop.f32.mrf.mxu1 }
  0xd8   :  { %v722_v16 = vadd.f32 %v721_v15, %v552_v14  ;;  %902 = vst [vmem:[%s2425_s2 + $0x130] sm:$0xff] %v2015_v58 }
  0xda   :  { %871 = vst [vmem:[%s2425_s2 + $0x38] sm:$0xff] %v722_v16  ;;  %v934_v19 = vadd.f32 %v933_v8, %v722_v16  ;;  %v1005_v20 = vmul.f32 %v722_v16, %v722_v16 }
  0xdc   :  { %v1068_v25 = vadd.f32 %v1067_v13, %v1005_v20  ;;  %v632_v1 = vpop.f32.mrf.mxu2 }
  0xdd   :  { %v801_v2 = vpop.f32.mrf.mxu3 }
  0xde   :  { %v555_v29 = vpop.f32.mrf.mxu0  ;;  %v2021_v3 = vadd.f32 %v801_v2, %v632_v1 }
  0xdf   :  { %v724_v31 = vpop.f32.mrf.mxu1 }
  0xe0   :  { %v725_v32 = vadd.f32 %v724_v31, %v555_v29  ;;  %903 = vst [vmem:[%s2425_s2 + $0x138] sm:$0xff] %v2021_v3  ;;  %v1267_v29 = vor.u32 %v1496_v23, %v1264_v24 }
  0xe1   :  { %594 = vmatmul.bf16.gmra.mxu0 %v1247_v27  ;;  %674 = vmatmul.bf16.gmra.mxu2 %v1375_v10  ;;  %v1529_v10 = vld [vmem:[%s2424_s0 + $0x1e4] sm:$0xf0] }
  0xe2   :  { %872 = vst [vmem:[%s2425_s2 + $0x40] sm:$0xff] %v725_v32  ;;  %v935_v40 = vadd.f32 %v934_v19, %v725_v32  ;;  %v1006_v41 = vmul.f32 %v725_v32, %v725_v32  ;;  %763 = vmatmul.bf16.gmra.mxu1 %v1251_v28  ;;  %843 = vmatmul.bf16.gmra.mxu3 %v1379_v12 }
  0xe3   :  { %v1263_v28 = vor.u32 %v1497_v22, %v1262_v21 }
  0xe4   :  { %v1069_v45 = vadd.f32 %v1068_v25, %v1006_v41  ;;  %v635_v17 = vpop.f32.mrf.mxu2  ;;  %v1526_v41 = vld [vmem:[%s2424_s0 + $0x1d4] sm:$0xf] }
  0xe5   :  { %v804_v18 = vpop.f32.mrf.mxu3 }
  0xe6   :  { %v557_v46 = vpop.f32.mrf.mxu0  ;;  %v2057_v27 = vadd.f32 %v804_v18, %v635_v17 }
  0xe7   :  { %v726_v47 = vpop.f32.mrf.mxu1 }
  0xe8   :  { %v727_v48 = vadd.f32 %v726_v47, %v557_v46  ;;  %904 = vst [vmem:[%s2425_s2 + $0x140] sm:$0xff] %v2057_v27 }
  0xea   :  { %873 = vst [vmem:[%s2425_s2 + $0x48] sm:$0xff] %v727_v48  ;;  %v936_v51 = vadd.f32 %v935_v40, %v727_v48  ;;  %v1007_v52 = vmul.f32 %v727_v48, %v727_v48  ;;  %v1527_v40 = vld [vmem:[%s2424_s0 + $0x1d4] sm:$0xf0] }
  0xeb   :  { %v1383_v44 = vor.u32 %v1527_v40, %v1382_v39  ;;  %v1398_v39 = vld [vmem:[%s2424_s0 + $0x1f0] sm:$0xf]  ;;  %v1531_v40 = vld [vmem:[%s2424_s0 + $0x1f4] sm:$0xf0] }
  0xec   :  { %v1070_v57 = vadd.f32 %v1069_v45, %v1007_v52  ;;  %v637_v34 = vpop.f32.mrf.mxu2  ;;  %v1384_v45 = vld [vmem:[%s2424_s0 + $0x1d8] sm:$0xf0] }
  0xed   :  { %v806_v36 = vpop.f32.mrf.mxu3  ;;  %v1387_v46 = vor.u32 %v1526_v41, %v1384_v45  ;;  %v1530_v41 = vld [vmem:[%s2424_s0 + $0x1f4] sm:$0xf]  ;;  %v1400_v45 = vld [vmem:[%s2424_s0 + $0x1f8] sm:$0xf0] }
  0xee   :  { %v560_v62 = vpop.f32.mrf.mxu0  ;;  %v2063_v37 = vadd.f32 %v806_v36, %v637_v34 }
  0xef   :  { %v729_v63 = vpop.f32.mrf.mxu1 }
  0xf0   :  { %v730_v0 = vadd.f32 %v729_v63, %v560_v62  ;;  %905 = vst [vmem:[%s2425_s2 + $0x148] sm:$0xff] %v2063_v37  ;;  %v1271_v63 = vor.u32 %v1499_v56, %v1270_v55 }
  0xf1   :  { %599 = vmatmul.bf16.gmra.mxu0 %v1255_v59  ;;  %679 = vmatmul.bf16.gmra.mxu2 %v1383_v44  ;;  %v1272_v59 = vld [vmem:[%s2424_s0 + $0xf8] sm:$0xf0]  ;;  %v1399_v44 = vor.u32 %v1531_v40, %v1398_v39 }
  0xf2   :  { %874 = vst [vmem:[%s2425_s2 + $0x50] sm:$0xff] %v730_v0  ;;  %v937_v8 = vadd.f32 %v936_v51, %v730_v0  ;;  %v1008_v9 = vmul.f32 %v730_v0, %v730_v0  ;;  %768 = vmatmul.bf16.gmra.mxu1 %v1259_v61  ;;  %848 = vmatmul.bf16.gmra.mxu3 %v1387_v46 }
  0xf3   :  { %v1403_v46 = vor.u32 %v1530_v41, %v1400_v45 }
  0xf4   :  { %v1071_v13 = vadd.f32 %v1070_v57, %v1008_v9  ;;  %v640_v51 = vpop.f32.mrf.mxu2  ;;  %v1498_v57 = vld [vmem:[%s2424_s0 + $0xf4] sm:$0xf]  ;;  %v1390_v9 = vld [vmem:[%s2424_s0 + $0x1e0] sm:$0xf] }
  0xf5   :  { %v809_v52 = vpop.f32.mrf.mxu3  ;;  %v1275_v0 = vor.u32 %v1498_v57, %v1272_v59 }
  0xf6   :  { %v562_v14 = vpop.f32.mrf.mxu0  ;;  %v2099_v62 = vadd.f32 %v809_v52, %v640_v51 }
  0xf7   :  { %v731_v15 = vpop.f32.mrf.mxu1 }
  0xf8   :  { %v732_v16 = vadd.f32 %v731_v15, %v562_v14  ;;  %906 = vst [vmem:[%s2425_s2 + $0x150] sm:$0xff] %v2099_v62  ;;  %v1391_v14 = vor.u32 %v1529_v10, %v1390_v9  ;;  %v1392_v15 = vld [vmem:[%s2424_s0 + $0x1e8] sm:$0xf0] }
  0xfa   :  { %875 = vst [vmem:[%s2425_s2 + $0x58] sm:$0xff] %v732_v16  ;;  %v938_v19 = vadd.f32 %v937_v8, %v732_v16  ;;  %v1009_v20 = vmul.f32 %v732_v16, %v732_v16  ;;  %v1395_v16 = vor.u32 %v1528_v11, %v1392_v15 }
  0xfc   :  { %v1072_v25 = vadd.f32 %v1071_v13, %v1009_v20  ;;  %v642_v6 = vpop.f32.mrf.mxu2 }
  0xfd   :  { %v811_v7 = vpop.f32.mrf.mxu3 }
  0xfe   :  { %v565_v31 = vpop.f32.mrf.mxu0  ;;  %v2105_v8 = vadd.f32 %v811_v7, %v642_v6 }
  0xff   :  { %v734_v32 = vpop.f32.mrf.mxu1 }
 0x100   :  { %v735_v33 = vadd.f32 %v734_v32, %v565_v31  ;;  %907 = vst [vmem:[%s2425_s2 + $0x158] sm:$0xff] %v2105_v8 }
 0x101   :  { %604 = vmatmul.bf16.gmra.mxu0 %v1263_v28  ;;  %684 = vmatmul.bf16.gmra.mxu2 %v1391_v14 }
 0x102   :  { %876 = vst [vmem:[%s2425_s2 + $0x60] sm:$0xff] %v735_v33  ;;  %v939_v42 = vadd.f32 %v938_v19, %v735_v33  ;;  %v1010_v43 = vmul.f32 %v735_v33, %v735_v33  ;;  %773 = vmatmul.bf16.gmra.mxu1 %v1267_v29  ;;  %853 = vmatmul.bf16.gmra.mxu3 %v1395_v16 }
 0x104   :  { %v1073_v47 = vadd.f32 %v1072_v25, %v1010_v43  ;;  %v645_v21 = vpop.f32.mrf.mxu2 }
 0x105   :  { %v814_v22 = vpop.f32.mrf.mxu3 }
 0x106   :  { %v567_v48 = vpop.f32.mrf.mxu0  ;;  %v2129_v28 = vadd.f32 %v814_v22, %v645_v21 }
 0x107   :  { %v736_v49 = vpop.f32.mrf.mxu1 }
 0x108   :  { %v737_v50 = vadd.f32 %v736_v49, %v567_v48  ;;  %908 = vst [vmem:[%s2425_s2 + $0x160] sm:$0xff] %v2129_v28 }
 0x10a   :  { %877 = vst [vmem:[%s2425_s2 + $0x68] sm:$0xff] %v737_v50  ;;  %v940_v53 = vadd.f32 %v939_v42, %v737_v50  ;;  %v1011_v54 = vmul.f32 %v737_v50, %v737_v50 }
 0x10c   :  { %v1074_v61 = vadd.f32 %v1073_v47, %v1011_v54  ;;  %v647_v33 = vpop.f32.mrf.mxu2 }
 0x10d   :  { %v816_v34 = vpop.f32.mrf.mxu3 }
 0x10e   :  { %v570_v1 = vpop.f32.mrf.mxu0  ;;  %v2135_v36 = vadd.f32 %v816_v34, %v647_v33 }
 0x10f   :  { %v739_v2 = vpop.f32.mrf.mxu1 }
 0x110   :  { %v740_v5 = vadd.f32 %v739_v2, %v570_v1  ;;  %909 = vst [vmem:[%s2425_s2 + $0x168] sm:$0xff] %v2135_v36 }
 0x111   :  { %609 = vmatmul.bf16.gmra.mxu0 %v1271_v63  ;;  %689 = vmatmul.bf16.gmra.mxu2 %v1399_v44 }
 0x112   :  { %878 = vst [vmem:[%s2425_s2 + $0x70] sm:$0xff] %v740_v5  ;;  %v941_v12 = vadd.f32 %v940_v53, %v740_v5  ;;  %v1012_v13 = vmul.f32 %v740_v5, %v740_v5  ;;  %778 = vmatmul.bf16.gmra.mxu1 %v1275_v0  ;;  %858 = vmatmul.bf16.gmra.mxu3 %v1403_v46 }
 0x114   :  { %v1075_v17 = vadd.f32 %v1074_v61, %v1012_v13  ;;  %v650_v51 = vpop.f32.mrf.mxu2 }
 0x115   :  { %v819_v52 = vpop.f32.mrf.mxu3 }
 0x116   :  { %v572_v18 = vpop.f32.mrf.mxu0  ;;  %v2159_v56 = vadd.f32 %v819_v52, %v650_v51 }
 0x117   :  { %v741_v19 = vpop.f32.mrf.mxu1 }
 0x118   :  { %v742_v20 = vadd.f32 %v741_v19, %v572_v18  ;;  %910 = vst [vmem:[%s2425_s2 + $0x170] sm:$0xff] %v2159_v56 }
 0x11a   :  { %879 = vst [vmem:[%s2425_s2 + $0x78] sm:$0xff] %v742_v20  ;;  %v942_v23 = vadd.f32 %v941_v12, %v742_v20  ;;  %v1013_v24 = vmul.f32 %v742_v20, %v742_v20 }
 0x11c   :  { %v1076_v25 = vadd.f32 %v1075_v17, %v1013_v24  ;;  %v652_v63 = vpop.f32.mrf.mxu2 }
 0x11d   :  { %v821_v0 = vpop.f32.mrf.mxu3 }
 0x11e   :  { %v575_v29 = vpop.f32.mrf.mxu0  ;;  %v2165_v1 = vadd.f32 %v821_v0, %v652_v63 }
 0x11f   :  { %v744_v31 = vpop.f32.mrf.mxu1 }
 0x120   :  { %v745_v32 = vadd.f32 %v744_v31, %v575_v29  ;;  %911 = vst [vmem:[%s2425_s2 + $0x178] sm:$0xff] %v2165_v1 }
 0x122   :  { %880 = vst [vmem:[%s2425_s2 + $0x80] sm:$0xff] %v745_v32  ;;  %v943_v42 = vadd.f32 %v942_v23, %v745_v32  ;;  %v1014_v43 = vmul.f32 %v745_v32, %v745_v32 }
 0x124   :  { %v1077_v47 = vadd.f32 %v1076_v25, %v1014_v43  ;;  %v655_v11 = vpop.f32.mrf.mxu2 }
 0x125   :  { %v824_v12 = vpop.f32.mrf.mxu3 }
 0x126   :  { %v577_v48 = vpop.f32.mrf.mxu0  ;;  %v2177_v16 = vadd.f32 %v824_v12, %v655_v11 }
 0x127   :  { %v746_v49 = vpop.f32.mrf.mxu1 }
 0x128   :  { %v747_v50 = vadd.f32 %v746_v49, %v577_v48  ;;  %912 = vst [vmem:[%s2425_s2 + $0x180] sm:$0xff] %v2177_v16 }
 0x12a   :  { %881 = vst [vmem:[%s2425_s2 + $0x88] sm:$0xff] %v747_v50  ;;  %v944_v53 = vadd.f32 %v943_v42, %v747_v50  ;;  %v1015_v54 = vmul.f32 %v747_v50, %v747_v50 }
 0x12c   :  { %v1078_v55 = vadd.f32 %v1077_v47, %v1015_v54  ;;  %v657_v20 = vpop.f32.mrf.mxu2 }
 0x12d   :  { %v826_v21 = vpop.f32.mrf.mxu3 }
 0x12e   :  { %v580_v57 = vpop.f32.mrf.mxu0  ;;  %v2183_v22 = vadd.f32 %v826_v21, %v657_v20 }
 0x12f   :  { %v749_v59 = vpop.f32.mrf.mxu1 }
 0x130   :  { %v750_v61 = vadd.f32 %v749_v59, %v580_v57  ;;  %913 = vst [vmem:[%s2425_s2 + $0x188] sm:$0xff] %v2183_v22 }
 0x132   :  { %882 = vst [vmem:[%s2425_s2 + $0x90] sm:$0xff] %v750_v61  ;;  %v945_v2 = vadd.f32 %v944_v53, %v750_v61  ;;  %v1016_v5 = vmul.f32 %v750_v61, %v750_v61 }
 0x134   :  { %v1079_v6 = vadd.f32 %v1078_v55, %v1016_v5  ;;  %v660_v33 = vpop.f32.mrf.mxu2 }
 0x135   :  { %v829_v34 = vpop.f32.mrf.mxu3 }
 0x136   :  { %v582_v7 = vpop.f32.mrf.mxu0  ;;  %v2202_v39 = vadd.f32 %v829_v34, %v660_v33 }
 0x137   :  { %v751_v9 = vpop.f32.mrf.mxu1 }
 0x138   :  { %v752_v10 = vadd.f32 %v751_v9, %v582_v7  ;;  %914 = vst [vmem:[%s2425_s2 + $0x190] sm:$0xff] %v2202_v39 }
 0x13a   :  { %883 = vst [vmem:[%s2425_s2 + $0x98] sm:$0xff] %v752_v10  ;;  %v946_v13 = vadd.f32 %v945_v2, %v752_v10  ;;  %v1017_v14 = vmul.f32 %v752_v10, %v752_v10 }
 0x13c   :  { %v1080_v15 = vadd.f32 %v1079_v6, %v1017_v14  ;;  %v662_v43 = vpop.f32.mrf.mxu2 }
 0x13d   :  { %v831_v44 = vpop.f32.mrf.mxu3 }
 0x13e   :  { %v585_v17 = vpop.f32.mrf.mxu0  ;;  %v2208_v45 = vadd.f32 %v831_v44, %v662_v43 }
 0x13f   :  { %v754_v18 = vpop.f32.mrf.mxu1 }
 0x140   :  { %v755_v19 = vadd.f32 %v754_v18, %v585_v17  ;;  %915 = vst [vmem:[%s2425_s2 + $0x198] sm:$0xff] %v2208_v45 }
 0x142   :  { %884 = vst [vmem:[%s2425_s2 + $0xa0] sm:$0xff] %v755_v19  ;;  %v2188_v23 = vadd.f32 %v946_v13, %v755_v19  ;;  %v1018_v24 = vmul.f32 %v755_v19, %v755_v19 }
 0x144   :  { %v2194_v25 = vadd.f32 %v1080_v15, %v1018_v24  ;;  %v665_v49 = vpop.f32.mrf.mxu2 }
 0x145   :  { %v834_v50 = vpop.f32.mrf.mxu3 }
 0x146   :  { %v587_v29 = vpop.f32.mrf.mxu0  ;;  %v2220_v51 = vadd.f32 %v834_v50, %v665_v49 }
 0x147   :  { %v756_v31 = vpop.f32.mrf.mxu1 }
 0x148   :  { %v2196_v32 = vadd.f32 %v756_v31, %v587_v29  ;;  %916 = vst [vmem:[%s2425_s2 + $0x1a0] sm:$0xff] %v2220_v51 }
 0x14a   :  { %885 = vst [vmem:[%s2425_s2 + $0xa8] sm:$0xff] %v2196_v32  ;;  %v948_v43 = vadd.f32 %v2188_v23, %v2196_v32 }
 0x14c   :  { %v667_v55 = vpop.f32.mrf.mxu2 }
 0x14d   :  { %v836_v57 = vpop.f32.mrf.mxu3 }
 0x14e   :  { %v590_v40 = vpop.f32.mrf.mxu0  ;;  %v2226_v59 = vadd.f32 %v836_v57, %v667_v55 }
 0x14f   :  { %v759_v41 = vpop.f32.mrf.mxu1 }
 0x150   :  { %v760_v42 = vadd.f32 %v759_v41, %v590_v40  ;;  %917 = vst [vmem:[%s2425_s2 + $0x1a8] sm:$0xff] %v2226_v59  ;;  %v1019_v40 = vmul.f32 %v2196_v32, %v2196_v32 }
 0x152   :  { %886 = vst [vmem:[%s2425_s2 + $0xb0] sm:$0xff] %v760_v42  ;;  %v1020_v41 = vmul.f32 %v760_v42, %v760_v42  ;;  %v1082_v44 = vadd.f32 %v2194_v25, %v1019_v40  ;;  %v949_v50 = vadd.f32 %v948_v43, %v760_v42 }
 0x154   :  { %v670_v2 = vpop.f32.mrf.mxu2  ;;  %v1083_v57 = vadd.f32 %v1082_v44, %v1020_v41 }
 0x155   :  { %v839_v5 = vpop.f32.mrf.mxu3 }
 0x156   :  { %v592_v46 = vpop.f32.mrf.mxu0  ;;  %v2238_v6 = vadd.f32 %v839_v5, %v670_v2 }
 0x157   :  { %v761_v47 = vpop.f32.mrf.mxu1 }
 0x158   :  { %v762_v48 = vadd.f32 %v761_v47, %v592_v46  ;;  %918 = vst [vmem:[%s2425_s2 + $0x1b0] sm:$0xff] %v2238_v6 }
 0x15a   :  { %887 = vst [vmem:[%s2425_s2 + $0xb8] sm:$0xff] %v762_v48  ;;  %v1021_v46 = vmul.f32 %v762_v48, %v762_v48 }
 0x15c   :  { %v672_v11 = vpop.f32.mrf.mxu2  ;;  %v1084_v2 = vadd.f32 %v1083_v57, %v1021_v46 }
 0x15d   :  { %v841_v12 = vpop.f32.mrf.mxu3 }
 0x15e   :  { %v595_v52 = vpop.f32.mrf.mxu0  ;;  %v2244_v13 = vadd.f32 %v841_v12, %v672_v11 }
 0x15f   :  { %v764_v53 = vpop.f32.mrf.mxu1 }
 0x160   :  { %v765_v54 = vadd.f32 %v764_v53, %v595_v52  ;;  %919 = vst [vmem:[%s2425_s2 + $0x1b8] sm:$0xff] %v2244_v13 }
 0x162   :  { %888 = vst [vmem:[%s2425_s2 + $0xc0] sm:$0xff] %v765_v54 }
 0x164   :  { %v675_v18 = vpop.f32.mrf.mxu2 }
 0x165   :  { %v844_v19 = vpop.f32.mrf.mxu3 }
 0x166   :  { %v597_v61 = vpop.f32.mrf.mxu0  ;;  %v2256_v29 = vadd.f32 %v844_v19, %v675_v18 }
 0x167   :  { %v766_v63 = vpop.f32.mrf.mxu1 }
 0x168   :  { %v767_v0 = vadd.f32 %v766_v63, %v597_v61  ;;  %920 = vst [vmem:[%s2425_s2 + $0x1c0] sm:$0xff] %v2256_v29  ;;  %v1022_v61 = vmul.f32 %v765_v54, %v765_v54  ;;  %v950_v63 = vadd.f32 %v949_v50, %v762_v48 }
 0x16a   :  { %889 = vst [vmem:[%s2425_s2 + $0xc8] sm:$0xff] %v767_v0  ;;  %v1023_v5 = vmul.f32 %v767_v0, %v767_v0  ;;  %v1085_v23 = vadd.f32 %v1084_v2, %v1022_v61  ;;  %v1030_v61 = vmul.f32 %v1889_v30, %v1889_v30  ;;  %v1031_v2 = vmul.f32 %v1895_v38, %v1895_v38 }
 0x16c   :  { %v677_v31 = vpop.f32.mrf.mxu2 }
 0x16d   :  { %v846_v33 = vpop.f32.mrf.mxu3 }
 0x16e   :  { %v600_v7 = vpop.f32.mrf.mxu0  ;;  %v2258_v34 = vadd.f32 %v846_v33, %v677_v31 }
 0x16f   :  { %v769_v9 = vpop.f32.mrf.mxu1 }
 0x170   :  { %v770_v10 = vadd.f32 %v769_v9, %v600_v7  ;;  %921 = vst [vmem:[%s2425_s2 + $0x1c8] sm:$0xff] %v2258_v34  ;;  %v951_v7 = vadd.f32 %v950_v63, %v765_v54  ;;  %v1086_v9 = vadd.f32 %v1085_v23, %v1023_v5  ;;  %v1032_v23 = vmul.f32 %v1931_v60, %v1931_v60 }
 0x172   :  { %890 = vst [vmem:[%s2425_s2 + $0xd0] sm:$0xff] %v770_v10  ;;  %v952_v32 = vadd.f32 %v951_v7, %v767_v0  ;;  %v1024_v25 = vmul.f32 %v770_v10, %v770_v10 }
 0x174   :  { %v680_v53 = vpop.f32.mrf.mxu2  ;;  %v953_v42 = vadd.f32 %v952_v32, %v770_v10 }
 0x175   :  { %v849_v55 = vpop.f32.mrf.mxu3 }
 0x176   :  { %v602_v14 = vpop.f32.mrf.mxu0  ;;  %v2279_v18 = vadd.f32 %v849_v55, %v680_v53 }
 0x177   :  { %v771_v15 = vpop.f32.mrf.mxu1 }
 0x178   :  { %v772_v17 = vadd.f32 %v771_v15, %v602_v14  ;;  %922 = vst [vmem:[%s2425_s2 + $0x1d0] sm:$0xff] %v2279_v18 }
 0x17a   :  { %891 = vst [vmem:[%s2425_s2 + $0xd8] sm:$0xff] %v772_v17  ;;  %v1025_v14 = vmul.f32 %v772_v17, %v772_v17  ;;  %v954_v31 = vadd.f32 %v953_v42, %v772_v17 }
 0x17c   :  { %v682_v19 = vpop.f32.mrf.mxu2 }
 0x17d   :  { %v851_v48 = vpop.f32.mrf.mxu3 }
 0x17e   :  { %v605_v20 = vpop.f32.mrf.mxu0 }
 0x17f   :  { %v774_v21 = vpop.f32.mrf.mxu1 }
 0x180   :  { %v775_v24 = vadd.f32 %v774_v21, %v605_v20  ;;  %v2281_v20 = vadd.f32 %v851_v48, %v682_v19  ;;  %v1087_v21 = vadd.f32 %v1086_v9, %v1024_v25 }
 0x182   :  { %892 = vst [vmem:[%s2425_s2 + $0xe0] sm:$0xff] %v775_v24  ;;  %v1026_v33 = vmul.f32 %v775_v24, %v775_v24  ;;  %v1088_v54 = vadd.f32 %v1087_v21, %v1025_v14  ;;  %v955_v0 = vadd.f32 %v954_v31, %v775_v24  ;;  %v1036_v31 = vmul.f32 %v2015_v58, %v2015_v58 }
 0x183   :  { %923 = vst [vmem:[%s2425_s2 + $0x1d8] sm:$0xff] %v2281_v20 }
 0x184   :  { %v1089_v40 = vadd.f32 %v1088_v54, %v1026_v33  ;;  %v685_v50 = vpop.f32.mrf.mxu2 }
 0x185   :  { %v854_v53 = vpop.f32.mrf.mxu3 }
 0x186   :  { %v607_v47 = vpop.f32.mrf.mxu0  ;;  %v2306_v9 = vadd.f32 %v854_v53, %v685_v50 }
 0x187   :  { %v776_v49 = vpop.f32.mrf.mxu1 }
 0x188   :  { %v777_v52 = vadd.f32 %v776_v49, %v607_v47  ;;  %924 = vst [vmem:[%s2425_s2 + $0x1e0] sm:$0xff] %v2306_v9 }
 0x18a   :  { %893 = vst [vmem:[%s2425_s2 + $0xe8] sm:$0xff] %v777_v52  ;;  %v1027_v10 = vmul.f32 %v777_v52, %v777_v52  ;;  %v956_v17 = vadd.f32 %v955_v0, %v777_v52 }
 0x18c   :  { %v1090_v46 = vadd.f32 %v1089_v40, %v1027_v10  ;;  %v1037_v40 = vmul.f32 %v2021_v3, %v2021_v3 }
 0x18e   :  { %v610_v11 = vpop.f32.mrf.mxu0 }
 0x18f   :  { %v779_v12 = vpop.f32.mrf.mxu1 }
 0x190   :  { %v780_v15 = vadd.f32 %v779_v12, %v610_v11  ;;  %v687_v11 = vpop.f32.mrf.mxu2  ;;  %v856_v12 = vpop.f32.mrf.mxu3 }
 0x191   :  { %v2308_v42 = vadd.f32 %v856_v12, %v687_v11 }
 0x192   :  { %894 = vst [vmem:[%s2425_s2 + $0xf0] sm:$0xff] %v780_v15  ;;  %v1028_v41 = vmul.f32 %v780_v15, %v780_v15  ;;  %v957_v47 = vadd.f32 %v956_v17, %v780_v15 }
 0x193   :  { %925 = vst [vmem:[%s2425_s2 + $0x1e8] sm:$0xff] %v2308_v42 }
 0x194   :  { %v1091_v55 = vadd.f32 %v1090_v46, %v1028_v41  ;;  %v1038_v41 = vmul.f32 %v2057_v27, %v2057_v27 }
 0x196   :  { %v612_v43 = vpop.f32.mrf.mxu0 }
 0x197   :  { %v781_v44 = vpop.f32.mrf.mxu1 }
 0x198   :  { %v782_v49 = vadd.f32 %v781_v44, %v612_v43  ;;  %v690_v0 = vpop.f32.mrf.mxu2  ;;  %v859_v10 = vpop.f32.mrf.mxu3  ;;  %v1039_v44 = vmul.f32 %v2063_v37, %v2063_v37 }
 0x19a   :  { %895 = vst [vmem:[%s2425_s2 + $0xf8] sm:$0xff] %v782_v49  ;;  %v958_v24 = vadd.f32 %v957_v47, %v782_v49  ;;  %v1029_v57 = vmul.f32 %v782_v49, %v782_v49  ;;  %v1040_v47 = vmul.f32 %v2099_v62, %v2099_v62 }
 0x19c   :  { %v959_v52 = vadd.f32 %v958_v24, %v1889_v30  ;;  %v1092_v63 = vadd.f32 %v1091_v55, %v1029_v57  ;;  %v1033_v30 = vmul.f32 %v1937_v4, %v1937_v4 }
 0x19e   :  { %v960_v5 = vadd.f32 %v959_v52, %v1895_v38  ;;  %v1093_v7 = vadd.f32 %v1092_v63, %v1030_v61  ;;  %v1034_v38 = vmul.f32 %v1973_v26, %v1973_v26 }
 0x1a0   :  { %v961_v32 = vadd.f32 %v960_v5, %v1931_v60  ;;  %v1094_v25 = vadd.f32 %v1093_v7, %v1031_v2  ;;  %v692_v53 = vpop.f32.mrf.mxu2  ;;  %v861_v55 = vpop.f32.mrf.mxu3  ;;  %v1044_v5 = vmul.f32 %v2159_v56, %v2159_v56 }
 0x1a1   :  { %v2344_v24 = vadd.f32 %v861_v55, %v692_v53  ;;  %v1059_v53 = vmul.f32 %v2308_v42, %v2308_v42 }
 0x1a2   :  { %v962_v14 = vadd.f32 %v961_v32, %v1937_v4  ;;  %v1095_v15 = vadd.f32 %v1094_v25, %v1032_v23  ;;  %v1035_v4 = vmul.f32 %v1979_v35, %v1979_v35  ;;  %v1045_v32 = vmul.f32 %v2165_v1, %v2165_v1 }
 0x1a3   :  { %927 = vst [vmem:[%s2425_s2 + $0x1f8] sm:$0xff] %v2344_v24 }
 0x1a4   :  { %v963_v60 = vadd.f32 %v962_v14, %v1973_v26  ;;  %v1096_v19 = vadd.f32 %v1095_v15, %v1033_v30 }
 0x1a6   :  { %v964_v48 = vadd.f32 %v963_v60, %v1979_v35  ;;  %v1097_v21 = vadd.f32 %v1096_v19, %v1034_v38 }
 0x1a8   :  { %v965_v33 = vadd.f32 %v964_v48, %v2015_v58  ;;  %v1098_v54 = vadd.f32 %v1097_v21, %v1035_v4 }
 0x1aa   :  { %v966_v26 = vadd.f32 %v965_v33, %v2021_v3  ;;  %v1099_v17 = vadd.f32 %v1098_v54, %v1036_v31  ;;  %v2342_v3 = vadd.f32 %v859_v10, %v690_v0 }
 0x1ac   :  { %v967_v35 = vadd.f32 %v966_v26, %v2057_v27  ;;  %v1100_v43 = vadd.f32 %v1099_v17, %v1037_v40  ;;  %v1041_v27 = vmul.f32 %v2105_v8, %v2105_v8  ;;  %926 = vst [vmem:[%s2425_s2 + $0x1f0] sm:$0xff] %v2342_v3  ;;  %v1054_v26 = vmul.f32 %v2256_v29, %v2256_v29 }
 0x1ae   :  { %v968_v58 = vadd.f32 %v967_v35, %v2063_v37  ;;  %v1101_v46 = vadd.f32 %v1100_v43, %v1038_v41  ;;  %v1042_v37 = vmul.f32 %v2129_v28, %v2129_v28  ;;  %v1055_v35 = vmul.f32 %v2258_v34, %v2258_v34 }
 0x1b0   :  { %v969_v49 = vadd.f32 %v968_v58, %v2099_v62  ;;  %v1102_v50 = vadd.f32 %v1101_v46, %v1039_v44  ;;  %v1056_v44 = vmul.f32 %v2279_v18, %v2279_v18  ;;  %v1057_v46 = vmul.f32 %v2281_v20, %v2281_v20 }
 0x1b2   :  { %v970_v57 = vadd.f32 %v969_v49, %v2105_v8  ;;  %v1103_v61 = vadd.f32 %v1102_v50, %v1040_v47  ;;  %v1043_v8 = vmul.f32 %v2135_v36, %v2135_v36  ;;  %v1058_v49 = vmul.f32 %v2306_v9, %v2306_v9 }
 0x1b4   :  { %v1104_v62 = vadd.f32 %v1103_v61, %v1041_v27  ;;  %v971_v52 = vadd.f32 %v970_v57, %v2129_v28  ;;  %v1046_v28 = vmul.f32 %v2177_v16, %v2177_v16  ;;  %v1060_v27 = vmul.f32 %v2342_v3, %v2342_v3 }
 0x1b5   :  { %v1061_v61 = vmul.f32 %v2344_v24, %v2344_v24 }
 0x1b6   :  { %v972_v63 = vadd.f32 %v971_v52, %v2135_v36  ;;  %v1105_v2 = vadd.f32 %v1104_v62, %v1042_v37  ;;  %v1047_v36 = vmul.f32 %v2183_v22, %v2183_v22 }
 0x1b8   :  { %v973_v7 = vadd.f32 %v972_v63, %v2159_v56  ;;  %v1106_v23 = vadd.f32 %v1105_v2, %v1043_v8  ;;  %v1048_v56 = vmul.f32 %v2202_v39, %v2202_v39 }
 0x1ba   :  { %v974_v25 = vadd.f32 %v973_v7, %v2165_v1  ;;  %v1107_v11 = vadd.f32 %v1106_v23, %v1044_v5  ;;  %v1049_v1 = vmul.f32 %v2208_v45, %v2208_v45 }
 0x1bc   :  { %v975_v12 = vadd.f32 %v974_v25, %v2177_v16  ;;  %v1108_v30 = vadd.f32 %v1107_v11, %v1045_v32  ;;  %v1050_v16 = vmul.f32 %v2220_v51, %v2220_v51 }
 0x1be   :  { %v976_v14 = vadd.f32 %v975_v12, %v2183_v22  ;;  %v1109_v15 = vadd.f32 %v1108_v30, %v1046_v28  ;;  %v1051_v22 = vmul.f32 %v2226_v59, %v2226_v59 }
 0x1c0   :  { %v977_v38 = vadd.f32 %v976_v14, %v2202_v39  ;;  %v1110_v60 = vadd.f32 %v1109_v15, %v1047_v36  ;;  %v1052_v39 = vmul.f32 %v2238_v6, %v2238_v6 }
 0x1c2   :  { %v978_v19 = vadd.f32 %v977_v38, %v2208_v45  ;;  %v1111_v4 = vadd.f32 %v1110_v60, %v1048_v56  ;;  %v1053_v45 = vmul.f32 %v2244_v13, %v2244_v13 }
 0x1c4   :  { %v979_v48 = vadd.f32 %v978_v19, %v2220_v51  ;;  %v1112_v21 = vadd.f32 %v1111_v4, %v1049_v1 }
 0x1c6   :  { %v980_v31 = vadd.f32 %v979_v48, %v2226_v59  ;;  %v1113_v33 = vadd.f32 %v1112_v21, %v1050_v16 }
 0x1c8   :  { %v981_v54 = vadd.f32 %v980_v31, %v2238_v6  ;;  %v1114_v0 = vadd.f32 %v1113_v33, %v1051_v22 }
 0x1ca   :  { %v982_v10 = vadd.f32 %v981_v54, %v2244_v13  ;;  %v1115_v40 = vadd.f32 %v1114_v0, %v1052_v39 }
 0x1cc   :  { %v983_v51 = vadd.f32 %v982_v10, %v2256_v29  ;;  %v1116_v17 = vadd.f32 %v1115_v40, %v1053_v45 }
 0x1ce   :  { %v1117_v59 = vadd.f32 %v1116_v17, %v1054_v26  ;;  %v984_v41 = vadd.f32 %v983_v51, %v2258_v34 }
 0x1d0   :  { %v1118_v6 = vadd.f32 %v1117_v59, %v1055_v35  ;;  %v985_v43 = vadd.f32 %v984_v41, %v2279_v18 }
 0x1d2   :  { %v1119_v13 = vadd.f32 %v1118_v6, %v1056_v44  ;;  %v986_v58 = vadd.f32 %v985_v43, %v2281_v20 }
 0x1d4   :  { %v1120_v29 = vadd.f32 %v1119_v13, %v1057_v46  ;;  %v987_v47 = vadd.f32 %v986_v58, %v2306_v9 }
 0x1d6   :  { %v1121_v50 = vadd.f32 %v1120_v29, %v1058_v49  ;;  %v988_v34 = vadd.f32 %v987_v47, %v2308_v42 }
 0x1d8   :  { %v1122_v55 = vadd.f32 %v1121_v50, %v1059_v53  ;;  %v989_v18 = vadd.f32 %v988_v34, %v2342_v3 }
 0x1da   :  { %v1123_v57 = vadd.f32 %v1122_v55, %v1060_v27  ;;  %v990_v20 = vadd.f32 %v989_v18, %v2344_v24 }
 0x1dc   :  { %v991_v37 = vrot.slane %v990_v20, 4  ;;  %v1124_v9 = vadd.f32 %v1123_v57, %v1061_v61 }
 0x1de   :  { %v992_v62 = vadd.f32 %v991_v37, %v990_v20  ;;  %v1125_v52 = vrot.slane %v1124_v9, 4 }
 0x1e0   :  { %v993_v8 = vrot.slane %v992_v62, 2  ;;  %v1126_v63 = vadd.f32 %v1125_v52, %v1124_v9 }
 0x1e2   :  { %v994_v2 = vadd.f32 %v993_v8, %v992_v62  ;;  %v1127_v42 = vrot.slane %v1126_v63, 2 }
 0x1e4   :  { %v995_v5 = vrot.slane %v994_v2, 1  ;;  %v1128_v7 = vadd.f32 %v1127_v42, %v1126_v63 }
 0x1e6   :  { %v996_v23 = vadd.f32 %v995_v5, %v994_v2  ;;  %v1129_v32 = vrot.slane %v1128_v7, 1 }
 0x1e8   :  { %v997_v25 = vmul.f32 0.001953125, %v996_v23  ;;  %v1130_v3 = vadd.f32 %v1129_v32, %v1128_v7 }
 0x1ea   :  { %v1131_v11 = vmul.f32 0.001953125, %v1130_v3  ;;  %1132 = vst [vmem:[%s2426_s3] sm:$0x1] %v997_v25  ;;  %v1133_v24 = vmul.f32 %v997_v25, %v997_v25 }
 0x1ec   :  { %v1134_v28 = vsub.f32 %v1131_v11, %v1133_v24 }
 0x1ee   :  { %1135 = vst [vmem:[%s2427_s4] sm:$0x1] %v1134_v28 }

// kernel: resnet_generator_forward.22
= control target key start
LH: loop header
LB: loop body
LE: loop exit
PB: predicated region body
PF: predicated region fallthrough
CT: control target
= control target key end

     0   :  { %s287_s0 = inlined_call_operand.vmem [shape: f32[128,128], index: 0, kind: input, shape index: {}]   ;;  %s288_s1 = inlined_call_operand.vmem [shape: f32[1,128], index: 1, kind: input, shape index: {}]   ;;  %s289_s2 = inlined_call_operand.vmem [shape: f32[1,128], index: 2, kind: input, shape index: {}]   ;;  %s290_s3 = inlined_call_operand.vmem [shape: bf16[128,128], index: 3, kind: output, shape index: {}]  }
   0x1   :  { %v14_v0 = vld [vmem:[%s287_s0] sm:$0xff]  ;;  %v15_v1 = vld [vmem:[%s287_s0 + $0x8] sm:$0xff]  ;;  %v16_v4 = vld [vmem:[%s287_s0 + $0x10] sm:$0xff] }
   0x2   :  { %v169_v2 = vld [vmem:[%s288_s1] ss:$0 sm:$0xff]  ;;  %v17_v5 = vld [vmem:[%s287_s0 + $0x18] sm:$0xff]  ;;  %v19_v11 = vld [vmem:[%s287_s0 + $0x28] sm:$0xff] }
   0x3   :  { %v203_v3 = vld [vmem:[%s289_s2] ss:$0 sm:$0xff]  ;;  %v34_v7 = vmul.f32 %v169_v2, %v14_v0  ;;  %v35_v8 = vmul.f32 %v169_v2, %v15_v1  ;;  %v36_v9 = vmul.f32 %v169_v2, %v16_v4  ;;  %v37_v10 = vmul.f32 %v169_v2, %v17_v5  ;;  %v20_v12 = vld [vmem:[%s287_s0 + $0x30] sm:$0xff]  ;;  %v21_v13 = vld [vmem:[%s287_s0 + $0x38] sm:$0xff] }
   0x4   :  { %v18_v6 = vld [vmem:[%s287_s0 + $0x20] sm:$0xff]  ;;  %v39_v15 = vmul.f32 %v169_v2, %v19_v11  ;;  %v40_v16 = vmul.f32 %v169_v2, %v20_v12  ;;  %v41_v17 = vmul.f32 %v169_v2, %v21_v13  ;;  %v23_v27 = vld [vmem:[%s287_s0 + $0x48] sm:$0xff]  ;;  %v24_v32 = vld [vmem:[%s287_s0 + $0x50] sm:$0xff] }
   0x5   :  { %v38_v14 = vmul.f32 %v169_v2, %v18_v6  ;;  %v54_v18 = vadd.f32 %v203_v3, %v34_v7  ;;  %v55_v19 = vadd.f32 %v203_v3, %v35_v8  ;;  %v56_v20 = vadd.f32 %v203_v3, %v36_v9  ;;  %v22_v26 = vld [vmem:[%s287_s0 + $0x40] sm:$0xff]  ;;  %v25_v33 = vld [vmem:[%s287_s0 + $0x58] sm:$0xff]  ;;  %v27_v39 = vld [vmem:[%s287_s0 + $0x68] sm:$0xff] }
   0x6   :  { %v57_v21 = vadd.f32 %v203_v3, %v37_v10  ;;  %v59_v23 = vadd.f32 %v203_v3, %v39_v15  ;;  %v60_v24 = vadd.f32 %v203_v3, %v40_v16  ;;  %v61_v25 = vadd.f32 %v203_v3, %v41_v17  ;;  %v26_v38 = vld [vmem:[%s287_s0 + $0x60] sm:$0xff]  ;;  %v28_v44 = vld [vmem:[%s287_s0 + $0x70] sm:$0xff]  ;;  %v29_v45 = vld [vmem:[%s287_s0 + $0x78] sm:$0xff] }
   0x7   :  { %v58_v22 = vadd.f32 %v203_v3, %v38_v14  ;;  %v70_v28 = vmax.f32 %v54_v18, 0.0  ;;  %v71_v29 = vmax.f32 %v55_v19, 0.0  ;;  %v72_v30 = vmax.f32 %v56_v20, 0.0 }
   0x8   :  { %v73_v31 = vmax.f32 %v57_v21, 0.0  ;;  %v75_v35 = vmax.f32 %v59_v23, 0.0  ;;  %v76_v36 = vmax.f32 %v60_v24, 0.0  ;;  %v77_v37 = vmax.f32 %v61_v25, 0.0 }
   0x9   :  { %v74_v34 = vmax.f32 %v58_v22, 0.0  ;;  %v125_v40 = vpack.c.bf16 %v71_v29, %v70_v28  ;;  %v42_v42 = vmul.f32 %v169_v2, %v22_v26  ;;  %v43_v43 = vmul.f32 %v169_v2, %v23_v27 }
   0xa   :  { %v130_v41 = vpack.c.bf16 %v73_v31, %v72_v30  ;;  %v140_v47 = vpack.c.bf16 %v77_v37, %v76_v36  ;;  %v44_v48 = vmul.f32 %v169_v2, %v24_v32  ;;  %v45_v49 = vmul.f32 %v169_v2, %v25_v33 }
   0xb   :  { %v135_v46 = vpack.c.bf16 %v75_v35, %v74_v34  ;;  %126 = vst [vmem:[%s290_s3] sm:$0xff] %v125_v40   ;;  %v62_v50 = vadd.f32 %v203_v3, %v42_v42  ;;  %v63_v51 = vadd.f32 %v203_v3, %v43_v43  ;;  %v46_v52 = vmul.f32 %v169_v2, %v26_v38 }
   0xc   :  { %v47_v53 = vmul.f32 %v169_v2, %v27_v39  ;;  %162 = vst [vmem:[%s290_s3 + $0x8] sm:$0xff] %v130_v41   ;;  %v64_v54 = vadd.f32 %v203_v3, %v44_v48  ;;  %v65_v55 = vadd.f32 %v203_v3, %v45_v49  ;;  %v48_v56 = vmul.f32 %v169_v2, %v28_v44 }
   0xd   :  { %v49_v57 = vmul.f32 %v169_v2, %v29_v45  ;;  %163 = vst [vmem:[%s290_s3 + $0x10] sm:$0xff] %v135_v46   ;;  %v78_v58 = vmax.f32 %v62_v50, 0.0  ;;  %v79_v59 = vmax.f32 %v63_v51, 0.0  ;;  %v66_v60 = vadd.f32 %v203_v3, %v46_v52 }
   0xe   :  { %v67_v61 = vadd.f32 %v203_v3, %v47_v53  ;;  %164 = vst [vmem:[%s290_s3 + $0x18] sm:$0xff] %v140_v47   ;;  %v80_v62 = vmax.f32 %v64_v54, 0.0  ;;  %v81_v63 = vmax.f32 %v65_v55, 0.0  ;;  %v68_v0 = vadd.f32 %v203_v3, %v48_v56 }
   0xf   :  { %v69_v1 = vadd.f32 %v203_v3, %v49_v57  ;;  %v145_v2 = vpack.c.bf16 %v79_v59, %v78_v58  ;;  %v82_v4 = vmax.f32 %v66_v60, 0.0 }
  0x10   :  { %v83_v5 = vmax.f32 %v67_v61, 0.0  ;;  %v150_v6 = vpack.c.bf16 %v81_v63, %v80_v62  ;;  %v84_v7 = vmax.f32 %v68_v0, 0.0 }
  0x11   :  { %v85_v8 = vmax.f32 %v69_v1, 0.0  ;;  %165 = vst [vmem:[%s290_s3 + $0x20] sm:$0xff] %v145_v2  }
  0x12   :  { %v155_v9 = vpack.c.bf16 %v83_v5, %v82_v4  ;;  %166 = vst [vmem:[%s290_s3 + $0x28] sm:$0xff] %v150_v6  }
  0x13   :  { %v160_v10 = vpack.c.bf16 %v85_v8, %v84_v7 }
  0x14   :  { %167 = vst [vmem:[%s290_s3 + $0x30] sm:$0xff] %v155_v9  }
  0x15   :  { %168 = vst [vmem:[%s290_s3 + $0x38] sm:$0xff] %v160_v10  }

// kernel: resnet_generator_forward.21
= control target key start
LH: loop header
LB: loop body
LE: loop exit
PB: predicated region body
PF: predicated region fallthrough
CT: control target
= control target key end

     0   :  { %s514_s1 = inlined_call_operand.vmem [shape: bf16[128,128], index: 1, kind: input, shape index: {}]   ;;  %s515_s0 = inlined_call_operand.vmem [shape: bf16[128,128], index: 0, kind: input, shape index: {}]   ;;  %s516_s2 = inlined_call_operand.vmem [shape: f32[128,128], index: 2, kind: output, shape index: {0}]   ;;  %s517_s3 = inlined_call_operand.vmem [shape: f32[1,128], index: 3, kind: output, shape index: {1}]   ;;  %s518_s4 = inlined_call_operand.vmem [shape: f32[1,128], index: 4, kind: output, shape index: {2}]  }
   0x1   :  { %v362_v0 = vld [vmem:[%s514_s1 + $0x38] sm:$0xff]  ;;  %v361_v1 = vld [vmem:[%s514_s1 + $0x30] sm:$0xff]  ;;  %v360_v2 = vld [vmem:[%s514_s1 + $0x28] sm:$0xff] }
   0x2   :  { %142 = vmatpush.bf16.msra.mxu0 %v362_v0  ;;  %363 = vmatpush.bf16.msra.mxu1 %v362_v0  ;;  %v359_v3 = vld [vmem:[%s514_s1 + $0x20] sm:$0xff]  ;;  %v358_v4 = vld [vmem:[%s514_s1 + $0x18] sm:$0xff]  ;;  %v357_v5 = vld [vmem:[%s514_s1 + $0x10] sm:$0xff] }
   0x3   :  { %364 = vmatpush.bf16.msra.mxu2 %v362_v0  ;;  %365 = vmatpush.bf16.msra.mxu3 %v362_v0  ;;  %v356_v6 = vld [vmem:[%s514_s1 + $0x8] sm:$0xff]  ;;  %v355_v7 = vld [vmem:[%s514_s1] sm:$0xff]  ;;  %v349_v9 = vld [vmem:[%s515_s0 + $0x10] sm:$0xff] }
   0x4   :  { %v347_v8 = vld [vmem:[%s515_s0] sm:$0xff]  ;;  %v353_v11 = vld [vmem:[%s515_s0 + $0x30] sm:$0xff]  ;;  %v348_v12 = vld [vmem:[%s515_s0 + $0x8] sm:$0xff] }
   0x5   :  { %v351_v10 = vld [vmem:[%s515_s0 + $0x20] sm:$0xff]  ;;  %v350_v13 = vld [vmem:[%s515_s0 + $0x18] sm:$0xff]  ;;  %v352_v14 = vld [vmem:[%s515_s0 + $0x28] sm:$0xff] }
   0x6   :  { %143 = vmatpush.bf16.msra.mxu0 %v361_v1  ;;  %366 = vmatpush.bf16.msra.mxu1 %v361_v1  ;;  %v354_v15 = vld [vmem:[%s515_s0 + $0x38] sm:$0xff] }
   0x7   :  { %367 = vmatpush.bf16.msra.mxu2 %v361_v1  ;;  %368 = vmatpush.bf16.msra.mxu3 %v361_v1 }
   0xa   :  { %144 = vmatpush.bf16.msra.mxu0 %v360_v2  ;;  %369 = vmatpush.bf16.msra.mxu1 %v360_v2 }
   0xb   :  { %370 = vmatpush.bf16.msra.mxu2 %v360_v2  ;;  %371 = vmatpush.bf16.msra.mxu3 %v360_v2 }
   0xe   :  { %145 = vmatpush.bf16.msra.mxu0 %v359_v3  ;;  %372 = vmatpush.bf16.msra.mxu1 %v359_v3 }
   0xf   :  { %373 = vmatpush.bf16.msra.mxu2 %v359_v3  ;;  %374 = vmatpush.bf16.msra.mxu3 %v359_v3 }
  0x12   :  { %146 = vmatpush.bf16.msra.mxu0 %v358_v4  ;;  %375 = vmatpush.bf16.msra.mxu1 %v358_v4 }
  0x13   :  { %376 = vmatpush.bf16.msra.mxu2 %v358_v4  ;;  %377 = vmatpush.bf16.msra.mxu3 %v358_v4 }
  0x16   :  { %147 = vmatpush.bf16.msra.mxu0 %v357_v5  ;;  %378 = vmatpush.bf16.msra.mxu1 %v357_v5 }
  0x17   :  { %379 = vmatpush.bf16.msra.mxu2 %v357_v5  ;;  %380 = vmatpush.bf16.msra.mxu3 %v357_v5 }
  0x1a   :  { %148 = vmatpush.bf16.msra.mxu0 %v356_v6  ;;  %381 = vmatpush.bf16.msra.mxu1 %v356_v6 }
  0x1b   :  { %382 = vmatpush.bf16.msra.mxu2 %v356_v6  ;;  %383 = vmatpush.bf16.msra.mxu3 %v356_v6 }
  0x1e   :  { %149 = vmatpush.bf16.msra.mxu0 %v355_v7  ;;  %384 = vmatpush.bf16.msra.mxu1 %v355_v7 }
  0x1f   :  { %385 = vmatpush.bf16.msra.mxu2 %v355_v7  ;;  %386 = vmatpush.bf16.msra.mxu3 %v355_v7 }
  0x21   :  { %150 = vmatmul.bf16.vlgmr.msra.gmra.mxu0 %v347_v8  ;;  %160 = vmatmul.bf16.vlgmr.msra.gmra.mxu1 %v349_v9 }
  0x22   :  { %170 = vmatmul.bf16.vlgmr.msra.gmra.mxu2 %v351_v10  ;;  %180 = vmatmul.bf16.vlgmr.msra.gmra.mxu3 %v353_v11 }
  0x31   :  { %155 = vmatmul.bf16.gmra.mxu0 %v348_v12  ;;  %165 = vmatmul.bf16.gmra.mxu1 %v350_v13 }
  0x32   :  { %175 = vmatmul.bf16.gmra.mxu2 %v352_v14  ;;  %185 = vmatmul.bf16.gmra.mxu3 %v354_v15 }
  0x9e   :  { %v151_v16 = vpop.f32.mrf.mxu0  ;;  %v161_v17 = vpop.f32.mrf.mxu1 }
  0x9f   :  { %191 = vst [vmem:[%s516_s2] sm:$0xff] %v151_v16  ;;  %v229_v27 = vmul.f32 %v151_v16, %v151_v16  ;;  %v233_v39 = vmul.f32 %v161_v17, %v161_v17 }
  0xa0   :  { %195 = vst [vmem:[%s516_s2 + $0x20] sm:$0xff] %v161_v17 }
  0xa5   :  { %v171_v18 = vpop.f32.mrf.mxu2  ;;  %v181_v19 = vpop.f32.mrf.mxu3 }
  0xa6   :  { %v153_v20 = vpop.f32.mrf.mxu0  ;;  %v163_v21 = vpop.f32.mrf.mxu1  ;;  %199 = vst [vmem:[%s516_s2 + $0x40] sm:$0xff] %v171_v18  ;;  %v237_v53 = vmul.f32 %v171_v18, %v171_v18  ;;  %v241_v1 = vmul.f32 %v181_v19, %v181_v19 }
  0xa7   :  { %192 = vst [vmem:[%s516_s2 + $0x8] sm:$0xff] %v153_v20  ;;  %v230_v26 = vmul.f32 %v153_v20, %v153_v20  ;;  %v207_v28 = vadd.f32 %v153_v20, %v151_v16  ;;  %v234_v42 = vmul.f32 %v163_v21, %v163_v21 }
  0xa8   :  { %196 = vst [vmem:[%s516_s2 + $0x28] sm:$0xff] %v163_v21 }
  0xa9   :  { %203 = vst [vmem:[%s516_s2 + $0x60] sm:$0xff] %v181_v19  ;;  %v245_v30 = vadd.f32 %v230_v26, %v229_v27 }
  0xad   :  { %v173_v22 = vpop.f32.mrf.mxu2  ;;  %v183_v23 = vpop.f32.mrf.mxu3 }
  0xae   :  { %v156_v24 = vpop.f32.mrf.mxu0  ;;  %v166_v25 = vpop.f32.mrf.mxu1  ;;  %200 = vst [vmem:[%s516_s2 + $0x48] sm:$0xff] %v173_v22  ;;  %v238_v56 = vmul.f32 %v173_v22, %v173_v22  ;;  %v242_v4 = vmul.f32 %v183_v23, %v183_v23 }
  0xaf   :  { %193 = vst [vmem:[%s516_s2 + $0x10] sm:$0xff] %v156_v24  ;;  %v231_v29 = vmul.f32 %v156_v24, %v156_v24  ;;  %v208_v31 = vadd.f32 %v207_v28, %v156_v24  ;;  %v235_v45 = vmul.f32 %v166_v25, %v166_v25 }
  0xb0   :  { %197 = vst [vmem:[%s516_s2 + $0x30] sm:$0xff] %v166_v25 }
  0xb1   :  { %204 = vst [vmem:[%s516_s2 + $0x68] sm:$0xff] %v183_v23  ;;  %v246_v36 = vadd.f32 %v245_v30, %v231_v29 }
  0xb5   :  { %v176_v32 = vpop.f32.mrf.mxu2  ;;  %v186_v33 = vpop.f32.mrf.mxu3 }
  0xb6   :  { %v158_v34 = vpop.f32.mrf.mxu0  ;;  %v168_v35 = vpop.f32.mrf.mxu1  ;;  %201 = vst [vmem:[%s516_s2 + $0x50] sm:$0xff] %v176_v32  ;;  %v239_v60 = vmul.f32 %v176_v32, %v176_v32  ;;  %v243_v8 = vmul.f32 %v186_v33, %v186_v33 }
  0xb7   :  { %194 = vst [vmem:[%s516_s2 + $0x18] sm:$0xff] %v158_v34  ;;  %v209_v37 = vadd.f32 %v208_v31, %v158_v34  ;;  %v232_v38 = vmul.f32 %v158_v34, %v158_v34  ;;  %v236_v51 = vmul.f32 %v168_v35, %v168_v35 }
  0xb8   :  { %198 = vst [vmem:[%s516_s2 + $0x38] sm:$0xff] %v168_v35 }
  0xb9   :  { %v210_v40 = vadd.f32 %v209_v37, %v161_v17  ;;  %v247_v41 = vadd.f32 %v246_v36, %v232_v38  ;;  %205 = vst [vmem:[%s516_s2 + $0x70] sm:$0xff] %v186_v33 }
  0xbb   :  { %v248_v43 = vadd.f32 %v247_v41, %v233_v39  ;;  %v211_v44 = vadd.f32 %v210_v40, %v163_v21 }
  0xbd   :  { %v212_v46 = vadd.f32 %v211_v44, %v166_v25  ;;  %v249_v47 = vadd.f32 %v248_v43, %v234_v42  ;;  %v178_v48 = vpop.f32.mrf.mxu2  ;;  %v188_v49 = vpop.f32.mrf.mxu3 }
  0xbe   :  { %202 = vst [vmem:[%s516_s2 + $0x58] sm:$0xff] %v178_v48  ;;  %v240_v0 = vmul.f32 %v178_v48, %v178_v48  ;;  %v244_v12 = vmul.f32 %v188_v49, %v188_v49 }
  0xbf   :  { %v213_v50 = vadd.f32 %v212_v46, %v168_v35  ;;  %v250_v52 = vadd.f32 %v249_v47, %v235_v45  ;;  %206 = vst [vmem:[%s516_s2 + $0x78] sm:$0xff] %v188_v49 }
  0xc1   :  { %v214_v54 = vadd.f32 %v213_v50, %v171_v18  ;;  %v251_v55 = vadd.f32 %v250_v52, %v236_v51 }
  0xc3   :  { %v252_v57 = vadd.f32 %v251_v55, %v237_v53  ;;  %v215_v58 = vadd.f32 %v214_v54, %v173_v22 }
  0xc5   :  { %v216_v59 = vadd.f32 %v215_v58, %v176_v32  ;;  %v253_v61 = vadd.f32 %v252_v57, %v238_v56 }
  0xc7   :  { %v254_v62 = vadd.f32 %v253_v61, %v239_v60  ;;  %v217_v63 = vadd.f32 %v216_v59, %v178_v48 }
  0xc9   :  { %v218_v2 = vadd.f32 %v217_v63, %v181_v19  ;;  %v255_v3 = vadd.f32 %v254_v62, %v240_v0 }
  0xcb   :  { %v256_v5 = vadd.f32 %v255_v3, %v241_v1  ;;  %v219_v6 = vadd.f32 %v218_v2, %v183_v23 }
  0xcd   :  { %v220_v7 = vadd.f32 %v219_v6, %v186_v33  ;;  %v257_v9 = vadd.f32 %v256_v5, %v242_v4 }
  0xcf   :  { %v258_v10 = vadd.f32 %v257_v9, %v243_v8  ;;  %v221_v11 = vadd.f32 %v220_v7, %v188_v49 }
  0xd1   :  { %v222_v13 = vrot.slane %v221_v11, 4  ;;  %v259_v14 = vadd.f32 %v258_v10, %v244_v12 }
  0xd3   :  { %v223_v15 = vadd.f32 %v222_v13, %v221_v11  ;;  %v260_v16 = vrot.slane %v259_v14, 4 }
  0xd5   :  { %v224_v17 = vrot.slane %v223_v15, 2  ;;  %v261_v18 = vadd.f32 %v260_v16, %v259_v14 }
  0xd7   :  { %v225_v20 = vadd.f32 %v224_v17, %v223_v15  ;;  %v262_v21 = vrot.slane %v261_v18, 2 }
  0xd9   :  { %v226_v22 = vrot.slane %v225_v20, 1  ;;  %v263_v19 = vadd.f32 %v262_v21, %v261_v18 }
  0xdb   :  { %v227_v24 = vadd.f32 %v226_v22, %v225_v20  ;;  %v264_v25 = vrot.slane %v263_v19, 1 }
  0xdd   :  { %v228_v26 = vmul.f32 0.0078125, %v227_v24  ;;  %v265_v23 = vadd.f32 %v264_v25, %v263_v19 }
  0xdf   :  { %v266_v27 = vmul.f32 0.0078125, %v265_v23  ;;  %267 = vst [vmem:[%s517_s3] sm:$0x1] %v228_v26  ;;  %v268_v28 = vmul.f32 %v228_v26, %v228_v26 }
  0xe1   :  { %v269_v29 = vsub.f32 %v266_v27, %v268_v28 }
  0xe3   :  { %270 = vst [vmem:[%s518_s4] sm:$0x1] %v269_v29 }

// kernel: resnet_generator_forward.24
= control target key start
LH: loop header
LB: loop body
LE: loop exit
PB: predicated region body
PF: predicated region fallthrough
CT: control target
= control target key end

     0   :  { %s107_s0 = inlined_call_operand.vmem [shape: f32[32,128], index: 0, kind: input, shape index: {}]   ;;  %s108_s1 = inlined_call_operand.vmem [shape: f32[1,128], index: 1, kind: input, shape index: {}]   ;;  %s109_s2 = inlined_call_operand.vmem [shape: f32[1,128], index: 2, kind: input, shape index: {}]   ;;  %s110_s3 = inlined_call_operand.vmem [shape: bf16[32,128], index: 3, kind: output, shape index: {}]  }
   0x1   :  { %v14_v0 = vld [vmem:[%s107_s0] sm:$0xff]  ;;  %v15_v1 = vld [vmem:[%s107_s0 + $0x8] sm:$0xff]  ;;  %v16_v4 = vld [vmem:[%s107_s0 + $0x10] sm:$0xff] }
   0x2   :  { %v61_v2 = vld [vmem:[%s108_s1] ss:$0 sm:$0xff]  ;;  %v17_v5 = vld [vmem:[%s107_s0 + $0x18] sm:$0xff] }
   0x3   :  { %v62_v3 = vld [vmem:[%s109_s2] ss:$0 sm:$0xff]  ;;  %v22_v6 = vmul.f32 %v61_v2, %v14_v0  ;;  %v23_v7 = vmul.f32 %v61_v2, %v15_v1  ;;  %v24_v8 = vmul.f32 %v61_v2, %v16_v4  ;;  %v25_v9 = vmul.f32 %v61_v2, %v17_v5 }
   0x5   :  { %v30_v10 = vadd.f32 %v62_v3, %v22_v6  ;;  %v31_v11 = vadd.f32 %v62_v3, %v23_v7  ;;  %v32_v12 = vadd.f32 %v62_v3, %v24_v8  ;;  %v33_v13 = vadd.f32 %v62_v3, %v25_v9 }
   0x7   :  { %v34_v14 = vmax.f32 %v30_v10, 0.0  ;;  %v35_v15 = vmax.f32 %v31_v11, 0.0  ;;  %v36_v16 = vmax.f32 %v32_v12, 0.0  ;;  %v37_v17 = vmax.f32 %v33_v13, 0.0 }
   0x9   :  { %v53_v18 = vpack.c.bf16 %v35_v15, %v34_v14  ;;  %v58_v19 = vpack.c.bf16 %v37_v17, %v36_v16 }
   0xb   :  { %54 = vst [vmem:[%s110_s3] sm:$0xff] %v53_v18  }
   0xc   :  { %60 = vst [vmem:[%s110_s3 + $0x8] sm:$0xff] %v58_v19  }

// kernel: resnet_generator_forward.23
= control target key start
LH: loop header
LB: loop body
LE: loop exit
PB: predicated region body
PF: predicated region fallthrough
CT: control target
= control target key end

     0   :  { %s479_s1 = inlined_call_operand.vmem [shape: bf16[256,128], index: 1, kind: input, shape index: {}]   ;;  %s480_s0 = inlined_call_operand.vmem [shape: bf16[32,256], index: 0, kind: input, shape index: {}]   ;;  %s481_s2 = inlined_call_operand.vmem [shape: f32[32,128], index: 2, kind: output, shape index: {0}]   ;;  %s482_s3 = inlined_call_operand.vmem [shape: f32[1,128], index: 3, kind: output, shape index: {1}]   ;;  %s483_s4 = inlined_call_operand.vmem [shape: f32[1,128], index: 4, kind: output, shape index: {2}]  }
   0x1   :  { %v339_v0 = vld [vmem:[%s479_s1 + $0x38] sm:$0xff]  ;;  %v338_v2 = vld [vmem:[%s479_s1 + $0x30] sm:$0xff]  ;;  %v337_v4 = vld [vmem:[%s479_s1 + $0x28] sm:$0xff] }
   0x2   :  { %v347_v1 = vld [vmem:[%s479_s1 + $0x78] sm:$0xff]  ;;  %166 = vmatpush.bf16.msra.mxu0 %v339_v0  ;;  %348 = vmatpush.bf16.msra.mxu2 %v339_v0  ;;  %v346_v3 = vld [vmem:[%s479_s1 + $0x70] sm:$0xff]  ;;  %v345_v5 = vld [vmem:[%s479_s1 + $0x68] sm:$0xff] }
   0x3   :  { %185 = vmatpush.bf16.msra.mxu1 %v347_v1  ;;  %356 = vmatpush.bf16.msra.mxu3 %v347_v1  ;;  %v336_v6 = vld [vmem:[%s479_s1 + $0x20] sm:$0xff]  ;;  %v335_v8 = vld [vmem:[%s479_s1 + $0x18] sm:$0xff]  ;;  %v334_v10 = vld [vmem:[%s479_s1 + $0x10] sm:$0xff] }
   0x4   :  { %v344_v7 = vld [vmem:[%s479_s1 + $0x60] sm:$0xff]  ;;  %v343_v9 = vld [vmem:[%s479_s1 + $0x58] sm:$0xff]  ;;  %v342_v11 = vld [vmem:[%s479_s1 + $0x50] sm:$0xff] }
   0x5   :  { %v333_v12 = vld [vmem:[%s479_s1 + $0x8] sm:$0xff]  ;;  %v332_v14 = vld [vmem:[%s479_s1] sm:$0xff]  ;;  %v258_v18 = vld [vmem:[%s480_s0 + $0x10] sm:$0xf] }
   0x6   :  { %167 = vmatpush.bf16.msra.mxu0 %v338_v2  ;;  %349 = vmatpush.bf16.msra.mxu2 %v338_v2  ;;  %v341_v13 = vld [vmem:[%s479_s1 + $0x48] sm:$0xff]  ;;  %v340_v15 = vld [vmem:[%s479_s1 + $0x40] sm:$0xff]  ;;  %v331_v19 = vld [vmem:[%s480_s0 + $0x14] sm:$0xf0] }
   0x7   :  { %186 = vmatpush.bf16.msra.mxu1 %v346_v3  ;;  %357 = vmatpush.bf16.msra.mxu3 %v346_v3  ;;  %v250_v16 = vld [vmem:[%s480_s0] sm:$0xf]  ;;  %v329_v17 = vld [vmem:[%s480_s0 + $0x4] sm:$0xf0]  ;;  %v328_v20 = vld [vmem:[%s480_s0 + $0x4] sm:$0xf]  ;;  %v259_v25 = vor.u32 %v331_v19, %v258_v18 }
   0x8   :  { %v252_v21 = vld [vmem:[%s480_s0 + $0x8] sm:$0xf0]  ;;  %v330_v22 = vld [vmem:[%s480_s0 + $0x14] sm:$0xf]  ;;  %v260_v23 = vld [vmem:[%s480_s0 + $0x18] sm:$0xf0]  ;;  %v251_v24 = vor.u32 %v329_v17, %v250_v16 }
   0x9   :  { %v255_v26 = vor.u32 %v328_v20, %v252_v21  ;;  %v263_v27 = vor.u32 %v330_v22, %v260_v23 }
   0xa   :  { %168 = vmatpush.bf16.msra.mxu0 %v337_v4  ;;  %350 = vmatpush.bf16.msra.mxu2 %v337_v4 }
   0xb   :  { %187 = vmatpush.bf16.msra.mxu1 %v345_v5  ;;  %358 = vmatpush.bf16.msra.mxu3 %v345_v5 }
   0xe   :  { %169 = vmatpush.bf16.msra.mxu0 %v336_v6  ;;  %351 = vmatpush.bf16.msra.mxu2 %v336_v6 }
   0xf   :  { %188 = vmatpush.bf16.msra.mxu1 %v344_v7  ;;  %359 = vmatpush.bf16.msra.mxu3 %v344_v7 }
  0x12   :  { %170 = vmatpush.bf16.msra.mxu0 %v335_v8  ;;  %352 = vmatpush.bf16.msra.mxu2 %v335_v8 }
  0x13   :  { %189 = vmatpush.bf16.msra.mxu1 %v343_v9  ;;  %360 = vmatpush.bf16.msra.mxu3 %v343_v9 }
  0x16   :  { %171 = vmatpush.bf16.msra.mxu0 %v334_v10  ;;  %353 = vmatpush.bf16.msra.mxu2 %v334_v10 }
  0x17   :  { %190 = vmatpush.bf16.msra.mxu1 %v342_v11  ;;  %361 = vmatpush.bf16.msra.mxu3 %v342_v11 }
  0x1a   :  { %172 = vmatpush.bf16.msra.mxu0 %v333_v12  ;;  %354 = vmatpush.bf16.msra.mxu2 %v333_v12 }
  0x1b   :  { %191 = vmatpush.bf16.msra.mxu1 %v341_v13  ;;  %362 = vmatpush.bf16.msra.mxu3 %v341_v13 }
  0x1e   :  { %173 = vmatpush.bf16.msra.mxu0 %v332_v14  ;;  %355 = vmatpush.bf16.msra.mxu2 %v332_v14 }
  0x1f   :  { %192 = vmatpush.bf16.msra.mxu1 %v340_v15  ;;  %363 = vmatpush.bf16.msra.mxu3 %v340_v15 }
  0x21   :  { %174 = vmatmul.bf16.vlgmr.msra.gmra.mxu0 %v251_v24  ;;  %179 = vmatmul.bf16.vlgmr.msra.gmra.mxu2 %v259_v25 }
  0x22   :  { %193 = vmatmul.bf16.vlgmr.msra.gmra.mxu1 %v255_v26  ;;  %198 = vmatmul.bf16.vlgmr.msra.gmra.mxu3 %v263_v27 }
  0x9e   :  { %v175_v28 = vpop.f32.mrf.mxu0 }
  0x9f   :  { %v194_v29 = vpop.f32.mrf.mxu1 }
  0xa0   :  { %v195_v30 = vadd.f32 %v194_v29, %v175_v28 }
  0xa2   :  { %204 = vst [vmem:[%s481_s2] sm:$0xff] %v195_v30  ;;  %v218_v37 = vmul.f32 %v195_v30, %v195_v30 }
  0xa4   :  { %v180_v31 = vpop.f32.mrf.mxu2 }
  0xa5   :  { %v199_v32 = vpop.f32.mrf.mxu3 }
  0xa6   :  { %v200_v33 = vadd.f32 %v199_v32, %v180_v31  ;;  %v177_v34 = vpop.f32.mrf.mxu0 }
  0xa7   :  { %v196_v35 = vpop.f32.mrf.mxu1 }
  0xa8   :  { %206 = vst [vmem:[%s481_s2 + $0x10] sm:$0xff] %v200_v33  ;;  %v197_v36 = vadd.f32 %v196_v35, %v177_v34  ;;  %v220_v43 = vmul.f32 %v200_v33, %v200_v33 }
  0xaa   :  { %205 = vst [vmem:[%s481_s2 + $0x8] sm:$0xff] %v197_v36  ;;  %v208_v38 = vadd.f32 %v197_v36, %v195_v30  ;;  %v219_v39 = vmul.f32 %v197_v36, %v197_v36 }
  0xac   :  { %v222_v40 = vadd.f32 %v219_v39, %v218_v37  ;;  %v182_v41 = vpop.f32.mrf.mxu2  ;;  %v209_v45 = vadd.f32 %v208_v38, %v200_v33 }
  0xad   :  { %v201_v42 = vpop.f32.mrf.mxu3 }
  0xae   :  { %v202_v44 = vadd.f32 %v201_v42, %v182_v41  ;;  %v223_v48 = vadd.f32 %v222_v40, %v220_v43 }
  0xb0   :  { %207 = vst [vmem:[%s481_s2 + $0x18] sm:$0xff] %v202_v44  ;;  %v210_v46 = vadd.f32 %v209_v45, %v202_v44  ;;  %v221_v47 = vmul.f32 %v202_v44, %v202_v44 }
  0xb2   :  { %v211_v49 = vrot.slane %v210_v46, 4  ;;  %v224_v50 = vadd.f32 %v223_v48, %v221_v47 }
  0xb4   :  { %v212_v51 = vadd.f32 %v211_v49, %v210_v46  ;;  %v225_v52 = vrot.slane %v224_v50, 4 }
  0xb6   :  { %v213_v53 = vrot.slane %v212_v51, 2  ;;  %v226_v54 = vadd.f32 %v225_v52, %v224_v50 }
  0xb8   :  { %v214_v55 = vadd.f32 %v213_v53, %v212_v51  ;;  %v227_v56 = vrot.slane %v226_v54, 2 }
  0xba   :  { %v215_v57 = vrot.slane %v214_v55, 1  ;;  %v228_v58 = vadd.f32 %v227_v56, %v226_v54 }
  0xbc   :  { %v216_v59 = vadd.f32 %v215_v57, %v214_v55  ;;  %v229_v60 = vrot.slane %v228_v58, 1 }
  0xbe   :  { %v217_v61 = vmul.f32 0.03125, %v216_v59  ;;  %v230_v62 = vadd.f32 %v229_v60, %v228_v58 }
  0xc0   :  { %v231_v63 = vmul.f32 0.03125, %v230_v62  ;;  %232 = vst [vmem:[%s482_s3] sm:$0x1] %v217_v61  ;;  %v233_v0 = vmul.f32 %v217_v61, %v217_v61 }
  0xc2   :  { %v234_v1 = vsub.f32 %v231_v63, %v233_v0 }
  0xc4   :  { %235 = vst [vmem:[%s483_s4] sm:$0x1] %v234_v1 }

// kernel: resnet_generator_forward.25
= control target key start
LH: loop header
LB: loop body
LE: loop exit
PB: predicated region body
PF: predicated region fallthrough
CT: control target
= control target key end

     0   :  { %s656_s1 = inlined_call_operand.vmem [shape: bf16[384,128], index: 1, kind: input, shape index: {}]   ;;  %s657_s0 = inlined_call_operand.vmem [shape: bf16[32,384], index: 0, kind: input, shape index: {}]   ;;  %s658_s2 = inlined_call_operand.vmem [shape: f32[32,128], index: 2, kind: output, shape index: {0}]   ;;  %s659_s3 = inlined_call_operand.vmem [shape: f32[1,128], index: 3, kind: output, shape index: {1}]   ;;  %s660_s4 = inlined_call_operand.vmem [shape: f32[1,128], index: 4, kind: output, shape index: {2}]  }
   0x1   :  { %v480_v0 = vld [vmem:[%s656_s1 + $0x38] sm:$0xff]  ;;  %v479_v3 = vld [vmem:[%s656_s1 + $0x30] sm:$0xff]  ;;  %v478_v6 = vld [vmem:[%s656_s1 + $0x28] sm:$0xff] }
   0x2   :  { %v488_v1 = vld [vmem:[%s656_s1 + $0x78] sm:$0xff]  ;;  %246 = vmatpush.bf16.msra.mxu0 %v480_v0  ;;  %v487_v4 = vld [vmem:[%s656_s1 + $0x70] sm:$0xff]  ;;  %497 = vmatpush.bf16.msra.mxu3 %v480_v0  ;;  %v486_v7 = vld [vmem:[%s656_s1 + $0x68] sm:$0xff] }
   0x3   :  { %v496_v2 = vld [vmem:[%s656_s1 + $0xb8] sm:$0xff]  ;;  %265 = vmatpush.bf16.msra.mxu1 %v488_v1  ;;  %v495_v5 = vld [vmem:[%s656_s1 + $0xb0] sm:$0xff]  ;;  %v494_v8 = vld [vmem:[%s656_s1 + $0xa8] sm:$0xff] }
   0x4   :  { %284 = vmatpush.bf16.msra.mxu2 %v496_v2  ;;  %v477_v9 = vld [vmem:[%s656_s1 + $0x20] sm:$0xff]  ;;  %v476_v12 = vld [vmem:[%s656_s1 + $0x18] sm:$0xff]  ;;  %v475_v15 = vld [vmem:[%s656_s1 + $0x10] sm:$0xff] }
   0x5   :  { %v485_v10 = vld [vmem:[%s656_s1 + $0x60] sm:$0xff]  ;;  %v484_v13 = vld [vmem:[%s656_s1 + $0x58] sm:$0xff]  ;;  %v483_v16 = vld [vmem:[%s656_s1 + $0x50] sm:$0xff] }
   0x6   :  { %247 = vmatpush.bf16.msra.mxu0 %v479_v3  ;;  %498 = vmatpush.bf16.msra.mxu3 %v479_v3  ;;  %v493_v11 = vld [vmem:[%s656_s1 + $0xa0] sm:$0xff]  ;;  %v492_v14 = vld [vmem:[%s656_s1 + $0x98] sm:$0xff]  ;;  %v491_v17 = vld [vmem:[%s656_s1 + $0x90] sm:$0xff] }
   0x7   :  { %266 = vmatpush.bf16.msra.mxu1 %v487_v4  ;;  %v474_v18 = vld [vmem:[%s656_s1 + $0x8] sm:$0xff]  ;;  %v473_v21 = vld [vmem:[%s656_s1] sm:$0xff]  ;;  %v351_v27 = vld [vmem:[%s657_s0 + $0xc] sm:$0xf0] }
   0x8   :  { %285 = vmatpush.bf16.msra.mxu2 %v495_v5  ;;  %v482_v19 = vld [vmem:[%s656_s1 + $0x48] sm:$0xff]  ;;  %v481_v22 = vld [vmem:[%s656_s1 + $0x40] sm:$0xff]  ;;  %v469_v29 = vld [vmem:[%s657_s0 + $0x10] sm:$0xf0] }
   0x9   :  { %v490_v20 = vld [vmem:[%s656_s1 + $0x88] sm:$0xff]  ;;  %v489_v23 = vld [vmem:[%s656_s1 + $0x80] sm:$0xff]  ;;  %v361_v30 = vld [vmem:[%s657_s0 + $0x18] sm:$0xf] }
   0xa   :  { %248 = vmatpush.bf16.msra.mxu0 %v478_v6  ;;  %499 = vmatpush.bf16.msra.mxu3 %v478_v6  ;;  %v349_v24 = vld [vmem:[%s657_s0] sm:$0xf]  ;;  %v468_v25 = vld [vmem:[%s657_s0 + $0x8] sm:$0xf0]  ;;  %v467_v26 = vld [vmem:[%s657_s0 + $0x4] sm:$0xf] }
   0xb   :  { %267 = vmatpush.bf16.msra.mxu1 %v486_v7  ;;  %v357_v28 = vld [vmem:[%s657_s0 + $0x8] sm:$0xf]  ;;  %v471_v31 = vld [vmem:[%s657_s0 + $0x20] sm:$0xf0]  ;;  %v350_v32 = vor.u32 %v468_v25, %v349_v24  ;;  %v354_v33 = vor.u32 %v467_v26, %v351_v27  ;;  %v470_v36 = vld [vmem:[%s657_s0 + $0x1c] sm:$0xf] }
   0xc   :  { %286 = vmatpush.bf16.msra.mxu2 %v494_v8  ;;  %v358_v34 = vor.u32 %v469_v29, %v357_v28  ;;  %v362_v35 = vor.u32 %v471_v31, %v361_v30  ;;  %v363_v37 = vld [vmem:[%s657_s0 + $0x24] sm:$0xf0]  ;;  %v369_v38 = vld [vmem:[%s657_s0 + $0x20] sm:$0xf]  ;;  %v472_v39 = vld [vmem:[%s657_s0 + $0x28] sm:$0xf0] }
   0xd   :  { %v366_v40 = vor.u32 %v470_v36, %v363_v37  ;;  %v370_v41 = vor.u32 %v472_v39, %v369_v38 }
   0xe   :  { %249 = vmatpush.bf16.msra.mxu0 %v477_v9  ;;  %500 = vmatpush.bf16.msra.mxu3 %v477_v9 }
   0xf   :  { %268 = vmatpush.bf16.msra.mxu1 %v485_v10 }
  0x10   :  { %287 = vmatpush.bf16.msra.mxu2 %v493_v11 }
  0x12   :  { %250 = vmatpush.bf16.msra.mxu0 %v476_v12  ;;  %501 = vmatpush.bf16.msra.mxu3 %v476_v12 }
  0x13   :  { %269 = vmatpush.bf16.msra.mxu1 %v484_v13 }
  0x14   :  { %288 = vmatpush.bf16.msra.mxu2 %v492_v14 }
  0x16   :  { %251 = vmatpush.bf16.msra.mxu0 %v475_v15  ;;  %502 = vmatpush.bf16.msra.mxu3 %v475_v15 }
  0x17   :  { %270 = vmatpush.bf16.msra.mxu1 %v483_v16 }
  0x18   :  { %289 = vmatpush.bf16.msra.mxu2 %v491_v17 }
  0x1a   :  { %252 = vmatpush.bf16.msra.mxu0 %v474_v18  ;;  %503 = vmatpush.bf16.msra.mxu3 %v474_v18 }
  0x1b   :  { %271 = vmatpush.bf16.msra.mxu1 %v482_v19 }
  0x1c   :  { %290 = vmatpush.bf16.msra.mxu2 %v490_v20 }
  0x1e   :  { %253 = vmatpush.bf16.msra.mxu0 %v473_v21  ;;  %504 = vmatpush.bf16.msra.mxu3 %v473_v21 }
  0x1f   :  { %272 = vmatpush.bf16.msra.mxu1 %v481_v22 }
  0x20   :  { %291 = vmatpush.bf16.msra.mxu2 %v489_v23 }
  0x21   :  { %254 = vmatmul.bf16.vlgmr.msra.gmra.mxu0 %v350_v32  ;;  %259 = vmatmul.bf16.vlgmr.msra.gmra.mxu3 %v362_v35 }
  0x22   :  { %273 = vmatmul.bf16.vlgmr.msra.gmra.mxu1 %v354_v33 }
  0x23   :  { %292 = vmatmul.bf16.vlgmr.msra.gmra.mxu2 %v358_v34 }
  0x32   :  { %278 = vmatmul.bf16.gmra.mxu1 %v366_v40 }
  0x33   :  { %297 = vmatmul.bf16.gmra.mxu2 %v370_v41 }
  0x9e   :  { %v255_v43 = vpop.f32.mrf.mxu0 }
  0x9f   :  { %v274_v42 = vpop.f32.mrf.mxu1 }
  0xa0   :  { %v275_v44 = vadd.f32 %v274_v42, %v255_v43 }
  0xa4   :  { %v260_v53 = vpop.f32.mrf.mxu3 }
  0xa6   :  { %v293_v45 = vpop.f32.mrf.mxu2  ;;  %v257_v48 = vpop.f32.mrf.mxu0 }
  0xa7   :  { %v294_v46 = vadd.f32 %v293_v45, %v275_v44  ;;  %v276_v47 = vpop.f32.mrf.mxu1 }
  0xa8   :  { %v277_v49 = vadd.f32 %v276_v47, %v257_v48 }
  0xa9   :  { %303 = vst [vmem:[%s658_s2] sm:$0xff] %v294_v46  ;;  %v317_v60 = vmul.f32 %v294_v46, %v294_v46 }
  0xac   :  { %v262_v59 = vpop.f32.mrf.mxu3 }
  0xae   :  { %v295_v50 = vpop.f32.mrf.mxu2 }
  0xaf   :  { %v296_v51 = vadd.f32 %v295_v50, %v277_v49  ;;  %v279_v52 = vpop.f32.mrf.mxu1 }
  0xb0   :  { %v280_v54 = vadd.f32 %v279_v52, %v260_v53 }
  0xb1   :  { %304 = vst [vmem:[%s658_s2 + $0x8] sm:$0xff] %v296_v51  ;;  %v318_v58 = vmul.f32 %v296_v51, %v296_v51  ;;  %v307_v61 = vadd.f32 %v296_v51, %v294_v46 }
  0xb3   :  { %v321_v1 = vadd.f32 %v318_v58, %v317_v60 }
  0xb6   :  { %v298_v55 = vpop.f32.mrf.mxu2 }
  0xb7   :  { %v299_v56 = vadd.f32 %v298_v55, %v280_v54  ;;  %v281_v57 = vpop.f32.mrf.mxu1 }
  0xb8   :  { %v282_v63 = vadd.f32 %v281_v57, %v262_v59 }
  0xb9   :  { %305 = vst [vmem:[%s658_s2 + $0x10] sm:$0xff] %v299_v56  ;;  %v319_v62 = vmul.f32 %v299_v56, %v299_v56  ;;  %v308_v2 = vadd.f32 %v307_v61, %v299_v56 }
  0xbb   :  { %v322_v4 = vadd.f32 %v321_v1, %v319_v62 }
  0xbe   :  { %v300_v0 = vpop.f32.mrf.mxu2 }
  0xbf   :  { %v301_v3 = vadd.f32 %v300_v0, %v282_v63 }
  0xc1   :  { %306 = vst [vmem:[%s658_s2 + $0x18] sm:$0xff] %v301_v3  ;;  %v309_v5 = vadd.f32 %v308_v2, %v301_v3  ;;  %v320_v6 = vmul.f32 %v301_v3, %v301_v3 }
  0xc3   :  { %v310_v7 = vrot.slane %v309_v5, 4  ;;  %v323_v8 = vadd.f32 %v322_v4, %v320_v6 }
  0xc5   :  { %v311_v9 = vadd.f32 %v310_v7, %v309_v5  ;;  %v324_v10 = vrot.slane %v323_v8, 4 }
  0xc7   :  { %v312_v11 = vrot.slane %v311_v9, 2  ;;  %v325_v12 = vadd.f32 %v324_v10, %v323_v8 }
  0xc9   :  { %v313_v13 = vadd.f32 %v312_v11, %v311_v9  ;;  %v326_v14 = vrot.slane %v325_v12, 2 }
  0xcb   :  { %v314_v15 = vrot.slane %v313_v13, 1  ;;  %v327_v16 = vadd.f32 %v326_v14, %v325_v12 }
  0xcd   :  { %v315_v17 = vadd.f32 %v314_v15, %v313_v13  ;;  %v328_v18 = vrot.slane %v327_v16, 1 }
  0xcf   :  { %v316_v19 = vmul.f32 0.03125, %v315_v17  ;;  %v329_v20 = vadd.f32 %v328_v18, %v327_v16 }
  0xd1   :  { %v330_v21 = vmul.f32 0.03125, %v329_v20  ;;  %331 = vst [vmem:[%s659_s3] sm:$0x1] %v316_v19  ;;  %v332_v22 = vmul.f32 %v316_v19, %v316_v19 }
  0xd3   :  { %v333_v23 = vsub.f32 %v330_v21, %v332_v22 }
  0xd5   :  { %334 = vst [vmem:[%s660_s4] sm:$0x1] %v333_v23 }

// kernel: resnet_generator_forward.28
= control target key start
LH: loop header
LB: loop body
LE: loop exit
PB: predicated region body
PF: predicated region fallthrough
CT: control target
= control target key end

     0   :  { %s138_s0 = inlined_call_operand.vmem [shape: f32[32,128], index: 0, kind: input, shape index: {}]   ;;  %s139_s1 = inlined_call_operand.vmem [shape: f32[1,128], index: 1, kind: input, shape index: {}]   ;;  %s140_s2 = inlined_call_operand.vmem [shape: f32[1,128], index: 2, kind: input, shape index: {}]   ;;  %s141_s3 = inlined_call_operand.vmem [shape: bf16[32,128], index: 3, kind: input, shape index: {}]   ;;  %s142_s4 = inlined_call_operand.vmem [shape: bf16[32,128], index: 4, kind: output, shape index: {}]  }
   0x1   :  { %v17_v0 = vld [vmem:[%s138_s0] sm:$0xff]  ;;  %v18_v1 = vld [vmem:[%s138_s0 + $0x8] sm:$0xff]  ;;  %v19_v5 = vld [vmem:[%s138_s0 + $0x10] sm:$0xff] }
   0x2   :  { %v81_v2 = vld [vmem:[%s139_s1] ss:$0 sm:$0xff]  ;;  %v20_v6 = vld [vmem:[%s138_s0 + $0x18] sm:$0xff]  ;;  %v79_v11 = vld [vmem:[%s141_s3 + $0x8] sm:$0xff]  }
   0x3   :  { %v82_v3 = vld [vmem:[%s140_s2] ss:$0 sm:$0xff]  ;;  %v25_v7 = vmul.f32 %v81_v2, %v17_v0  ;;  %v26_v8 = vmul.f32 %v81_v2, %v18_v1  ;;  %v27_v12 = vmul.f32 %v81_v2, %v19_v5  ;;  %v28_v13 = vmul.f32 %v81_v2, %v20_v6 }
   0x4   :  { %v62_v4 = vld [vmem:[%s141_s3] sm:$0xff]   ;;  %v67_v14 = vunpack.c.l.bf16 %v79_v11  ;;  %v68_v15 = vunpack.c.h.bf16 %v79_v11 }
   0x5   :  { %v63_v9 = vunpack.c.l.bf16 %v62_v4  ;;  %v64_v10 = vunpack.c.h.bf16 %v62_v4  ;;  %v33_v16 = vadd.f32 %v82_v3, %v25_v7  ;;  %v34_v17 = vadd.f32 %v82_v3, %v26_v8 }
   0x6   :  { %v35_v18 = vadd.f32 %v82_v3, %v27_v12  ;;  %v36_v19 = vadd.f32 %v82_v3, %v28_v13 }
   0x7   :  { %v45_v20 = vadd.f32 %v63_v9, %v33_v16  ;;  %v46_v21 = vadd.f32 %v64_v10, %v34_v17 }
   0x8   :  { %v47_v22 = vadd.f32 %v67_v14, %v35_v18  ;;  %v48_v23 = vadd.f32 %v68_v15, %v36_v19 }
   0x9   :  { %v72_v24 = vpack.c.bf16 %v46_v21, %v45_v20 }
   0xa   :  { %v77_v25 = vpack.c.bf16 %v48_v23, %v47_v22 }
   0xb   :  { %73 = vst [vmem:[%s142_s4] sm:$0xff] %v72_v24  }
   0xc   :  { %80 = vst [vmem:[%s142_s4 + $0x8] sm:$0xff] %v77_v25  }

// kernel: tile.28
= control target key start
LH: loop header
LB: loop body
LE: loop exit
PB: predicated region body
PF: predicated region fallthrough
CT: control target
= control target key end

     0   :  { %s22_s0 = inlined_call_operand.vmem [shape: f32[16], index: 0, kind: input, shape index: {}]   ;;  %s23_s1 = inlined_call_operand.vmem [shape: f32[4,16], index: 1, kind: output, shape index: {}]  }
   0x1   :  { %v4_v0 = vld [vmem:[%s22_s0] ss:$0 sm:$0xff] }
   0x2   :  { %5 = vst [vmem:[%s23_s1] sm:$0xf] %v4_v0 }

// kernel: tile.29
= control target key start
LH: loop header
LB: loop body
LE: loop exit
PB: predicated region body
PF: predicated region fallthrough
CT: control target
= control target key end

     0   :  { %s37_s8 = smov 16   ;;  %s38_s9 = smov 32   ;;  %vm7_vm0 = vcmask 130048   ;;  %vm13_vm1 = vcmask 523648   ;;  %vm19_vm2 = vcmask 392448   ;;  %vm25_vm3 = vcmask 261248   ;;  %s55_s0 = inlined_call_operand.vmem [shape: f32[4,16], index: 0, kind: input, shape index: {}]   ;;  %s56_s1 = inlined_call_operand.vmem [shape: f32[64], index: 1, kind: output, shape index: {}]  }
   0x1   :  { %v4_v0 = vld [vmem:[%s55_s0] sm:$0xf]  ;;  %s36_s0 = smov 48  }
   0x2   :  { %5 = vst [vmem:[#allocation1] sm:$0xf] %v4_v0 }
   0x9   :  { %v10_v1 = vld [vmem:[#allocation1 + $0x3] sm:$0x1]   ;;  %v22_v2 = vld [vmem:[#allocation1 + $0x1] sm:$0x1]   ;;  %v16_v3 = vld [vmem:[#allocation1 + $0x2] sm:$0x1]  }
   0xa   :  { %11 = vrot.lane.b32.xlu0 %v10_v1, %s36_s0  ;;  %23 = vrot.lane.b32.xlu1 %v22_v2, %s37_s8  ;;  %v6_v4 = vld [vmem:[#allocation1] sm:$0x1]  }
   0xb   :  { %8 = vst.msk [vmem:[#allocation0] sm:$0x1] %vm7_vm0, %v6_v4  }
  0x12   :  { %17 = vrot.lane.b32.xlu0 %v16_v3, %s38_s9 }
  0x7c   :  { %v12_v5 = vpop.permute.xlu0 %11   ;;  %v24_v6 = vpop.permute.xlu1 %23  }
  0x7d   :  { %14 = vst.msk [vmem:[#allocation0] sm:$0x1] %vm13_vm1, %v12_v5  }
  0x84   :  { %v18_v7 = vpop.permute.xlu0 %17  }
  0x85   :  { %20 = vst.msk [vmem:[#allocation0] sm:$0x1] %vm19_vm2, %v18_v7  }
  0x86   :  { %26 = vst.msk [vmem:[#allocation0] sm:$0x1] %vm25_vm3, %v24_v6  }
  0x8d   :  { %v29_v8 = vld [vmem:[#allocation0] sm:$0x1] }
  0x8e   :  { %32 = vst [vmem:[%s56_s1] sm:$0x1] %v29_v8 }

// kernel: resnet_generator_forward.33
= control target key start
LH: loop header
LB: loop body
LE: loop exit
PB: predicated region body
PF: predicated region fallthrough
CT: control target
= control target key end

     0   :  { %s288_s1 = inlined_call_operand.vmem [shape: bf16[128,128], index: 1, kind: input, shape index: {}]   ;;  %s289_s0 = inlined_call_operand.vmem [shape: bf16[32,128], index: 0, kind: input, shape index: {}]   ;;  %s290_s2 = inlined_call_operand.vmem [shape: f32[32,128], index: 2, kind: output, shape index: {0}]   ;;  %s291_s3 = inlined_call_operand.vmem [shape: f32[1,128], index: 3, kind: output, shape index: {1}]   ;;  %s292_s4 = inlined_call_operand.vmem [shape: f32[1,128], index: 4, kind: output, shape index: {2}]  }
   0x1   :  { %v206_v0 = vld [vmem:[%s288_s1 + $0x38] sm:$0xff]  ;;  %v205_v1 = vld [vmem:[%s288_s1 + $0x30] sm:$0xff]  ;;  %v204_v2 = vld [vmem:[%s288_s1 + $0x28] sm:$0xff] }
   0x2   :  { %94 = vmatpush.bf16.msra.mxu0 %v206_v0  ;;  %207 = vmatpush.bf16.msra.mxu1 %v206_v0  ;;  %v203_v3 = vld [vmem:[%s288_s1 + $0x20] sm:$0xff]  ;;  %v202_v4 = vld [vmem:[%s288_s1 + $0x18] sm:$0xff]  ;;  %v201_v5 = vld [vmem:[%s288_s1 + $0x10] sm:$0xff] }
   0x3   :  { %v200_v6 = vld [vmem:[%s288_s1 + $0x8] sm:$0xff]  ;;  %v199_v7 = vld [vmem:[%s288_s1] sm:$0xff] }
   0x4   :  { %v197_v8 = vld [vmem:[%s289_s0] sm:$0xff]  ;;  %v198_v9 = vld [vmem:[%s289_s0 + $0x8] sm:$0xff] }
   0x6   :  { %95 = vmatpush.bf16.msra.mxu0 %v205_v1  ;;  %208 = vmatpush.bf16.msra.mxu1 %v205_v1 }
   0xa   :  { %96 = vmatpush.bf16.msra.mxu0 %v204_v2  ;;  %209 = vmatpush.bf16.msra.mxu1 %v204_v2 }
   0xe   :  { %97 = vmatpush.bf16.msra.mxu0 %v203_v3  ;;  %210 = vmatpush.bf16.msra.mxu1 %v203_v3 }
  0x12   :  { %98 = vmatpush.bf16.msra.mxu0 %v202_v4  ;;  %211 = vmatpush.bf16.msra.mxu1 %v202_v4 }
  0x16   :  { %99 = vmatpush.bf16.msra.mxu0 %v201_v5  ;;  %212 = vmatpush.bf16.msra.mxu1 %v201_v5 }
  0x1a   :  { %100 = vmatpush.bf16.msra.mxu0 %v200_v6  ;;  %213 = vmatpush.bf16.msra.mxu1 %v200_v6 }
  0x1e   :  { %101 = vmatpush.bf16.msra.mxu0 %v199_v7  ;;  %214 = vmatpush.bf16.msra.mxu1 %v199_v7 }
  0x21   :  { %102 = vmatmul.bf16.vlgmr.msra.gmra.mxu0 %v197_v8  ;;  %107 = vmatmul.bf16.vlgmr.msra.gmra.mxu1 %v198_v9 }
  0x9e   :  { %v103_v10 = vpop.f32.mrf.mxu0  ;;  %v108_v11 = vpop.f32.mrf.mxu1 }
  0x9f   :  { %113 = vst [vmem:[%s290_s2] sm:$0xff] %v103_v10  ;;  %v127_v14 = vmul.f32 %v103_v10, %v103_v10  ;;  %v129_v17 = vmul.f32 %v108_v11, %v108_v11 }
  0xa0   :  { %115 = vst [vmem:[%s290_s2 + $0x10] sm:$0xff] %v108_v11 }
  0xa6   :  { %v105_v12 = vpop.f32.mrf.mxu0  ;;  %v110_v13 = vpop.f32.mrf.mxu1 }
  0xa7   :  { %114 = vst [vmem:[%s290_s2 + $0x8] sm:$0xff] %v105_v12  ;;  %v117_v15 = vadd.f32 %v105_v12, %v103_v10  ;;  %v128_v16 = vmul.f32 %v105_v12, %v105_v12  ;;  %v130_v21 = vmul.f32 %v110_v13, %v110_v13 }
  0xa8   :  { %116 = vst [vmem:[%s290_s2 + $0x18] sm:$0xff] %v110_v13 }
  0xa9   :  { %v131_v18 = vadd.f32 %v128_v16, %v127_v14  ;;  %v118_v19 = vadd.f32 %v117_v15, %v108_v11 }
  0xab   :  { %v119_v20 = vadd.f32 %v118_v19, %v110_v13  ;;  %v132_v22 = vadd.f32 %v131_v18, %v129_v17 }
  0xad   :  { %v120_v23 = vrot.slane %v119_v20, 4  ;;  %v133_v24 = vadd.f32 %v132_v22, %v130_v21 }
  0xaf   :  { %v121_v25 = vadd.f32 %v120_v23, %v119_v20  ;;  %v134_v26 = vrot.slane %v133_v24, 4 }
  0xb1   :  { %v122_v27 = vrot.slane %v121_v25, 2  ;;  %v135_v28 = vadd.f32 %v134_v26, %v133_v24 }
  0xb3   :  { %v123_v29 = vadd.f32 %v122_v27, %v121_v25  ;;  %v136_v30 = vrot.slane %v135_v28, 2 }
  0xb5   :  { %v124_v31 = vrot.slane %v123_v29, 1  ;;  %v137_v32 = vadd.f32 %v136_v30, %v135_v28 }
  0xb7   :  { %v125_v33 = vadd.f32 %v124_v31, %v123_v29  ;;  %v138_v34 = vrot.slane %v137_v32, 1 }
  0xb9   :  { %v126_v35 = vmul.f32 0.03125, %v125_v33  ;;  %v139_v36 = vadd.f32 %v138_v34, %v137_v32 }
  0xbb   :  { %v140_v37 = vmul.f32 0.03125, %v139_v36  ;;  %141 = vst [vmem:[%s291_s3] sm:$0x1] %v126_v35  ;;  %v142_v38 = vmul.f32 %v126_v35, %v126_v35 }
  0xbd   :  { %v143_v39 = vsub.f32 %v140_v37, %v142_v38 }
  0xbf   :  { %144 = vst [vmem:[%s292_s4] sm:$0x1] %v143_v39 }

// kernel: tile.38
= control target key start
LH: loop header
LB: loop body
LE: loop exit
PB: predicated region body
PF: predicated region fallthrough
CT: control target
= control target key end

     0   :  { %s22_s0 = inlined_call_operand.vmem [shape: f32[8], index: 0, kind: input, shape index: {}]   ;;  %s23_s1 = inlined_call_operand.vmem [shape: f32[4,8], index: 1, kind: output, shape index: {}]  }
   0x1   :  { %v4_v0 = vld [vmem:[%s22_s0] ss:$0 sm:$0xff] }
   0x2   :  { %5 = vst [vmem:[%s23_s1] sm:$0xf] %v4_v0 }

// kernel: tile.39
= control target key start
LH: loop header
LB: loop body
LE: loop exit
PB: predicated region body
PF: predicated region fallthrough
CT: control target
= control target key end

     0   :  { %s37_s8 = smov 8   ;;  %s38_s9 = smov 16   ;;  %vm7_vm0 = vcmask 64512   ;;  %vm13_vm1 = vcmask 261312   ;;  %vm19_vm2 = vcmask 195712   ;;  %vm25_vm3 = vcmask 130112   ;;  %s55_s0 = inlined_call_operand.vmem [shape: f32[4,8], index: 0, kind: input, shape index: {}]   ;;  %s56_s1 = inlined_call_operand.vmem [shape: f32[32], index: 1, kind: output, shape index: {}]  }
   0x1   :  { %v4_v0 = vld [vmem:[%s55_s0] sm:$0xf]  ;;  %s36_s0 = smov 24  }
   0x2   :  { %5 = vst [vmem:[#allocation1] sm:$0xf] %v4_v0 }
   0x9   :  { %v10_v1 = vld [vmem:[#allocation1 + $0x3] sm:$0x1]   ;;  %v22_v2 = vld [vmem:[#allocation1 + $0x1] sm:$0x1]   ;;  %v16_v3 = vld [vmem:[#allocation1 + $0x2] sm:$0x1]  }
   0xa   :  { %11 = vrot.lane.b32.xlu0 %v10_v1, %s36_s0  ;;  %23 = vrot.lane.b32.xlu1 %v22_v2, %s37_s8  ;;  %v6_v4 = vld [vmem:[#allocation1] sm:$0x1]  }
   0xb   :  { %8 = vst.msk [vmem:[#allocation0] sm:$0x1] %vm7_vm0, %v6_v4  }
  0x12   :  { %17 = vrot.lane.b32.xlu0 %v16_v3, %s38_s9 }
  0x7c   :  { %v12_v5 = vpop.permute.xlu0 %11   ;;  %v24_v6 = vpop.permute.xlu1 %23  }
  0x7d   :  { %14 = vst.msk [vmem:[#allocation0] sm:$0x1] %vm13_vm1, %v12_v5  }
  0x84   :  { %v18_v7 = vpop.permute.xlu0 %17  }
  0x85   :  { %20 = vst.msk [vmem:[#allocation0] sm:$0x1] %vm19_vm2, %v18_v7  }
  0x86   :  { %26 = vst.msk [vmem:[#allocation0] sm:$0x1] %vm25_vm3, %v24_v6  }
  0x8d   :  { %v29_v8 = vld [vmem:[#allocation0] sm:$0x1] }
  0x8e   :  { %32 = vst [vmem:[%s56_s1] sm:$0x1] %v29_v8 }

// kernel: resnet_generator_forward.37
= control target key start
LH: loop header
LB: loop body
LE: loop exit
PB: predicated region body
PF: predicated region fallthrough
CT: control target
= control target key end

     0   :  { %s3929_s1 = inlined_call_operand.vmem [shape: bf16[512,128], index: 1, kind: input, shape index: {}]   ;;  %s3930_s2 = inlined_call_operand.vmem [shape: f32[1,128], index: 2, kind: input, shape index: {}]   ;;  %s3931_s0 = inlined_call_operand.vmem [shape: bf16[512,512], index: 0, kind: input, shape index: {}]   ;;  %s3932_s3 = inlined_call_operand.vmem [shape: f32[512,128], index: 3, kind: output, shape index: {}]  }
   0x1   :  { %v2625_v0 = vld [vmem:[%s3929_s1 + $0x38] sm:$0xff]  ;;  %v2624_v4 = vld [vmem:[%s3929_s1 + $0x30] sm:$0xff]  ;;  %v2623_v8 = vld [vmem:[%s3929_s1 + $0x28] sm:$0xff] }
   0x2   :  { %v2633_v1 = vld [vmem:[%s3929_s1 + $0x78] sm:$0xff]  ;;  %1042 = vmatpush.bf16.msra.mxu0 %v2625_v0  ;;  %v2632_v5 = vld [vmem:[%s3929_s1 + $0x70] sm:$0xff]  ;;  %v2631_v9 = vld [vmem:[%s3929_s1 + $0x68] sm:$0xff] }
   0x3   :  { %v2641_v2 = vld [vmem:[%s3929_s1 + $0xb8] sm:$0xff]  ;;  %1211 = vmatpush.bf16.msra.mxu1 %v2633_v1  ;;  %v2640_v6 = vld [vmem:[%s3929_s1 + $0xb0] sm:$0xff]  ;;  %v2639_v10 = vld [vmem:[%s3929_s1 + $0xa8] sm:$0xff] }
   0x4   :  { %v2649_v3 = vld [vmem:[%s3929_s1 + $0xf8] sm:$0xff]  ;;  %1380 = vmatpush.bf16.msra.mxu2 %v2641_v2  ;;  %v2648_v7 = vld [vmem:[%s3929_s1 + $0xf0] sm:$0xff]  ;;  %v2647_v11 = vld [vmem:[%s3929_s1 + $0xe8] sm:$0xff] }
   0x5   :  { %1549 = vmatpush.bf16.msra.mxu3 %v2649_v3  ;;  %v2622_v12 = vld [vmem:[%s3929_s1 + $0x20] sm:$0xff]  ;;  %v2621_v16 = vld [vmem:[%s3929_s1 + $0x18] sm:$0xff]  ;;  %v2620_v20 = vld [vmem:[%s3929_s1 + $0x10] sm:$0xff] }
   0x6   :  { %1043 = vmatpush.bf16.msra.mxu0 %v2624_v4  ;;  %v2630_v13 = vld [vmem:[%s3929_s1 + $0x60] sm:$0xff]  ;;  %v2629_v17 = vld [vmem:[%s3929_s1 + $0x58] sm:$0xff]  ;;  %v2628_v21 = vld [vmem:[%s3929_s1 + $0x50] sm:$0xff] }
   0x7   :  { %1212 = vmatpush.bf16.msra.mxu1 %v2632_v5  ;;  %v2638_v14 = vld [vmem:[%s3929_s1 + $0xa0] sm:$0xff]  ;;  %v2637_v18 = vld [vmem:[%s3929_s1 + $0x98] sm:$0xff]  ;;  %v2636_v22 = vld [vmem:[%s3929_s1 + $0x90] sm:$0xff] }
   0x8   :  { %1381 = vmatpush.bf16.msra.mxu2 %v2640_v6  ;;  %v2646_v15 = vld [vmem:[%s3929_s1 + $0xe0] sm:$0xff]  ;;  %v2645_v19 = vld [vmem:[%s3929_s1 + $0xd8] sm:$0xff]  ;;  %v2644_v23 = vld [vmem:[%s3929_s1 + $0xd0] sm:$0xff] }
   0x9   :  { %1550 = vmatpush.bf16.msra.mxu3 %v2648_v7  ;;  %v2619_v24 = vld [vmem:[%s3929_s1 + $0x8] sm:$0xff]  ;;  %v2618_v28 = vld [vmem:[%s3929_s1] sm:$0xff]  ;;  %v2492_v33 = vld [vmem:[%s3931_s0 + $0xc] sm:$0xf0] }
   0xa   :  { %1044 = vmatpush.bf16.msra.mxu0 %v2623_v8  ;;  %v2627_v25 = vld [vmem:[%s3929_s1 + $0x48] sm:$0xff]  ;;  %v2626_v29 = vld [vmem:[%s3929_s1 + $0x40] sm:$0xff]  ;;  %v1854_v35 = vld [vmem:[%s3931_s0 + $0x10] sm:$0xf0] }
   0xb   :  { %1213 = vmatpush.bf16.msra.mxu1 %v2631_v9  ;;  %v2635_v26 = vld [vmem:[%s3929_s1 + $0x88] sm:$0xff]  ;;  %v2634_v30 = vld [vmem:[%s3929_s1 + $0x80] sm:$0xff]  ;;  %v2493_v37 = vld [vmem:[%s3931_s0 + $0x14] sm:$0xf0] }
   0xc   :  { %1382 = vmatpush.bf16.msra.mxu2 %v2639_v10  ;;  %v2643_v27 = vld [vmem:[%s3929_s1 + $0xc8] sm:$0xff]  ;;  %v2642_v31 = vld [vmem:[%s3929_s1 + $0xc0] sm:$0xff]  ;;  %v1862_v39 = vld [vmem:[%s3931_s0 + $0x18] sm:$0xf0] }
   0xd   :  { %1551 = vmatpush.bf16.msra.mxu3 %v2647_v11  ;;  %v1852_v32 = vld [vmem:[%s3931_s0] sm:$0xf]  ;;  %v2490_v34 = vld [vmem:[%s3931_s0 + $0x4] sm:$0xf]  ;;  %v1860_v36 = vld [vmem:[%s3931_s0 + $0x8] sm:$0xf] }
   0xe   :  { %1045 = vmatpush.bf16.msra.mxu0 %v2622_v12  ;;  %v2491_v38 = vld [vmem:[%s3931_s0 + $0xc] sm:$0xf]  ;;  %v1853_v40 = vor.u32 %v2492_v33, %v1852_v32  ;;  %v1857_v41 = vor.u32 %v2490_v34, %v1854_v35  ;;  %v1861_v42 = vor.u32 %v2493_v37, %v1860_v36  ;;  %v1868_v44 = vld [vmem:[%s3931_s0 + $0x20] sm:$0xf]  ;;  %v2496_v45 = vld [vmem:[%s3931_s0 + $0x2c] sm:$0xf0] }
   0xf   :  { %1214 = vmatpush.bf16.msra.mxu1 %v2630_v13  ;;  %v1865_v43 = vor.u32 %v2491_v38, %v1862_v39  ;;  %v2494_v46 = vld [vmem:[%s3931_s0 + $0x24] sm:$0xf]  ;;  %v1870_v47 = vld [vmem:[%s3931_s0 + $0x30] sm:$0xf0]  ;;  %v1876_v48 = vld [vmem:[%s3931_s0 + $0x28] sm:$0xf]  ;;  %v1869_v52 = vor.u32 %v2496_v45, %v1868_v44 }
  0x10   :  { %1383 = vmatpush.bf16.msra.mxu2 %v2638_v14  ;;  %v2497_v49 = vld [vmem:[%s3931_s0 + $0x34] sm:$0xf0]  ;;  %v2495_v50 = vld [vmem:[%s3931_s0 + $0x2c] sm:$0xf]  ;;  %v1878_v51 = vld [vmem:[%s3931_s0 + $0x38] sm:$0xf0]  ;;  %v1873_v53 = vor.u32 %v2494_v46, %v1870_v47 }
  0x11   :  { %1552 = vmatpush.bf16.msra.mxu3 %v2646_v15  ;;  %v1877_v54 = vor.u32 %v2497_v49, %v1876_v48  ;;  %v1881_v55 = vor.u32 %v2495_v50, %v1878_v51  ;;  %v1884_v56 = vld [vmem:[%s3931_s0 + $0x40] sm:$0xf]  ;;  %v2500_v57 = vld [vmem:[%s3931_s0 + $0x4c] sm:$0xf0]  ;;  %v2498_v58 = vld [vmem:[%s3931_s0 + $0x44] sm:$0xf] }
  0x12   :  { %1046 = vmatpush.bf16.msra.mxu0 %v2621_v16  ;;  %v1886_v59 = vld [vmem:[%s3931_s0 + $0x50] sm:$0xf0]  ;;  %v1892_v60 = vld [vmem:[%s3931_s0 + $0x48] sm:$0xf]  ;;  %v2501_v61 = vld [vmem:[%s3931_s0 + $0x54] sm:$0xf0]  ;;  %v1885_v0 = vor.u32 %v2500_v57, %v1884_v56 }
  0x13   :  { %1215 = vmatpush.bf16.msra.mxu1 %v2629_v17  ;;  %v2499_v62 = vld [vmem:[%s3931_s0 + $0x4c] sm:$0xf]  ;;  %v1894_v63 = vld [vmem:[%s3931_s0 + $0x58] sm:$0xf0]  ;;  %v1889_v1 = vor.u32 %v2498_v58, %v1886_v59  ;;  %v1893_v2 = vor.u32 %v2501_v61, %v1892_v60  ;;  %v1900_v4 = vld [vmem:[%s3931_s0 + $0x60] sm:$0xf] }
  0x14   :  { %1384 = vmatpush.bf16.msra.mxu2 %v2637_v18  ;;  %v1897_v3 = vor.u32 %v2499_v62, %v1894_v63  ;;  %v2504_v5 = vld [vmem:[%s3931_s0 + $0x6c] sm:$0xf0]  ;;  %v2502_v6 = vld [vmem:[%s3931_s0 + $0x64] sm:$0xf]  ;;  %v1902_v7 = vld [vmem:[%s3931_s0 + $0x70] sm:$0xf0] }
  0x15   :  { %1553 = vmatpush.bf16.msra.mxu3 %v2645_v19  ;;  %v1908_v8 = vld [vmem:[%s3931_s0 + $0x68] sm:$0xf]  ;;  %v2505_v9 = vld [vmem:[%s3931_s0 + $0x74] sm:$0xf0]  ;;  %v2503_v10 = vld [vmem:[%s3931_s0 + $0x6c] sm:$0xf]  ;;  %v1901_v12 = vor.u32 %v2504_v5, %v1900_v4  ;;  %v1905_v13 = vor.u32 %v2502_v6, %v1902_v7 }
  0x16   :  { %1047 = vmatpush.bf16.msra.mxu0 %v2620_v20  ;;  %v1910_v11 = vld [vmem:[%s3931_s0 + $0x78] sm:$0xf0]  ;;  %v1909_v14 = vor.u32 %v2505_v9, %v1908_v8  ;;  %v1916_v16 = vld [vmem:[%s3931_s0 + $0x80] sm:$0xf]  ;;  %v2508_v17 = vld [vmem:[%s3931_s0 + $0x8c] sm:$0xf0] }
  0x17   :  { %1216 = vmatpush.bf16.msra.mxu1 %v2628_v21  ;;  %v1913_v15 = vor.u32 %v2503_v10, %v1910_v11  ;;  %v2506_v18 = vld [vmem:[%s3931_s0 + $0x84] sm:$0xf]  ;;  %v1918_v19 = vld [vmem:[%s3931_s0 + $0x90] sm:$0xf0]  ;;  %v1924_v20 = vld [vmem:[%s3931_s0 + $0x88] sm:$0xf] }
  0x18   :  { %1385 = vmatpush.bf16.msra.mxu2 %v2636_v22  ;;  %v2509_v21 = vld [vmem:[%s3931_s0 + $0x94] sm:$0xf0]  ;;  %v2507_v22 = vld [vmem:[%s3931_s0 + $0x8c] sm:$0xf]  ;;  %v1940_v32 = vld [vmem:[%s3931_s0 + $0xa8] sm:$0xf] }
  0x19   :  { %1554 = vmatpush.bf16.msra.mxu3 %v2644_v23  ;;  %v1926_v23 = vld [vmem:[%s3931_s0 + $0x98] sm:$0xf0]  ;;  %v2513_v33 = vld [vmem:[%s3931_s0 + $0xb4] sm:$0xf0]  ;;  %v2511_v34 = vld [vmem:[%s3931_s0 + $0xac] sm:$0xf] }
  0x1a   :  { %1048 = vmatpush.bf16.msra.mxu0 %v2619_v24  ;;  %v1917_v24 = vor.u32 %v2508_v17, %v1916_v16  ;;  %v1942_v35 = vld [vmem:[%s3931_s0 + $0xb8] sm:$0xf0]  ;;  %v1941_v38 = vor.u32 %v2513_v33, %v1940_v32  ;;  %v1956_v44 = vld [vmem:[%s3931_s0 + $0xc8] sm:$0xf]  ;;  %v2517_v45 = vld [vmem:[%s3931_s0 + $0xd4] sm:$0xf0] }
  0x1b   :  { %1217 = vmatpush.bf16.msra.mxu1 %v2627_v25  ;;  %v1921_v25 = vor.u32 %v2506_v18, %v1918_v19  ;;  %v1945_v39 = vor.u32 %v2511_v34, %v1942_v35  ;;  %v2515_v46 = vld [vmem:[%s3931_s0 + $0xcc] sm:$0xf]  ;;  %v1958_v47 = vld [vmem:[%s3931_s0 + $0xd8] sm:$0xf0]  ;;  %v1957_v50 = vor.u32 %v2517_v45, %v1956_v44  ;;  %v1972_v56 = vld [vmem:[%s3931_s0 + $0xe8] sm:$0xf] }
  0x1c   :  { %1386 = vmatpush.bf16.msra.mxu2 %v2635_v26  ;;  %v1925_v26 = vor.u32 %v2509_v21, %v1924_v20  ;;  %v1961_v51 = vor.u32 %v2515_v46, %v1958_v47  ;;  %v2521_v57 = vld [vmem:[%s3931_s0 + $0xf4] sm:$0xf0]  ;;  %v2519_v58 = vld [vmem:[%s3931_s0 + $0xec] sm:$0xf]  ;;  %v1974_v59 = vld [vmem:[%s3931_s0 + $0xf8] sm:$0xf0] }
  0x1d   :  { %1555 = vmatpush.bf16.msra.mxu3 %v2643_v27  ;;  %v1929_v27 = vor.u32 %v2507_v22, %v1926_v23  ;;  %v1973_v62 = vor.u32 %v2521_v57, %v1972_v56  ;;  %v1977_v63 = vor.u32 %v2519_v58, %v1974_v59  ;;  %v1982_v4 = vld [vmem:[%s3931_s0 + $0x110] sm:$0xf0]  ;;  %v1988_v5 = vld [vmem:[%s3931_s0 + $0x108] sm:$0xf]  ;;  %v2525_v6 = vld [vmem:[%s3931_s0 + $0x114] sm:$0xf0] }
  0x1e   :  { %1049 = vmatpush.bf16.msra.mxu0 %v2618_v28  ;;  %v1932_v28 = vld [vmem:[%s3931_s0 + $0xa0] sm:$0xf]  ;;  %v2523_v7 = vld [vmem:[%s3931_s0 + $0x10c] sm:$0xf]  ;;  %v1990_v8 = vld [vmem:[%s3931_s0 + $0x118] sm:$0xf0] }
  0x1f   :  { %1218 = vmatpush.bf16.msra.mxu1 %v2626_v29  ;;  %v2512_v29 = vld [vmem:[%s3931_s0 + $0xac] sm:$0xf0]  ;;  %v2530_v56 = vld [vmem:[%s3931_s0 + $0x144] sm:$0xf]  ;;  %v2014_v57 = vld [vmem:[%s3931_s0 + $0x150] sm:$0xf0] }
  0x20   :  { %1387 = vmatpush.bf16.msra.mxu2 %v2634_v30  ;;  %v2510_v30 = vld [vmem:[%s3931_s0 + $0xa4] sm:$0xf]  ;;  %v1933_v36 = vor.u32 %v2512_v29, %v1932_v28  ;;  %v2004_v28 = vld [vmem:[%s3931_s0 + $0x128] sm:$0xf]  ;;  %v2529_v29 = vld [vmem:[%s3931_s0 + $0x134] sm:$0xf0] }
  0x21   :  { %1556 = vmatpush.bf16.msra.mxu3 %v2642_v31  ;;  %1050 = vmatmul.bf16.vlgmr.msra.gmra.mxu0 %v1853_v40  ;;  %v1934_v31 = vld [vmem:[%s3931_s0 + $0xb0] sm:$0xf0]  ;;  %v1948_v40 = vld [vmem:[%s3931_s0 + $0xc0] sm:$0xf]  ;;  %v2020_v58 = vld [vmem:[%s3931_s0 + $0x148] sm:$0xf] }
  0x22   :  { %1219 = vmatmul.bf16.vlgmr.msra.gmra.mxu1 %v1857_v41  ;;  %v1937_v37 = vor.u32 %v2510_v30, %v1934_v31  ;;  %v2516_v41 = vld [vmem:[%s3931_s0 + $0xcc] sm:$0xf0]  ;;  %v2527_v30 = vld [vmem:[%s3931_s0 + $0x12c] sm:$0xf]  ;;  %v2006_v31 = vld [vmem:[%s3931_s0 + $0x138] sm:$0xf0] }
  0x23   :  { %1388 = vmatmul.bf16.vlgmr.msra.gmra.mxu2 %v1861_v42  ;;  %v2514_v42 = vld [vmem:[%s3931_s0 + $0xc4] sm:$0xf]  ;;  %v1949_v48 = vor.u32 %v2516_v41, %v1948_v40  ;;  %v2005_v40 = vor.u32 %v2529_v29, %v2004_v28  ;;  %v2009_v41 = vor.u32 %v2527_v30, %v2006_v31  ;;  %v2533_v59 = vld [vmem:[%s3931_s0 + $0x154] sm:$0xf0]  ;;  %v2038_v28 = vld [vmem:[%s3931_s0 + $0x178] sm:$0xf0] }
  0x24   :  { %1557 = vmatmul.bf16.vlgmr.msra.gmra.mxu3 %v1865_v43  ;;  %v1950_v43 = vld [vmem:[%s3931_s0 + $0xd0] sm:$0xf0] }
  0x25   :  { %v1953_v49 = vor.u32 %v2514_v42, %v1950_v43 }
  0x31   :  { %1055 = vmatmul.bf16.gmra.mxu0 %v1869_v52  ;;  %v1964_v52 = vld [vmem:[%s3931_s0 + $0xe0] sm:$0xf] }
  0x32   :  { %1224 = vmatmul.bf16.gmra.mxu1 %v1873_v53  ;;  %v2520_v53 = vld [vmem:[%s3931_s0 + $0xec] sm:$0xf0] }
  0x33   :  { %1393 = vmatmul.bf16.gmra.mxu2 %v1877_v54  ;;  %v2518_v54 = vld [vmem:[%s3931_s0 + $0xe4] sm:$0xf]  ;;  %v1965_v60 = vor.u32 %v2520_v53, %v1964_v52 }
  0x34   :  { %1562 = vmatmul.bf16.gmra.mxu3 %v1881_v55  ;;  %v1966_v55 = vld [vmem:[%s3931_s0 + $0xf0] sm:$0xf0] }
  0x35   :  { %v1969_v61 = vor.u32 %v2518_v54, %v1966_v55  ;;  %v2012_v54 = vld [vmem:[%s3931_s0 + $0x140] sm:$0xf]  ;;  %v2532_v55 = vld [vmem:[%s3931_s0 + $0x14c] sm:$0xf0] }
  0x41   :  { %1060 = vmatmul.bf16.gmra.mxu0 %v1885_v0  ;;  %v3092_v0 = vld [vmem:[%s3930_s2] ss:$0 sm:$0xff] }
  0x42   :  { %1229 = vmatmul.bf16.gmra.mxu1 %v1889_v1  ;;  %v1980_v1 = vld [vmem:[%s3931_s0 + $0x100] sm:$0xf] }
  0x43   :  { %1398 = vmatmul.bf16.gmra.mxu2 %v1893_v2  ;;  %v2524_v2 = vld [vmem:[%s3931_s0 + $0x10c] sm:$0xf0] }
  0x44   :  { %1567 = vmatmul.bf16.gmra.mxu3 %v1897_v3  ;;  %v2522_v3 = vld [vmem:[%s3931_s0 + $0x104] sm:$0xf]  ;;  %v1981_v9 = vor.u32 %v2524_v2, %v1980_v1  ;;  %v2013_v2 = vor.u32 %v2532_v55, %v2012_v54  ;;  %v2046_v54 = vld [vmem:[%s3931_s0 + $0x190] sm:$0xf0]  ;;  %v2052_v55 = vld [vmem:[%s3931_s0 + $0x188] sm:$0xf] }
  0x45   :  { %v1985_v10 = vor.u32 %v2522_v3, %v1982_v4  ;;  %v2017_v3 = vor.u32 %v2530_v56, %v2014_v57  ;;  %v2541_v56 = vld [vmem:[%s3931_s0 + $0x194] sm:$0xf0]  ;;  %v2539_v57 = vld [vmem:[%s3931_s0 + $0x18c] sm:$0xf] }
  0x51   :  { %1065 = vmatmul.bf16.gmra.mxu0 %v1901_v12 }
  0x52   :  { %1234 = vmatmul.bf16.gmra.mxu1 %v1905_v13  ;;  %v1989_v13 = vor.u32 %v2525_v6, %v1988_v5 }
  0x53   :  { %1403 = vmatmul.bf16.gmra.mxu2 %v1909_v14  ;;  %v1993_v14 = vor.u32 %v2523_v7, %v1990_v8  ;;  %v2021_v7 = vor.u32 %v2533_v59, %v2020_v58  ;;  %v2054_v58 = vld [vmem:[%s3931_s0 + $0x198] sm:$0xf0] }
  0x54   :  { %1572 = vmatmul.bf16.gmra.mxu3 %v1913_v15 }
  0x61   :  { %1070 = vmatmul.bf16.gmra.mxu0 %v1917_v24  ;;  %v1996_v24 = vld [vmem:[%s3931_s0 + $0x120] sm:$0xf] }
  0x62   :  { %1239 = vmatmul.bf16.gmra.mxu1 %v1921_v25  ;;  %v2528_v25 = vld [vmem:[%s3931_s0 + $0x12c] sm:$0xf0] }
  0x63   :  { %1408 = vmatmul.bf16.gmra.mxu2 %v1925_v26  ;;  %v2526_v26 = vld [vmem:[%s3931_s0 + $0x124] sm:$0xf]  ;;  %v1997_v35 = vor.u32 %v2528_v25, %v1996_v24  ;;  %v2030_v24 = vld [vmem:[%s3931_s0 + $0x170] sm:$0xf0]  ;;  %v2036_v25 = vld [vmem:[%s3931_s0 + $0x168] sm:$0xf] }
  0x64   :  { %1577 = vmatmul.bf16.gmra.mxu3 %v1929_v27  ;;  %v1998_v27 = vld [vmem:[%s3931_s0 + $0x130] sm:$0xf0] }
  0x71   :  { %1075 = vmatmul.bf16.gmra.mxu0 %v1933_v36  ;;  %v2001_v36 = vor.u32 %v2526_v26, %v1998_v27  ;;  %v2537_v26 = vld [vmem:[%s3931_s0 + $0x174] sm:$0xf0]  ;;  %v2535_v27 = vld [vmem:[%s3931_s0 + $0x16c] sm:$0xf] }
  0x72   :  { %1244 = vmatmul.bf16.gmra.mxu1 %v1937_v37 }
  0x73   :  { %1413 = vmatmul.bf16.gmra.mxu2 %v1941_v38 }
  0x74   :  { %1582 = vmatmul.bf16.gmra.mxu3 %v1945_v39 }
  0x81   :  { %1080 = vmatmul.bf16.gmra.mxu0 %v1949_v48 }
  0x82   :  { %1249 = vmatmul.bf16.gmra.mxu1 %v1953_v49 }
  0x83   :  { %1418 = vmatmul.bf16.gmra.mxu2 %v1957_v50 }
  0x84   :  { %1587 = vmatmul.bf16.gmra.mxu3 %v1961_v51 }
  0x91   :  { %1085 = vmatmul.bf16.gmra.mxu0 %v1965_v60  ;;  %v2531_v60 = vld [vmem:[%s3931_s0 + $0x14c] sm:$0xf] }
  0x92   :  { %1254 = vmatmul.bf16.gmra.mxu1 %v1969_v61  ;;  %v2022_v61 = vld [vmem:[%s3931_s0 + $0x158] sm:$0xf0] }
  0x93   :  { %1423 = vmatmul.bf16.gmra.mxu2 %v1973_v62  ;;  %v2025_v8 = vor.u32 %v2531_v60, %v2022_v61 }
  0x94   :  { %1592 = vmatmul.bf16.gmra.mxu3 %v1977_v63 }
  0x9e   :  { %v1051_v11 = vpop.f32.mrf.mxu0 }
  0x9f   :  { %v1220_v12 = vpop.f32.mrf.mxu1  ;;  %v1052_v15 = vadd.f32 %v3092_v0, %v1051_v11 }
  0xa1   :  { %1090 = vmatmul.bf16.gmra.mxu0 %v1981_v9  ;;  %v1221_v16 = vadd.f32 %v1220_v12, %v1052_v15 }
  0xa2   :  { %1259 = vmatmul.bf16.gmra.mxu1 %v1985_v10 }
  0xa3   :  { %1428 = vmatmul.bf16.gmra.mxu2 %v1989_v13 }
  0xa4   :  { %1597 = vmatmul.bf16.gmra.mxu3 %v1993_v14 }
  0xa6   :  { %v1389_v17 = vpop.f32.mrf.mxu2  ;;  %v1053_v20 = vpop.f32.mrf.mxu0 }
  0xa7   :  { %v1558_v18 = vpop.f32.mrf.mxu3  ;;  %v1390_v19 = vadd.f32 %v1389_v17, %v1221_v16  ;;  %v1222_v21 = vpop.f32.mrf.mxu1  ;;  %v1054_v23 = vadd.f32 %v3092_v0, %v1053_v20 }
  0xa9   :  { %v1559_v22 = vadd.f32 %v1558_v18, %v1390_v19  ;;  %v1223_v32 = vadd.f32 %v1222_v21, %v1054_v23  ;;  %v2028_v21 = vld [vmem:[%s3931_s0 + $0x160] sm:$0xf]  ;;  %v2534_v23 = vld [vmem:[%s3931_s0 + $0x164] sm:$0xf] }
  0xab   :  { %2651 = vtanh.f32 %v1559_v22  ;;  %v2536_v22 = vld [vmem:[%s3931_s0 + $0x16c] sm:$0xf0] }
  0xae   :  { %v1391_v33 = vpop.f32.mrf.mxu2  ;;  %v1056_v38 = vpop.f32.mrf.mxu0 }
  0xaf   :  { %v1560_v34 = vpop.f32.mrf.mxu3  ;;  %v1392_v37 = vadd.f32 %v1391_v33, %v1223_v32  ;;  %v1225_v39 = vpop.f32.mrf.mxu1  ;;  %v1057_v42 = vadd.f32 %v3092_v0, %v1056_v38  ;;  %v2029_v32 = vor.u32 %v2536_v22, %v2028_v21  ;;  %v2033_v33 = vor.u32 %v2534_v23, %v2030_v24  ;;  %v2062_v21 = vld [vmem:[%s3931_s0 + $0x1b0] sm:$0xf0]  ;;  %v2068_v22 = vld [vmem:[%s3931_s0 + $0x1a8] sm:$0xf]  ;;  %v2545_v23 = vld [vmem:[%s3931_s0 + $0x1b4] sm:$0xf0] }
  0xb0   :  { %v2041_v38 = vor.u32 %v2535_v27, %v2038_v28  ;;  %v2543_v24 = vld [vmem:[%s3931_s0 + $0x1ac] sm:$0xf] }
  0xb1   :  { %v2652_v43 = vpop.eup %2651  ;;  %v1561_v44 = vadd.f32 %v1560_v34, %v1392_v37  ;;  %1095 = vmatmul.bf16.gmra.mxu0 %v1997_v35  ;;  %v1226_v45 = vadd.f32 %v1225_v39, %v1057_v42  ;;  %v2037_v37 = vor.u32 %v2537_v26, %v2036_v25  ;;  %v2070_v25 = vld [vmem:[%s3931_s0 + $0x1b8] sm:$0xf0] }
  0xb2   :  { %1782 = vst [vmem:[%s3932_s3] sm:$0xff] %v2652_v43  ;;  %1264 = vmatmul.bf16.gmra.mxu1 %v2001_v36 }
  0xb3   :  { %2653 = vtanh.f32 %v1561_v44  ;;  %1433 = vmatmul.bf16.gmra.mxu2 %v2005_v40 }
  0xb4   :  { %1602 = vmatmul.bf16.gmra.mxu3 %v2009_v41 }
  0xb6   :  { %v1394_v46 = vpop.f32.mrf.mxu2  ;;  %v1058_v49 = vpop.f32.mrf.mxu0 }
  0xb7   :  { %v1563_v47 = vpop.f32.mrf.mxu3  ;;  %v1395_v48 = vadd.f32 %v1394_v46, %v1226_v45  ;;  %v1227_v50 = vpop.f32.mrf.mxu1  ;;  %v1059_v53 = vadd.f32 %v3092_v0, %v1058_v49 }
  0xb9   :  { %v2654_v51 = vpop.eup %2653  ;;  %v1564_v52 = vadd.f32 %v1563_v47, %v1395_v48  ;;  %v1228_v62 = vadd.f32 %v1227_v50, %v1059_v53  ;;  %v2538_v53 = vld [vmem:[%s3931_s0 + $0x184] sm:$0xf] }
  0xba   :  { %1783 = vst [vmem:[%s3932_s3 + $0x8] sm:$0xff] %v2654_v51  ;;  %v2044_v51 = vld [vmem:[%s3931_s0 + $0x180] sm:$0xf] }
  0xbb   :  { %2655 = vtanh.f32 %v1564_v52  ;;  %v2540_v52 = vld [vmem:[%s3931_s0 + $0x18c] sm:$0xf0] }
  0xbe   :  { %v1396_v63 = vpop.f32.mrf.mxu2  ;;  %v1061_v5 = vpop.f32.mrf.mxu0 }
  0xbf   :  { %v1565_v1 = vpop.f32.mrf.mxu3  ;;  %v1397_v4 = vadd.f32 %v1396_v63, %v1228_v62  ;;  %v1230_v6 = vpop.f32.mrf.mxu1  ;;  %v1062_v9 = vadd.f32 %v3092_v0, %v1061_v5  ;;  %v2045_v62 = vor.u32 %v2540_v52, %v2044_v51  ;;  %v2049_v63 = vor.u32 %v2538_v53, %v2046_v54  ;;  %v2078_v51 = vld [vmem:[%s3931_s0 + $0x1d0] sm:$0xf0]  ;;  %v2084_v52 = vld [vmem:[%s3931_s0 + $0x1c8] sm:$0xf]  ;;  %v2549_v53 = vld [vmem:[%s3931_s0 + $0x1d4] sm:$0xf0] }
  0xc0   :  { %v2057_v5 = vor.u32 %v2539_v57, %v2054_v58  ;;  %v2547_v54 = vld [vmem:[%s3931_s0 + $0x1cc] sm:$0xf] }
  0xc1   :  { %v2656_v10 = vpop.eup %2655  ;;  %v1566_v11 = vadd.f32 %v1565_v1, %v1397_v4  ;;  %1100 = vmatmul.bf16.gmra.mxu0 %v2013_v2  ;;  %v1231_v12 = vadd.f32 %v1230_v6, %v1062_v9  ;;  %v2053_v4 = vor.u32 %v2541_v56, %v2052_v55  ;;  %v2086_v55 = vld [vmem:[%s3931_s0 + $0x1d8] sm:$0xf0] }
  0xc2   :  { %1784 = vst [vmem:[%s3932_s3 + $0x10] sm:$0xff] %v2656_v10  ;;  %1269 = vmatmul.bf16.gmra.mxu1 %v2017_v3 }
  0xc3   :  { %2657 = vtanh.f32 %v1566_v11  ;;  %1438 = vmatmul.bf16.gmra.mxu2 %v2021_v7 }
  0xc4   :  { %1607 = vmatmul.bf16.gmra.mxu3 %v2025_v8 }
  0xc6   :  { %v1399_v13 = vpop.f32.mrf.mxu2  ;;  %v1063_v16 = vpop.f32.mrf.mxu0 }
  0xc7   :  { %v1568_v14 = vpop.f32.mrf.mxu3  ;;  %v1400_v15 = vadd.f32 %v1399_v13, %v1231_v12  ;;  %v1232_v17 = vpop.f32.mrf.mxu1  ;;  %v1064_v20 = vadd.f32 %v3092_v0, %v1063_v16 }
  0xc9   :  { %v2658_v18 = vpop.eup %2657  ;;  %v1569_v19 = vadd.f32 %v1568_v14, %v1400_v15  ;;  %v1233_v29 = vadd.f32 %v1232_v17, %v1064_v20  ;;  %v2542_v20 = vld [vmem:[%s3931_s0 + $0x1a4] sm:$0xf] }
  0xca   :  { %1785 = vst [vmem:[%s3932_s3 + $0x18] sm:$0xff] %v2658_v18  ;;  %v2060_v18 = vld [vmem:[%s3931_s0 + $0x1a0] sm:$0xf] }
  0xcb   :  { %2659 = vtanh.f32 %v1569_v19  ;;  %v2544_v19 = vld [vmem:[%s3931_s0 + $0x1ac] sm:$0xf0] }
  0xce   :  { %v1401_v30 = vpop.f32.mrf.mxu2  ;;  %v1066_v35 = vpop.f32.mrf.mxu0 }
  0xcf   :  { %v1570_v31 = vpop.f32.mrf.mxu3  ;;  %v1402_v34 = vadd.f32 %v1401_v30, %v1233_v29  ;;  %v1235_v36 = vpop.f32.mrf.mxu1  ;;  %v1067_v39 = vadd.f32 %v3092_v0, %v1066_v35  ;;  %v2061_v29 = vor.u32 %v2544_v19, %v2060_v18  ;;  %v2065_v30 = vor.u32 %v2542_v20, %v2062_v21  ;;  %v2094_v18 = vld [vmem:[%s3931_s0 + $0x1f0] sm:$0xf0]  ;;  %v2100_v19 = vld [vmem:[%s3931_s0 + $0x1e8] sm:$0xf]  ;;  %v2553_v20 = vld [vmem:[%s3931_s0 + $0x1f4] sm:$0xf0] }
  0xd0   :  { %v2073_v35 = vor.u32 %v2543_v24, %v2070_v25  ;;  %v2551_v21 = vld [vmem:[%s3931_s0 + $0x1ec] sm:$0xf] }
  0xd1   :  { %v2660_v40 = vpop.eup %2659  ;;  %v1571_v41 = vadd.f32 %v1570_v31, %v1402_v34  ;;  %1105 = vmatmul.bf16.gmra.mxu0 %v2029_v32  ;;  %v1236_v42 = vadd.f32 %v1235_v36, %v1067_v39  ;;  %v2069_v34 = vor.u32 %v2545_v23, %v2068_v22  ;;  %v2102_v22 = vld [vmem:[%s3931_s0 + $0x1f8] sm:$0xf0] }
  0xd2   :  { %1786 = vst [vmem:[%s3932_s3 + $0x20] sm:$0xff] %v2660_v40  ;;  %1274 = vmatmul.bf16.gmra.mxu1 %v2033_v33 }
  0xd3   :  { %2661 = vtanh.f32 %v1571_v41  ;;  %1443 = vmatmul.bf16.gmra.mxu2 %v2037_v37 }
  0xd4   :  { %1612 = vmatmul.bf16.gmra.mxu3 %v2041_v38 }
  0xd6   :  { %v1404_v43 = vpop.f32.mrf.mxu2  ;;  %v1068_v46 = vpop.f32.mrf.mxu0 }
  0xd7   :  { %v1573_v44 = vpop.f32.mrf.mxu3  ;;  %v1405_v45 = vadd.f32 %v1404_v43, %v1236_v42  ;;  %v1237_v47 = vpop.f32.mrf.mxu1  ;;  %v1069_v50 = vadd.f32 %v3092_v0, %v1068_v46 }
  0xd9   :  { %v2662_v48 = vpop.eup %2661  ;;  %v1574_v49 = vadd.f32 %v1573_v44, %v1405_v45  ;;  %v1238_v59 = vadd.f32 %v1237_v47, %v1069_v50  ;;  %v2546_v50 = vld [vmem:[%s3931_s0 + $0x1c4] sm:$0xf] }
  0xda   :  { %1787 = vst [vmem:[%s3932_s3 + $0x28] sm:$0xff] %v2662_v48  ;;  %v2076_v48 = vld [vmem:[%s3931_s0 + $0x1c0] sm:$0xf] }
  0xdb   :  { %2663 = vtanh.f32 %v1574_v49  ;;  %v2548_v49 = vld [vmem:[%s3931_s0 + $0x1cc] sm:$0xf0] }
  0xde   :  { %v1406_v60 = vpop.f32.mrf.mxu2  ;;  %v1071_v2 = vpop.f32.mrf.mxu0 }
  0xdf   :  { %v1575_v61 = vpop.f32.mrf.mxu3  ;;  %v1407_v1 = vadd.f32 %v1406_v60, %v1238_v59  ;;  %v1240_v3 = vpop.f32.mrf.mxu1  ;;  %v1072_v6 = vadd.f32 %v3092_v0, %v1071_v2  ;;  %v2077_v59 = vor.u32 %v2548_v49, %v2076_v48  ;;  %v2081_v60 = vor.u32 %v2546_v50, %v2078_v51  ;;  %v2110_v48 = vld [vmem:[%s3931_s0 + $0x210] sm:$0xf0]  ;;  %v2116_v49 = vld [vmem:[%s3931_s0 + $0x208] sm:$0xf]  ;;  %v2557_v50 = vld [vmem:[%s3931_s0 + $0x214] sm:$0xf0] }
  0xe0   :  { %v2089_v2 = vor.u32 %v2547_v54, %v2086_v55  ;;  %v2555_v51 = vld [vmem:[%s3931_s0 + $0x20c] sm:$0xf] }
  0xe1   :  { %v2664_v7 = vpop.eup %2663  ;;  %v1576_v8 = vadd.f32 %v1575_v61, %v1407_v1  ;;  %1110 = vmatmul.bf16.gmra.mxu0 %v2045_v62  ;;  %v1241_v9 = vadd.f32 %v1240_v3, %v1072_v6  ;;  %v2085_v1 = vor.u32 %v2549_v53, %v2084_v52  ;;  %v2118_v52 = vld [vmem:[%s3931_s0 + $0x218] sm:$0xf0] }
  0xe2   :  { %1788 = vst [vmem:[%s3932_s3 + $0x30] sm:$0xff] %v2664_v7  ;;  %1279 = vmatmul.bf16.gmra.mxu1 %v2049_v63 }
  0xe3   :  { %2665 = vtanh.f32 %v1576_v8  ;;  %1448 = vmatmul.bf16.gmra.mxu2 %v2053_v4 }
  0xe4   :  { %1617 = vmatmul.bf16.gmra.mxu3 %v2057_v5 }
  0xe6   :  { %v1409_v10 = vpop.f32.mrf.mxu2  ;;  %v1073_v13 = vpop.f32.mrf.mxu0 }
  0xe7   :  { %v1578_v11 = vpop.f32.mrf.mxu3  ;;  %v1410_v12 = vadd.f32 %v1409_v10, %v1241_v9  ;;  %v1242_v14 = vpop.f32.mrf.mxu1  ;;  %v1074_v17 = vadd.f32 %v3092_v0, %v1073_v13 }
  0xe9   :  { %v2666_v15 = vpop.eup %2665  ;;  %v1579_v16 = vadd.f32 %v1578_v11, %v1410_v12  ;;  %v1243_v26 = vadd.f32 %v1242_v14, %v1074_v17  ;;  %v2550_v17 = vld [vmem:[%s3931_s0 + $0x1e4] sm:$0xf] }
  0xea   :  { %1789 = vst [vmem:[%s3932_s3 + $0x38] sm:$0xff] %v2666_v15  ;;  %v2092_v15 = vld [vmem:[%s3931_s0 + $0x1e0] sm:$0xf] }
  0xeb   :  { %2667 = vtanh.f32 %v1579_v16  ;;  %v2552_v16 = vld [vmem:[%s3931_s0 + $0x1ec] sm:$0xf0] }
  0xee   :  { %v1411_v27 = vpop.f32.mrf.mxu2  ;;  %v1076_v32 = vpop.f32.mrf.mxu0 }
  0xef   :  { %v1580_v28 = vpop.f32.mrf.mxu3  ;;  %v1412_v31 = vadd.f32 %v1411_v27, %v1243_v26  ;;  %v1245_v33 = vpop.f32.mrf.mxu1  ;;  %v1077_v36 = vadd.f32 %v3092_v0, %v1076_v32  ;;  %v2093_v26 = vor.u32 %v2552_v16, %v2092_v15  ;;  %v2097_v27 = vor.u32 %v2550_v17, %v2094_v18  ;;  %v2126_v15 = vld [vmem:[%s3931_s0 + $0x230] sm:$0xf0]  ;;  %v2132_v16 = vld [vmem:[%s3931_s0 + $0x228] sm:$0xf]  ;;  %v2561_v17 = vld [vmem:[%s3931_s0 + $0x234] sm:$0xf0] }
  0xf0   :  { %v2105_v32 = vor.u32 %v2551_v21, %v2102_v22  ;;  %v2559_v18 = vld [vmem:[%s3931_s0 + $0x22c] sm:$0xf] }
  0xf1   :  { %v2668_v37 = vpop.eup %2667  ;;  %v1581_v38 = vadd.f32 %v1580_v28, %v1412_v31  ;;  %1115 = vmatmul.bf16.gmra.mxu0 %v2061_v29  ;;  %v1246_v39 = vadd.f32 %v1245_v33, %v1077_v36  ;;  %v2101_v31 = vor.u32 %v2553_v20, %v2100_v19  ;;  %v2134_v19 = vld [vmem:[%s3931_s0 + $0x238] sm:$0xf0] }
  0xf2   :  { %1790 = vst [vmem:[%s3932_s3 + $0x40] sm:$0xff] %v2668_v37  ;;  %1284 = vmatmul.bf16.gmra.mxu1 %v2065_v30 }
  0xf3   :  { %2669 = vtanh.f32 %v1581_v38  ;;  %1453 = vmatmul.bf16.gmra.mxu2 %v2069_v34 }
  0xf4   :  { %1622 = vmatmul.bf16.gmra.mxu3 %v2073_v35 }
  0xf6   :  { %v1414_v40 = vpop.f32.mrf.mxu2  ;;  %v1078_v43 = vpop.f32.mrf.mxu0 }
  0xf7   :  { %v1583_v41 = vpop.f32.mrf.mxu3  ;;  %v1415_v42 = vadd.f32 %v1414_v40, %v1246_v39  ;;  %v1247_v44 = vpop.f32.mrf.mxu1  ;;  %v1079_v47 = vadd.f32 %v3092_v0, %v1078_v43 }
  0xf9   :  { %v2670_v45 = vpop.eup %2669  ;;  %v1584_v46 = vadd.f32 %v1583_v41, %v1415_v42  ;;  %v1248_v56 = vadd.f32 %v1247_v44, %v1079_v47  ;;  %v2554_v47 = vld [vmem:[%s3931_s0 + $0x204] sm:$0xf] }
  0xfa   :  { %1791 = vst [vmem:[%s3932_s3 + $0x48] sm:$0xff] %v2670_v45  ;;  %v2108_v45 = vld [vmem:[%s3931_s0 + $0x200] sm:$0xf] }
  0xfb   :  { %2671 = vtanh.f32 %v1584_v46  ;;  %v2556_v46 = vld [vmem:[%s3931_s0 + $0x20c] sm:$0xf0] }
  0xfe   :  { %v1416_v57 = vpop.f32.mrf.mxu2  ;;  %v1081_v62 = vpop.f32.mrf.mxu0 }
  0xff   :  { %v1585_v58 = vpop.f32.mrf.mxu3  ;;  %v1417_v61 = vadd.f32 %v1416_v57, %v1248_v56  ;;  %v1250_v63 = vpop.f32.mrf.mxu1  ;;  %v1082_v3 = vadd.f32 %v3092_v0, %v1081_v62  ;;  %v2109_v56 = vor.u32 %v2556_v46, %v2108_v45  ;;  %v2113_v57 = vor.u32 %v2554_v47, %v2110_v48  ;;  %v2142_v45 = vld [vmem:[%s3931_s0 + $0x250] sm:$0xf0]  ;;  %v2148_v46 = vld [vmem:[%s3931_s0 + $0x248] sm:$0xf]  ;;  %v2565_v47 = vld [vmem:[%s3931_s0 + $0x254] sm:$0xf0] }
 0x100   :  { %v2121_v62 = vor.u32 %v2555_v51, %v2118_v52  ;;  %v2563_v48 = vld [vmem:[%s3931_s0 + $0x24c] sm:$0xf] }
 0x101   :  { %v2672_v4 = vpop.eup %2671  ;;  %v1586_v5 = vadd.f32 %v1585_v58, %v1417_v61  ;;  %1120 = vmatmul.bf16.gmra.mxu0 %v2077_v59  ;;  %v1251_v6 = vadd.f32 %v1250_v63, %v1082_v3  ;;  %v2117_v61 = vor.u32 %v2557_v50, %v2116_v49  ;;  %v2150_v49 = vld [vmem:[%s3931_s0 + $0x258] sm:$0xf0] }
 0x102   :  { %1792 = vst [vmem:[%s3932_s3 + $0x50] sm:$0xff] %v2672_v4  ;;  %1289 = vmatmul.bf16.gmra.mxu1 %v2081_v60 }
 0x103   :  { %2673 = vtanh.f32 %v1586_v5  ;;  %1458 = vmatmul.bf16.gmra.mxu2 %v2085_v1 }
 0x104   :  { %1627 = vmatmul.bf16.gmra.mxu3 %v2089_v2 }
 0x106   :  { %v1419_v7 = vpop.f32.mrf.mxu2  ;;  %v1083_v10 = vpop.f32.mrf.mxu0 }
 0x107   :  { %v1588_v8 = vpop.f32.mrf.mxu3  ;;  %v1420_v9 = vadd.f32 %v1419_v7, %v1251_v6  ;;  %v1252_v11 = vpop.f32.mrf.mxu1  ;;  %v1084_v14 = vadd.f32 %v3092_v0, %v1083_v10 }
 0x109   :  { %v2674_v12 = vpop.eup %2673  ;;  %v1589_v13 = vadd.f32 %v1588_v8, %v1420_v9  ;;  %v1253_v23 = vadd.f32 %v1252_v11, %v1084_v14  ;;  %v2558_v14 = vld [vmem:[%s3931_s0 + $0x224] sm:$0xf] }
 0x10a   :  { %1793 = vst [vmem:[%s3932_s3 + $0x58] sm:$0xff] %v2674_v12  ;;  %v2124_v12 = vld [vmem:[%s3931_s0 + $0x220] sm:$0xf] }
 0x10b   :  { %2675 = vtanh.f32 %v1589_v13  ;;  %v2560_v13 = vld [vmem:[%s3931_s0 + $0x22c] sm:$0xf0] }
 0x10e   :  { %v1421_v24 = vpop.f32.mrf.mxu2  ;;  %v1086_v29 = vpop.f32.mrf.mxu0 }
 0x10f   :  { %v1590_v25 = vpop.f32.mrf.mxu3  ;;  %v1422_v28 = vadd.f32 %v1421_v24, %v1253_v23  ;;  %v1255_v30 = vpop.f32.mrf.mxu1  ;;  %v1087_v33 = vadd.f32 %v3092_v0, %v1086_v29  ;;  %v2125_v23 = vor.u32 %v2560_v13, %v2124_v12  ;;  %v2129_v24 = vor.u32 %v2558_v14, %v2126_v15  ;;  %v2158_v12 = vld [vmem:[%s3931_s0 + $0x270] sm:$0xf0]  ;;  %v2164_v13 = vld [vmem:[%s3931_s0 + $0x268] sm:$0xf]  ;;  %v2569_v14 = vld [vmem:[%s3931_s0 + $0x274] sm:$0xf0] }
 0x110   :  { %v2137_v29 = vor.u32 %v2559_v18, %v2134_v19  ;;  %v2567_v15 = vld [vmem:[%s3931_s0 + $0x26c] sm:$0xf] }
 0x111   :  { %v2676_v34 = vpop.eup %2675  ;;  %v1591_v35 = vadd.f32 %v1590_v25, %v1422_v28  ;;  %1125 = vmatmul.bf16.gmra.mxu0 %v2093_v26  ;;  %v1256_v36 = vadd.f32 %v1255_v30, %v1087_v33  ;;  %v2133_v28 = vor.u32 %v2561_v17, %v2132_v16  ;;  %v2166_v16 = vld [vmem:[%s3931_s0 + $0x278] sm:$0xf0] }
 0x112   :  { %1794 = vst [vmem:[%s3932_s3 + $0x60] sm:$0xff] %v2676_v34  ;;  %1294 = vmatmul.bf16.gmra.mxu1 %v2097_v27 }
 0x113   :  { %2677 = vtanh.f32 %v1591_v35  ;;  %1463 = vmatmul.bf16.gmra.mxu2 %v2101_v31 }
 0x114   :  { %1632 = vmatmul.bf16.gmra.mxu3 %v2105_v32 }
 0x116   :  { %v1424_v37 = vpop.f32.mrf.mxu2  ;;  %v1088_v40 = vpop.f32.mrf.mxu0 }
 0x117   :  { %v1593_v38 = vpop.f32.mrf.mxu3  ;;  %v1425_v39 = vadd.f32 %v1424_v37, %v1256_v36  ;;  %v1257_v41 = vpop.f32.mrf.mxu1  ;;  %v1089_v44 = vadd.f32 %v3092_v0, %v1088_v40 }
 0x119   :  { %v2678_v42 = vpop.eup %2677  ;;  %v1594_v43 = vadd.f32 %v1593_v38, %v1425_v39  ;;  %v1258_v53 = vadd.f32 %v1257_v41, %v1089_v44  ;;  %v2562_v44 = vld [vmem:[%s3931_s0 + $0x244] sm:$0xf] }
 0x11a   :  { %1795 = vst [vmem:[%s3932_s3 + $0x68] sm:$0xff] %v2678_v42  ;;  %v2140_v42 = vld [vmem:[%s3931_s0 + $0x240] sm:$0xf] }
 0x11b   :  { %2679 = vtanh.f32 %v1594_v43  ;;  %v2564_v43 = vld [vmem:[%s3931_s0 + $0x24c] sm:$0xf0] }
 0x11e   :  { %v1426_v54 = vpop.f32.mrf.mxu2  ;;  %v1091_v59 = vpop.f32.mrf.mxu0 }
 0x11f   :  { %v1595_v55 = vpop.f32.mrf.mxu3  ;;  %v1427_v58 = vadd.f32 %v1426_v54, %v1258_v53  ;;  %v1260_v60 = vpop.f32.mrf.mxu1  ;;  %v1092_v63 = vadd.f32 %v3092_v0, %v1091_v59  ;;  %v2141_v53 = vor.u32 %v2564_v43, %v2140_v42  ;;  %v2145_v54 = vor.u32 %v2562_v44, %v2142_v45  ;;  %v2174_v42 = vld [vmem:[%s3931_s0 + $0x290] sm:$0xf0]  ;;  %v2180_v43 = vld [vmem:[%s3931_s0 + $0x288] sm:$0xf]  ;;  %v2573_v44 = vld [vmem:[%s3931_s0 + $0x294] sm:$0xf0] }
 0x120   :  { %v2153_v59 = vor.u32 %v2563_v48, %v2150_v49  ;;  %v2571_v45 = vld [vmem:[%s3931_s0 + $0x28c] sm:$0xf] }
 0x121   :  { %v2680_v1 = vpop.eup %2679  ;;  %v1596_v2 = vadd.f32 %v1595_v55, %v1427_v58  ;;  %1130 = vmatmul.bf16.gmra.mxu0 %v2109_v56  ;;  %v1261_v3 = vadd.f32 %v1260_v60, %v1092_v63  ;;  %v2149_v58 = vor.u32 %v2565_v47, %v2148_v46  ;;  %v2182_v46 = vld [vmem:[%s3931_s0 + $0x298] sm:$0xf0] }
 0x122   :  { %1796 = vst [vmem:[%s3932_s3 + $0x70] sm:$0xff] %v2680_v1  ;;  %1299 = vmatmul.bf16.gmra.mxu1 %v2113_v57 }
 0x123   :  { %2681 = vtanh.f32 %v1596_v2  ;;  %1468 = vmatmul.bf16.gmra.mxu2 %v2117_v61 }
 0x124   :  { %1637 = vmatmul.bf16.gmra.mxu3 %v2121_v62 }
 0x126   :  { %v1429_v4 = vpop.f32.mrf.mxu2  ;;  %v1093_v7 = vpop.f32.mrf.mxu0 }
 0x127   :  { %v1598_v5 = vpop.f32.mrf.mxu3  ;;  %v1430_v6 = vadd.f32 %v1429_v4, %v1261_v3  ;;  %v1262_v8 = vpop.f32.mrf.mxu1  ;;  %v1094_v11 = vadd.f32 %v3092_v0, %v1093_v7 }
 0x129   :  { %v2682_v9 = vpop.eup %2681  ;;  %v1599_v10 = vadd.f32 %v1598_v5, %v1430_v6  ;;  %v1263_v20 = vadd.f32 %v1262_v8, %v1094_v11  ;;  %v2566_v11 = vld [vmem:[%s3931_s0 + $0x264] sm:$0xf] }
 0x12a   :  { %1797 = vst [vmem:[%s3932_s3 + $0x78] sm:$0xff] %v2682_v9  ;;  %v2156_v9 = vld [vmem:[%s3931_s0 + $0x260] sm:$0xf] }
 0x12b   :  { %2683 = vtanh.f32 %v1599_v10  ;;  %v2568_v10 = vld [vmem:[%s3931_s0 + $0x26c] sm:$0xf0] }
 0x12e   :  { %v1431_v21 = vpop.f32.mrf.mxu2  ;;  %v1096_v26 = vpop.f32.mrf.mxu0 }
 0x12f   :  { %v1600_v22 = vpop.f32.mrf.mxu3  ;;  %v1432_v25 = vadd.f32 %v1431_v21, %v1263_v20  ;;  %v1265_v27 = vpop.f32.mrf.mxu1  ;;  %v1097_v30 = vadd.f32 %v3092_v0, %v1096_v26  ;;  %v2157_v20 = vor.u32 %v2568_v10, %v2156_v9  ;;  %v2161_v21 = vor.u32 %v2566_v11, %v2158_v12  ;;  %v2190_v9 = vld [vmem:[%s3931_s0 + $0x2b0] sm:$0xf0]  ;;  %v2196_v10 = vld [vmem:[%s3931_s0 + $0x2a8] sm:$0xf]  ;;  %v2577_v11 = vld [vmem:[%s3931_s0 + $0x2b4] sm:$0xf0] }
 0x130   :  { %v2169_v26 = vor.u32 %v2567_v15, %v2166_v16  ;;  %v2575_v12 = vld [vmem:[%s3931_s0 + $0x2ac] sm:$0xf] }
 0x131   :  { %v2684_v31 = vpop.eup %2683  ;;  %v1601_v32 = vadd.f32 %v1600_v22, %v1432_v25  ;;  %1135 = vmatmul.bf16.gmra.mxu0 %v2125_v23  ;;  %v1266_v33 = vadd.f32 %v1265_v27, %v1097_v30  ;;  %v2165_v25 = vor.u32 %v2569_v14, %v2164_v13  ;;  %v2198_v13 = vld [vmem:[%s3931_s0 + $0x2b8] sm:$0xf0] }
 0x132   :  { %1798 = vst [vmem:[%s3932_s3 + $0x80] sm:$0xff] %v2684_v31  ;;  %1304 = vmatmul.bf16.gmra.mxu1 %v2129_v24 }
 0x133   :  { %2685 = vtanh.f32 %v1601_v32  ;;  %1473 = vmatmul.bf16.gmra.mxu2 %v2133_v28 }
 0x134   :  { %1642 = vmatmul.bf16.gmra.mxu3 %v2137_v29 }
 0x136   :  { %v1434_v34 = vpop.f32.mrf.mxu2  ;;  %v1098_v37 = vpop.f32.mrf.mxu0 }
 0x137   :  { %v1603_v35 = vpop.f32.mrf.mxu3  ;;  %v1435_v36 = vadd.f32 %v1434_v34, %v1266_v33  ;;  %v1267_v38 = vpop.f32.mrf.mxu1  ;;  %v1099_v41 = vadd.f32 %v3092_v0, %v1098_v37 }
 0x139   :  { %v2686_v39 = vpop.eup %2685  ;;  %v1604_v40 = vadd.f32 %v1603_v35, %v1435_v36  ;;  %v1268_v50 = vadd.f32 %v1267_v38, %v1099_v41  ;;  %v2570_v41 = vld [vmem:[%s3931_s0 + $0x284] sm:$0xf] }
 0x13a   :  { %1799 = vst [vmem:[%s3932_s3 + $0x88] sm:$0xff] %v2686_v39  ;;  %v2172_v39 = vld [vmem:[%s3931_s0 + $0x280] sm:$0xf] }
 0x13b   :  { %2687 = vtanh.f32 %v1604_v40  ;;  %v2572_v40 = vld [vmem:[%s3931_s0 + $0x28c] sm:$0xf0] }
 0x13e   :  { %v1436_v51 = vpop.f32.mrf.mxu2  ;;  %v1101_v56 = vpop.f32.mrf.mxu0 }
 0x13f   :  { %v1605_v52 = vpop.f32.mrf.mxu3  ;;  %v1437_v55 = vadd.f32 %v1436_v51, %v1268_v50  ;;  %v1270_v57 = vpop.f32.mrf.mxu1  ;;  %v1102_v60 = vadd.f32 %v3092_v0, %v1101_v56  ;;  %v2173_v50 = vor.u32 %v2572_v40, %v2172_v39  ;;  %v2177_v51 = vor.u32 %v2570_v41, %v2174_v42  ;;  %v2206_v39 = vld [vmem:[%s3931_s0 + $0x2d0] sm:$0xf0]  ;;  %v2212_v40 = vld [vmem:[%s3931_s0 + $0x2c8] sm:$0xf]  ;;  %v2581_v41 = vld [vmem:[%s3931_s0 + $0x2d4] sm:$0xf0] }
 0x140   :  { %v2185_v56 = vor.u32 %v2571_v45, %v2182_v46  ;;  %v2579_v42 = vld [vmem:[%s3931_s0 + $0x2cc] sm:$0xf] }
 0x141   :  { %v2688_v61 = vpop.eup %2687  ;;  %v1606_v62 = vadd.f32 %v1605_v52, %v1437_v55  ;;  %1140 = vmatmul.bf16.gmra.mxu0 %v2141_v53  ;;  %v1271_v63 = vadd.f32 %v1270_v57, %v1102_v60  ;;  %v2181_v55 = vor.u32 %v2573_v44, %v2180_v43  ;;  %v2214_v43 = vld [vmem:[%s3931_s0 + $0x2d8] sm:$0xf0] }
 0x142   :  { %1800 = vst [vmem:[%s3932_s3 + $0x90] sm:$0xff] %v2688_v61  ;;  %1309 = vmatmul.bf16.gmra.mxu1 %v2145_v54 }
 0x143   :  { %2689 = vtanh.f32 %v1606_v62  ;;  %1478 = vmatmul.bf16.gmra.mxu2 %v2149_v58 }
 0x144   :  { %1647 = vmatmul.bf16.gmra.mxu3 %v2153_v59 }
 0x146   :  { %v1439_v1 = vpop.f32.mrf.mxu2  ;;  %v1103_v4 = vpop.f32.mrf.mxu0 }
 0x147   :  { %v1608_v2 = vpop.f32.mrf.mxu3  ;;  %v1440_v3 = vadd.f32 %v1439_v1, %v1271_v63  ;;  %v1272_v5 = vpop.f32.mrf.mxu1  ;;  %v1104_v8 = vadd.f32 %v3092_v0, %v1103_v4 }
 0x149   :  { %v2690_v6 = vpop.eup %2689  ;;  %v1609_v7 = vadd.f32 %v1608_v2, %v1440_v3  ;;  %v1273_v17 = vadd.f32 %v1272_v5, %v1104_v8  ;;  %v2574_v8 = vld [vmem:[%s3931_s0 + $0x2a4] sm:$0xf] }
 0x14a   :  { %1801 = vst [vmem:[%s3932_s3 + $0x98] sm:$0xff] %v2690_v6  ;;  %v2188_v6 = vld [vmem:[%s3931_s0 + $0x2a0] sm:$0xf] }
 0x14b   :  { %2691 = vtanh.f32 %v1609_v7  ;;  %v2576_v7 = vld [vmem:[%s3931_s0 + $0x2ac] sm:$0xf0] }
 0x14e   :  { %v1441_v18 = vpop.f32.mrf.mxu2  ;;  %v1106_v23 = vpop.f32.mrf.mxu0 }
 0x14f   :  { %v1610_v19 = vpop.f32.mrf.mxu3  ;;  %v1442_v22 = vadd.f32 %v1441_v18, %v1273_v17  ;;  %v1275_v24 = vpop.f32.mrf.mxu1  ;;  %v1107_v27 = vadd.f32 %v3092_v0, %v1106_v23  ;;  %v2189_v17 = vor.u32 %v2576_v7, %v2188_v6  ;;  %v2193_v18 = vor.u32 %v2574_v8, %v2190_v9  ;;  %v2222_v6 = vld [vmem:[%s3931_s0 + $0x2f0] sm:$0xf0]  ;;  %v2228_v7 = vld [vmem:[%s3931_s0 + $0x2e8] sm:$0xf]  ;;  %v2585_v8 = vld [vmem:[%s3931_s0 + $0x2f4] sm:$0xf0] }
 0x150   :  { %v2201_v23 = vor.u32 %v2575_v12, %v2198_v13  ;;  %v2583_v9 = vld [vmem:[%s3931_s0 + $0x2ec] sm:$0xf] }
 0x151   :  { %v2692_v28 = vpop.eup %2691  ;;  %v1611_v29 = vadd.f32 %v1610_v19, %v1442_v22  ;;  %1145 = vmatmul.bf16.gmra.mxu0 %v2157_v20  ;;  %v1276_v30 = vadd.f32 %v1275_v24, %v1107_v27  ;;  %v2197_v22 = vor.u32 %v2577_v11, %v2196_v10  ;;  %v2230_v10 = vld [vmem:[%s3931_s0 + $0x2f8] sm:$0xf0] }
 0x152   :  { %1802 = vst [vmem:[%s3932_s3 + $0xa0] sm:$0xff] %v2692_v28  ;;  %1314 = vmatmul.bf16.gmra.mxu1 %v2161_v21 }
 0x153   :  { %2693 = vtanh.f32 %v1611_v29  ;;  %1483 = vmatmul.bf16.gmra.mxu2 %v2165_v25 }
 0x154   :  { %1652 = vmatmul.bf16.gmra.mxu3 %v2169_v26 }
 0x156   :  { %v1444_v31 = vpop.f32.mrf.mxu2  ;;  %v1108_v34 = vpop.f32.mrf.mxu0 }
 0x157   :  { %v1613_v32 = vpop.f32.mrf.mxu3  ;;  %v1445_v33 = vadd.f32 %v1444_v31, %v1276_v30  ;;  %v1277_v35 = vpop.f32.mrf.mxu1  ;;  %v1109_v38 = vadd.f32 %v3092_v0, %v1108_v34 }
 0x159   :  { %v2694_v36 = vpop.eup %2693  ;;  %v1614_v37 = vadd.f32 %v1613_v32, %v1445_v33  ;;  %v1278_v47 = vadd.f32 %v1277_v35, %v1109_v38  ;;  %v2578_v38 = vld [vmem:[%s3931_s0 + $0x2c4] sm:$0xf] }
 0x15a   :  { %1803 = vst [vmem:[%s3932_s3 + $0xa8] sm:$0xff] %v2694_v36  ;;  %v2204_v36 = vld [vmem:[%s3931_s0 + $0x2c0] sm:$0xf] }
 0x15b   :  { %2695 = vtanh.f32 %v1614_v37  ;;  %v2580_v37 = vld [vmem:[%s3931_s0 + $0x2cc] sm:$0xf0] }
 0x15e   :  { %v1446_v48 = vpop.f32.mrf.mxu2  ;;  %v1111_v53 = vpop.f32.mrf.mxu0 }
 0x15f   :  { %v1615_v49 = vpop.f32.mrf.mxu3  ;;  %v1447_v52 = vadd.f32 %v1446_v48, %v1278_v47  ;;  %v1280_v54 = vpop.f32.mrf.mxu1  ;;  %v1112_v57 = vadd.f32 %v3092_v0, %v1111_v53  ;;  %v2205_v47 = vor.u32 %v2580_v37, %v2204_v36  ;;  %v2209_v48 = vor.u32 %v2578_v38, %v2206_v39  ;;  %v2238_v36 = vld [vmem:[%s3931_s0 + $0x310] sm:$0xf0]  ;;  %v2244_v37 = vld [vmem:[%s3931_s0 + $0x308] sm:$0xf]  ;;  %v2589_v38 = vld [vmem:[%s3931_s0 + $0x314] sm:$0xf0] }
 0x160   :  { %v2217_v53 = vor.u32 %v2579_v42, %v2214_v43  ;;  %v2587_v39 = vld [vmem:[%s3931_s0 + $0x30c] sm:$0xf] }
 0x161   :  { %v2696_v58 = vpop.eup %2695  ;;  %v1616_v59 = vadd.f32 %v1615_v49, %v1447_v52  ;;  %1150 = vmatmul.bf16.gmra.mxu0 %v2173_v50  ;;  %v1281_v60 = vadd.f32 %v1280_v54, %v1112_v57  ;;  %v2213_v52 = vor.u32 %v2581_v41, %v2212_v40  ;;  %v2246_v40 = vld [vmem:[%s3931_s0 + $0x318] sm:$0xf0] }
 0x162   :  { %1804 = vst [vmem:[%s3932_s3 + $0xb0] sm:$0xff] %v2696_v58  ;;  %1319 = vmatmul.bf16.gmra.mxu1 %v2177_v51 }
 0x163   :  { %2697 = vtanh.f32 %v1616_v59  ;;  %1488 = vmatmul.bf16.gmra.mxu2 %v2181_v55 }
 0x164   :  { %1657 = vmatmul.bf16.gmra.mxu3 %v2185_v56 }
 0x166   :  { %v1449_v61 = vpop.f32.mrf.mxu2  ;;  %v1113_v1 = vpop.f32.mrf.mxu0 }
 0x167   :  { %v1618_v62 = vpop.f32.mrf.mxu3  ;;  %v1450_v63 = vadd.f32 %v1449_v61, %v1281_v60  ;;  %v1282_v2 = vpop.f32.mrf.mxu1  ;;  %v1114_v5 = vadd.f32 %v3092_v0, %v1113_v1 }
 0x169   :  { %v2698_v3 = vpop.eup %2697  ;;  %v1619_v4 = vadd.f32 %v1618_v62, %v1450_v63  ;;  %v1283_v14 = vadd.f32 %v1282_v2, %v1114_v5  ;;  %v2582_v5 = vld [vmem:[%s3931_s0 + $0x2e4] sm:$0xf] }
 0x16a   :  { %1805 = vst [vmem:[%s3932_s3 + $0xb8] sm:$0xff] %v2698_v3  ;;  %v2220_v3 = vld [vmem:[%s3931_s0 + $0x2e0] sm:$0xf] }
 0x16b   :  { %2699 = vtanh.f32 %v1619_v4  ;;  %v2584_v4 = vld [vmem:[%s3931_s0 + $0x2ec] sm:$0xf0] }
 0x16e   :  { %v1451_v15 = vpop.f32.mrf.mxu2  ;;  %v1116_v20 = vpop.f32.mrf.mxu0 }
 0x16f   :  { %v1620_v16 = vpop.f32.mrf.mxu3  ;;  %v1452_v19 = vadd.f32 %v1451_v15, %v1283_v14  ;;  %v1285_v21 = vpop.f32.mrf.mxu1  ;;  %v1117_v24 = vadd.f32 %v3092_v0, %v1116_v20  ;;  %v3535_v0 = vld [vmem:[%s3930_s2] ss:$0 sm:$0xff]  ;;  %v2221_v14 = vor.u32 %v2584_v4, %v2220_v3  ;;  %v2225_v15 = vor.u32 %v2582_v5, %v2222_v6  ;;  %v2254_v3 = vld [vmem:[%s3931_s0 + $0x330] sm:$0xf0]  ;;  %v2260_v4 = vld [vmem:[%s3931_s0 + $0x328] sm:$0xf] }
 0x170   :  { %v2233_v20 = vor.u32 %v2583_v9, %v2230_v10  ;;  %v2593_v5 = vld [vmem:[%s3931_s0 + $0x334] sm:$0xf0]  ;;  %v2591_v6 = vld [vmem:[%s3931_s0 + $0x32c] sm:$0xf] }
 0x171   :  { %v2700_v25 = vpop.eup %2699  ;;  %v1621_v26 = vadd.f32 %v1620_v16, %v1452_v19  ;;  %1155 = vmatmul.bf16.gmra.mxu0 %v2189_v17  ;;  %v1286_v27 = vadd.f32 %v1285_v21, %v1117_v24  ;;  %v2229_v19 = vor.u32 %v2585_v8, %v2228_v7  ;;  %v2262_v7 = vld [vmem:[%s3931_s0 + $0x338] sm:$0xf0] }
 0x172   :  { %1806 = vst [vmem:[%s3932_s3 + $0xc0] sm:$0xff] %v2700_v25  ;;  %1324 = vmatmul.bf16.gmra.mxu1 %v2193_v18 }
 0x173   :  { %2701 = vtanh.f32 %v1621_v26  ;;  %1493 = vmatmul.bf16.gmra.mxu2 %v2197_v22 }
 0x174   :  { %1662 = vmatmul.bf16.gmra.mxu3 %v2201_v23 }
 0x176   :  { %v1454_v28 = vpop.f32.mrf.mxu2  ;;  %v1118_v31 = vpop.f32.mrf.mxu0 }
 0x177   :  { %v1623_v29 = vpop.f32.mrf.mxu3  ;;  %v1455_v30 = vadd.f32 %v1454_v28, %v1286_v27  ;;  %v1287_v32 = vpop.f32.mrf.mxu1  ;;  %v1119_v35 = vadd.f32 %v3535_v0, %v1118_v31 }
 0x179   :  { %v2702_v33 = vpop.eup %2701  ;;  %v1624_v34 = vadd.f32 %v1623_v29, %v1455_v30  ;;  %v1288_v44 = vadd.f32 %v1287_v32, %v1119_v35  ;;  %v2586_v35 = vld [vmem:[%s3931_s0 + $0x304] sm:$0xf] }
 0x17a   :  { %1807 = vst [vmem:[%s3932_s3 + $0xc8] sm:$0xff] %v2702_v33  ;;  %v2236_v33 = vld [vmem:[%s3931_s0 + $0x300] sm:$0xf] }
 0x17b   :  { %2703 = vtanh.f32 %v1624_v34  ;;  %v2588_v34 = vld [vmem:[%s3931_s0 + $0x30c] sm:$0xf0] }
 0x17e   :  { %v1456_v45 = vpop.f32.mrf.mxu2  ;;  %v1121_v50 = vpop.f32.mrf.mxu0 }
 0x17f   :  { %v1625_v46 = vpop.f32.mrf.mxu3  ;;  %v1457_v49 = vadd.f32 %v1456_v45, %v1288_v44  ;;  %v1290_v51 = vpop.f32.mrf.mxu1  ;;  %v1122_v54 = vadd.f32 %v3535_v0, %v1121_v50  ;;  %v2237_v44 = vor.u32 %v2588_v34, %v2236_v33  ;;  %v2241_v45 = vor.u32 %v2586_v35, %v2238_v36  ;;  %v2270_v33 = vld [vmem:[%s3931_s0 + $0x350] sm:$0xf0]  ;;  %v2276_v34 = vld [vmem:[%s3931_s0 + $0x348] sm:$0xf]  ;;  %v2597_v35 = vld [vmem:[%s3931_s0 + $0x354] sm:$0xf0] }
 0x180   :  { %v2249_v50 = vor.u32 %v2587_v39, %v2246_v40  ;;  %v2595_v36 = vld [vmem:[%s3931_s0 + $0x34c] sm:$0xf] }
 0x181   :  { %v2704_v55 = vpop.eup %2703  ;;  %v1626_v56 = vadd.f32 %v1625_v46, %v1457_v49  ;;  %1160 = vmatmul.bf16.gmra.mxu0 %v2205_v47  ;;  %v1291_v57 = vadd.f32 %v1290_v51, %v1122_v54  ;;  %v2245_v49 = vor.u32 %v2589_v38, %v2244_v37  ;;  %v2278_v37 = vld [vmem:[%s3931_s0 + $0x358] sm:$0xf0] }
 0x182   :  { %1808 = vst [vmem:[%s3932_s3 + $0xd0] sm:$0xff] %v2704_v55  ;;  %1329 = vmatmul.bf16.gmra.mxu1 %v2209_v48 }
 0x183   :  { %2705 = vtanh.f32 %v1626_v56  ;;  %1498 = vmatmul.bf16.gmra.mxu2 %v2213_v52 }
 0x184   :  { %1667 = vmatmul.bf16.gmra.mxu3 %v2217_v53 }
 0x186   :  { %v1459_v58 = vpop.f32.mrf.mxu2  ;;  %v1123_v61 = vpop.f32.mrf.mxu0 }
 0x187   :  { %v1628_v59 = vpop.f32.mrf.mxu3  ;;  %v1460_v60 = vadd.f32 %v1459_v58, %v1291_v57  ;;  %v1292_v62 = vpop.f32.mrf.mxu1  ;;  %v1124_v2 = vadd.f32 %v3535_v0, %v1123_v61 }
 0x189   :  { %v2706_v63 = vpop.eup %2705  ;;  %v1629_v1 = vadd.f32 %v1628_v59, %v1460_v60  ;;  %v1293_v11 = vadd.f32 %v1292_v62, %v1124_v2  ;;  %v2590_v2 = vld [vmem:[%s3931_s0 + $0x324] sm:$0xf] }
 0x18a   :  { %1809 = vst [vmem:[%s3932_s3 + $0xd8] sm:$0xff] %v2706_v63  ;;  %v2252_v63 = vld [vmem:[%s3931_s0 + $0x320] sm:$0xf] }
 0x18b   :  { %2707 = vtanh.f32 %v1629_v1  ;;  %v2592_v1 = vld [vmem:[%s3931_s0 + $0x32c] sm:$0xf0] }
 0x18e   :  { %v1461_v12 = vpop.f32.mrf.mxu2  ;;  %v1126_v17 = vpop.f32.mrf.mxu0 }
 0x18f   :  { %v1630_v13 = vpop.f32.mrf.mxu3  ;;  %v1462_v16 = vadd.f32 %v1461_v12, %v1293_v11  ;;  %v1295_v18 = vpop.f32.mrf.mxu1  ;;  %v1127_v21 = vadd.f32 %v3535_v0, %v1126_v17  ;;  %v2253_v11 = vor.u32 %v2592_v1, %v2252_v63  ;;  %v2257_v12 = vor.u32 %v2590_v2, %v2254_v3  ;;  %v2286_v63 = vld [vmem:[%s3931_s0 + $0x370] sm:$0xf0]  ;;  %v2292_v1 = vld [vmem:[%s3931_s0 + $0x368] sm:$0xf]  ;;  %v2601_v2 = vld [vmem:[%s3931_s0 + $0x374] sm:$0xf0] }
 0x190   :  { %v2265_v17 = vor.u32 %v2591_v6, %v2262_v7  ;;  %v2599_v3 = vld [vmem:[%s3931_s0 + $0x36c] sm:$0xf] }
 0x191   :  { %v2708_v22 = vpop.eup %2707  ;;  %v1631_v23 = vadd.f32 %v1630_v13, %v1462_v16  ;;  %1165 = vmatmul.bf16.gmra.mxu0 %v2221_v14  ;;  %v1296_v24 = vadd.f32 %v1295_v18, %v1127_v21  ;;  %v2261_v16 = vor.u32 %v2593_v5, %v2260_v4  ;;  %v2294_v4 = vld [vmem:[%s3931_s0 + $0x378] sm:$0xf0] }
 0x192   :  { %1810 = vst [vmem:[%s3932_s3 + $0xe0] sm:$0xff] %v2708_v22  ;;  %1334 = vmatmul.bf16.gmra.mxu1 %v2225_v15 }
 0x193   :  { %2709 = vtanh.f32 %v1631_v23  ;;  %1503 = vmatmul.bf16.gmra.mxu2 %v2229_v19 }
 0x194   :  { %1672 = vmatmul.bf16.gmra.mxu3 %v2233_v20 }
 0x196   :  { %v1464_v25 = vpop.f32.mrf.mxu2  ;;  %v1128_v28 = vpop.f32.mrf.mxu0 }
 0x197   :  { %v1633_v26 = vpop.f32.mrf.mxu3  ;;  %v1465_v27 = vadd.f32 %v1464_v25, %v1296_v24  ;;  %v1297_v29 = vpop.f32.mrf.mxu1  ;;  %v1129_v32 = vadd.f32 %v3535_v0, %v1128_v28 }
 0x199   :  { %v2710_v30 = vpop.eup %2709  ;;  %v1634_v31 = vadd.f32 %v1633_v26, %v1465_v27  ;;  %v1298_v41 = vadd.f32 %v1297_v29, %v1129_v32  ;;  %v2594_v32 = vld [vmem:[%s3931_s0 + $0x344] sm:$0xf] }
 0x19a   :  { %1811 = vst [vmem:[%s3932_s3 + $0xe8] sm:$0xff] %v2710_v30  ;;  %v2268_v30 = vld [vmem:[%s3931_s0 + $0x340] sm:$0xf] }
 0x19b   :  { %2711 = vtanh.f32 %v1634_v31  ;;  %v2596_v31 = vld [vmem:[%s3931_s0 + $0x34c] sm:$0xf0] }
 0x19e   :  { %v1466_v42 = vpop.f32.mrf.mxu2  ;;  %v1131_v47 = vpop.f32.mrf.mxu0 }
 0x19f   :  { %v1635_v43 = vpop.f32.mrf.mxu3  ;;  %v1467_v46 = vadd.f32 %v1466_v42, %v1298_v41  ;;  %v1300_v48 = vpop.f32.mrf.mxu1  ;;  %v1132_v51 = vadd.f32 %v3535_v0, %v1131_v47  ;;  %v2269_v41 = vor.u32 %v2596_v31, %v2268_v30  ;;  %v2273_v42 = vor.u32 %v2594_v32, %v2270_v33  ;;  %v2302_v30 = vld [vmem:[%s3931_s0 + $0x390] sm:$0xf0]  ;;  %v2308_v31 = vld [vmem:[%s3931_s0 + $0x388] sm:$0xf]  ;;  %v2605_v32 = vld [vmem:[%s3931_s0 + $0x394] sm:$0xf0] }
 0x1a0   :  { %v2281_v47 = vor.u32 %v2595_v36, %v2278_v37  ;;  %v2603_v33 = vld [vmem:[%s3931_s0 + $0x38c] sm:$0xf] }
 0x1a1   :  { %v2712_v52 = vpop.eup %2711  ;;  %v1636_v53 = vadd.f32 %v1635_v43, %v1467_v46  ;;  %1170 = vmatmul.bf16.gmra.mxu0 %v2237_v44  ;;  %v1301_v54 = vadd.f32 %v1300_v48, %v1132_v51  ;;  %v2277_v46 = vor.u32 %v2597_v35, %v2276_v34  ;;  %v2310_v34 = vld [vmem:[%s3931_s0 + $0x398] sm:$0xf0] }
 0x1a2   :  { %1812 = vst [vmem:[%s3932_s3 + $0xf0] sm:$0xff] %v2712_v52  ;;  %1339 = vmatmul.bf16.gmra.mxu1 %v2241_v45 }
 0x1a3   :  { %2713 = vtanh.f32 %v1636_v53  ;;  %1508 = vmatmul.bf16.gmra.mxu2 %v2245_v49 }
 0x1a4   :  { %1677 = vmatmul.bf16.gmra.mxu3 %v2249_v50 }
 0x1a6   :  { %v1469_v55 = vpop.f32.mrf.mxu2  ;;  %v1133_v58 = vpop.f32.mrf.mxu0 }
 0x1a7   :  { %v1638_v56 = vpop.f32.mrf.mxu3  ;;  %v1470_v57 = vadd.f32 %v1469_v55, %v1301_v54  ;;  %v1302_v59 = vpop.f32.mrf.mxu1  ;;  %v1134_v62 = vadd.f32 %v3535_v0, %v1133_v58 }
 0x1a9   :  { %v2714_v60 = vpop.eup %2713  ;;  %v1639_v61 = vadd.f32 %v1638_v56, %v1470_v57  ;;  %v1303_v8 = vadd.f32 %v1302_v59, %v1134_v62  ;;  %v2598_v62 = vld [vmem:[%s3931_s0 + $0x364] sm:$0xf] }
 0x1aa   :  { %1813 = vst [vmem:[%s3932_s3 + $0xf8] sm:$0xff] %v2714_v60  ;;  %v2284_v60 = vld [vmem:[%s3931_s0 + $0x360] sm:$0xf] }
 0x1ab   :  { %2715 = vtanh.f32 %v1639_v61  ;;  %v2600_v61 = vld [vmem:[%s3931_s0 + $0x36c] sm:$0xf0] }
 0x1ae   :  { %v1471_v9 = vpop.f32.mrf.mxu2  ;;  %v1136_v14 = vpop.f32.mrf.mxu0 }
 0x1af   :  { %v1640_v10 = vpop.f32.mrf.mxu3  ;;  %v1472_v13 = vadd.f32 %v1471_v9, %v1303_v8  ;;  %v1305_v15 = vpop.f32.mrf.mxu1  ;;  %v1137_v18 = vadd.f32 %v3535_v0, %v1136_v14  ;;  %v2285_v8 = vor.u32 %v2600_v61, %v2284_v60  ;;  %v2289_v9 = vor.u32 %v2598_v62, %v2286_v63  ;;  %v2318_v60 = vld [vmem:[%s3931_s0 + $0x3b0] sm:$0xf0]  ;;  %v2324_v61 = vld [vmem:[%s3931_s0 + $0x3a8] sm:$0xf]  ;;  %v2609_v62 = vld [vmem:[%s3931_s0 + $0x3b4] sm:$0xf0] }
 0x1b0   :  { %v2297_v14 = vor.u32 %v2599_v3, %v2294_v4  ;;  %v2607_v63 = vld [vmem:[%s3931_s0 + $0x3ac] sm:$0xf] }
 0x1b1   :  { %v2716_v19 = vpop.eup %2715  ;;  %v1641_v20 = vadd.f32 %v1640_v10, %v1472_v13  ;;  %1175 = vmatmul.bf16.gmra.mxu0 %v2253_v11  ;;  %v1306_v21 = vadd.f32 %v1305_v15, %v1137_v18  ;;  %v2293_v13 = vor.u32 %v2601_v2, %v2292_v1  ;;  %v2326_v1 = vld [vmem:[%s3931_s0 + $0x3b8] sm:$0xf0] }
 0x1b2   :  { %1814 = vst [vmem:[%s3932_s3 + $0x100] sm:$0xff] %v2716_v19  ;;  %1344 = vmatmul.bf16.gmra.mxu1 %v2257_v12 }
 0x1b3   :  { %2717 = vtanh.f32 %v1641_v20  ;;  %1513 = vmatmul.bf16.gmra.mxu2 %v2261_v16 }
 0x1b4   :  { %1682 = vmatmul.bf16.gmra.mxu3 %v2265_v17 }
 0x1b6   :  { %v1474_v22 = vpop.f32.mrf.mxu2  ;;  %v1138_v25 = vpop.f32.mrf.mxu0 }
 0x1b7   :  { %v1643_v23 = vpop.f32.mrf.mxu3  ;;  %v1475_v24 = vadd.f32 %v1474_v22, %v1306_v21  ;;  %v1307_v26 = vpop.f32.mrf.mxu1  ;;  %v1139_v29 = vadd.f32 %v3535_v0, %v1138_v25 }
 0x1b9   :  { %v2718_v27 = vpop.eup %2717  ;;  %v1644_v28 = vadd.f32 %v1643_v23, %v1475_v24  ;;  %v1308_v38 = vadd.f32 %v1307_v26, %v1139_v29  ;;  %v2602_v29 = vld [vmem:[%s3931_s0 + $0x384] sm:$0xf] }
 0x1ba   :  { %1815 = vst [vmem:[%s3932_s3 + $0x108] sm:$0xff] %v2718_v27  ;;  %v2300_v27 = vld [vmem:[%s3931_s0 + $0x380] sm:$0xf] }
 0x1bb   :  { %2719 = vtanh.f32 %v1644_v28  ;;  %v2604_v28 = vld [vmem:[%s3931_s0 + $0x38c] sm:$0xf0] }
 0x1be   :  { %v1476_v39 = vpop.f32.mrf.mxu2  ;;  %v1141_v44 = vpop.f32.mrf.mxu0 }
 0x1bf   :  { %v1645_v40 = vpop.f32.mrf.mxu3  ;;  %v1477_v43 = vadd.f32 %v1476_v39, %v1308_v38  ;;  %v1310_v45 = vpop.f32.mrf.mxu1  ;;  %v1142_v48 = vadd.f32 %v3535_v0, %v1141_v44  ;;  %v2301_v38 = vor.u32 %v2604_v28, %v2300_v27  ;;  %v2305_v39 = vor.u32 %v2602_v29, %v2302_v30  ;;  %v2334_v27 = vld [vmem:[%s3931_s0 + $0x3d0] sm:$0xf0]  ;;  %v2340_v28 = vld [vmem:[%s3931_s0 + $0x3c8] sm:$0xf]  ;;  %v2613_v29 = vld [vmem:[%s3931_s0 + $0x3d4] sm:$0xf0] }
 0x1c0   :  { %v2313_v44 = vor.u32 %v2603_v33, %v2310_v34  ;;  %v2611_v30 = vld [vmem:[%s3931_s0 + $0x3cc] sm:$0xf] }
 0x1c1   :  { %v2720_v49 = vpop.eup %2719  ;;  %v1646_v50 = vadd.f32 %v1645_v40, %v1477_v43  ;;  %1180 = vmatmul.bf16.gmra.mxu0 %v2269_v41  ;;  %v1311_v51 = vadd.f32 %v1310_v45, %v1142_v48  ;;  %v2309_v43 = vor.u32 %v2605_v32, %v2308_v31  ;;  %v2342_v31 = vld [vmem:[%s3931_s0 + $0x3d8] sm:$0xf0] }
 0x1c2   :  { %1816 = vst [vmem:[%s3932_s3 + $0x110] sm:$0xff] %v2720_v49  ;;  %1349 = vmatmul.bf16.gmra.mxu1 %v2273_v42 }
 0x1c3   :  { %2721 = vtanh.f32 %v1646_v50  ;;  %1518 = vmatmul.bf16.gmra.mxu2 %v2277_v46 }
 0x1c4   :  { %1687 = vmatmul.bf16.gmra.mxu3 %v2281_v47 }
 0x1c6   :  { %v1479_v52 = vpop.f32.mrf.mxu2  ;;  %v1143_v55 = vpop.f32.mrf.mxu0 }
 0x1c7   :  { %v1648_v53 = vpop.f32.mrf.mxu3  ;;  %v1480_v54 = vadd.f32 %v1479_v52, %v1311_v51  ;;  %v1312_v56 = vpop.f32.mrf.mxu1  ;;  %v1144_v59 = vadd.f32 %v3535_v0, %v1143_v55 }
 0x1c9   :  { %v2722_v57 = vpop.eup %2721  ;;  %v1649_v58 = vadd.f32 %v1648_v53, %v1480_v54  ;;  %v1313_v5 = vadd.f32 %v1312_v56, %v1144_v59  ;;  %v2606_v59 = vld [vmem:[%s3931_s0 + $0x3a4] sm:$0xf] }
 0x1ca   :  { %1817 = vst [vmem:[%s3932_s3 + $0x118] sm:$0xff] %v2722_v57  ;;  %v2316_v57 = vld [vmem:[%s3931_s0 + $0x3a0] sm:$0xf] }
 0x1cb   :  { %2723 = vtanh.f32 %v1649_v58  ;;  %v2608_v58 = vld [vmem:[%s3931_s0 + $0x3ac] sm:$0xf0] }
 0x1ce   :  { %v1481_v6 = vpop.f32.mrf.mxu2  ;;  %v1146_v11 = vpop.f32.mrf.mxu0 }
 0x1cf   :  { %v1650_v7 = vpop.f32.mrf.mxu3  ;;  %v1482_v10 = vadd.f32 %v1481_v6, %v1313_v5  ;;  %v1315_v12 = vpop.f32.mrf.mxu1  ;;  %v1147_v15 = vadd.f32 %v3535_v0, %v1146_v11  ;;  %v2317_v5 = vor.u32 %v2608_v58, %v2316_v57  ;;  %v2321_v6 = vor.u32 %v2606_v59, %v2318_v60  ;;  %v2350_v57 = vld [vmem:[%s3931_s0 + $0x3f0] sm:$0xf0]  ;;  %v2356_v58 = vld [vmem:[%s3931_s0 + $0x3e8] sm:$0xf]  ;;  %v2617_v59 = vld [vmem:[%s3931_s0 + $0x3f4] sm:$0xf0] }
 0x1d0   :  { %v2329_v11 = vor.u32 %v2607_v63, %v2326_v1  ;;  %v2615_v60 = vld [vmem:[%s3931_s0 + $0x3ec] sm:$0xf] }
 0x1d1   :  { %v2724_v16 = vpop.eup %2723  ;;  %v1651_v17 = vadd.f32 %v1650_v7, %v1482_v10  ;;  %1185 = vmatmul.bf16.gmra.mxu0 %v2285_v8  ;;  %v1316_v18 = vadd.f32 %v1315_v12, %v1147_v15  ;;  %v2325_v10 = vor.u32 %v2609_v62, %v2324_v61  ;;  %v2358_v61 = vld [vmem:[%s3931_s0 + $0x3f8] sm:$0xf0] }
 0x1d2   :  { %1818 = vst [vmem:[%s3932_s3 + $0x120] sm:$0xff] %v2724_v16  ;;  %1354 = vmatmul.bf16.gmra.mxu1 %v2289_v9 }
 0x1d3   :  { %2725 = vtanh.f32 %v1651_v17  ;;  %1523 = vmatmul.bf16.gmra.mxu2 %v2293_v13 }
 0x1d4   :  { %1692 = vmatmul.bf16.gmra.mxu3 %v2297_v14 }
 0x1d6   :  { %v1484_v19 = vpop.f32.mrf.mxu2  ;;  %v1148_v22 = vpop.f32.mrf.mxu0 }
 0x1d7   :  { %v1653_v20 = vpop.f32.mrf.mxu3  ;;  %v1485_v21 = vadd.f32 %v1484_v19, %v1316_v18  ;;  %v1317_v23 = vpop.f32.mrf.mxu1  ;;  %v1149_v26 = vadd.f32 %v3535_v0, %v1148_v22 }
 0x1d9   :  { %v2726_v24 = vpop.eup %2725  ;;  %v1654_v25 = vadd.f32 %v1653_v20, %v1485_v21  ;;  %v1318_v35 = vadd.f32 %v1317_v23, %v1149_v26  ;;  %v2610_v26 = vld [vmem:[%s3931_s0 + $0x3c4] sm:$0xf] }
 0x1da   :  { %1819 = vst [vmem:[%s3932_s3 + $0x128] sm:$0xff] %v2726_v24  ;;  %v2332_v24 = vld [vmem:[%s3931_s0 + $0x3c0] sm:$0xf] }
 0x1db   :  { %2727 = vtanh.f32 %v1654_v25  ;;  %v2612_v25 = vld [vmem:[%s3931_s0 + $0x3cc] sm:$0xf0] }
 0x1de   :  { %v1486_v36 = vpop.f32.mrf.mxu2  ;;  %v1151_v41 = vpop.f32.mrf.mxu0 }
 0x1df   :  { %v1655_v37 = vpop.f32.mrf.mxu3  ;;  %v1487_v40 = vadd.f32 %v1486_v36, %v1318_v35  ;;  %v1320_v42 = vpop.f32.mrf.mxu1  ;;  %v1152_v45 = vadd.f32 %v3535_v0, %v1151_v41  ;;  %v2333_v35 = vor.u32 %v2612_v25, %v2332_v24  ;;  %v2337_v36 = vor.u32 %v2610_v26, %v2334_v27 }
 0x1e0   :  { %v2345_v41 = vor.u32 %v2611_v30, %v2342_v31 }
 0x1e1   :  { %v2728_v46 = vpop.eup %2727  ;;  %v1656_v47 = vadd.f32 %v1655_v37, %v1487_v40  ;;  %1190 = vmatmul.bf16.gmra.mxu0 %v2301_v38  ;;  %v1321_v48 = vadd.f32 %v1320_v42, %v1152_v45  ;;  %v2341_v40 = vor.u32 %v2613_v29, %v2340_v28 }
 0x1e2   :  { %1820 = vst [vmem:[%s3932_s3 + $0x130] sm:$0xff] %v2728_v46  ;;  %1359 = vmatmul.bf16.gmra.mxu1 %v2305_v39 }
 0x1e3   :  { %2729 = vtanh.f32 %v1656_v47  ;;  %1528 = vmatmul.bf16.gmra.mxu2 %v2309_v43 }
 0x1e4   :  { %1697 = vmatmul.bf16.gmra.mxu3 %v2313_v44 }
 0x1e6   :  { %v1489_v49 = vpop.f32.mrf.mxu2  ;;  %v1153_v52 = vpop.f32.mrf.mxu0 }
 0x1e7   :  { %v1658_v50 = vpop.f32.mrf.mxu3  ;;  %v1490_v51 = vadd.f32 %v1489_v49, %v1321_v48  ;;  %v1322_v53 = vpop.f32.mrf.mxu1  ;;  %v1154_v56 = vadd.f32 %v3535_v0, %v1153_v52 }
 0x1e9   :  { %v2730_v54 = vpop.eup %2729  ;;  %v1659_v55 = vadd.f32 %v1658_v50, %v1490_v51  ;;  %v1323_v2 = vadd.f32 %v1322_v53, %v1154_v56  ;;  %v2614_v56 = vld [vmem:[%s3931_s0 + $0x3e4] sm:$0xf] }
 0x1ea   :  { %1821 = vst [vmem:[%s3932_s3 + $0x138] sm:$0xff] %v2730_v54  ;;  %v2348_v54 = vld [vmem:[%s3931_s0 + $0x3e0] sm:$0xf] }
 0x1eb   :  { %2731 = vtanh.f32 %v1659_v55  ;;  %v2616_v55 = vld [vmem:[%s3931_s0 + $0x3ec] sm:$0xf0] }
 0x1ee   :  { %v1491_v3 = vpop.f32.mrf.mxu2  ;;  %v1156_v8 = vpop.f32.mrf.mxu0 }
 0x1ef   :  { %v1660_v4 = vpop.f32.mrf.mxu3  ;;  %v1492_v7 = vadd.f32 %v1491_v3, %v1323_v2  ;;  %v1325_v9 = vpop.f32.mrf.mxu1  ;;  %v1157_v12 = vadd.f32 %v3535_v0, %v1156_v8  ;;  %v2349_v2 = vor.u32 %v2616_v55, %v2348_v54  ;;  %v2353_v3 = vor.u32 %v2614_v56, %v2350_v57 }
 0x1f0   :  { %v2361_v8 = vor.u32 %v2615_v60, %v2358_v61 }
 0x1f1   :  { %v2732_v13 = vpop.eup %2731  ;;  %v1661_v14 = vadd.f32 %v1660_v4, %v1492_v7  ;;  %1195 = vmatmul.bf16.gmra.mxu0 %v2317_v5  ;;  %v1326_v15 = vadd.f32 %v1325_v9, %v1157_v12  ;;  %v2357_v7 = vor.u32 %v2617_v59, %v2356_v58 }
 0x1f2   :  { %1822 = vst [vmem:[%s3932_s3 + $0x140] sm:$0xff] %v2732_v13  ;;  %1364 = vmatmul.bf16.gmra.mxu1 %v2321_v6 }
 0x1f3   :  { %2733 = vtanh.f32 %v1661_v14  ;;  %1533 = vmatmul.bf16.gmra.mxu2 %v2325_v10 }
 0x1f4   :  { %1702 = vmatmul.bf16.gmra.mxu3 %v2329_v11 }
 0x1f6   :  { %v1494_v16 = vpop.f32.mrf.mxu2  ;;  %v1158_v19 = vpop.f32.mrf.mxu0 }
 0x1f7   :  { %v1663_v17 = vpop.f32.mrf.mxu3  ;;  %v1495_v18 = vadd.f32 %v1494_v16, %v1326_v15  ;;  %v1327_v20 = vpop.f32.mrf.mxu1  ;;  %v1159_v23 = vadd.f32 %v3535_v0, %v1158_v19 }
 0x1f9   :  { %v2734_v21 = vpop.eup %2733  ;;  %v1664_v22 = vadd.f32 %v1663_v17, %v1495_v18  ;;  %v1328_v32 = vadd.f32 %v1327_v20, %v1159_v23 }
 0x1fa   :  { %1823 = vst [vmem:[%s3932_s3 + $0x148] sm:$0xff] %v2734_v21 }
 0x1fb   :  { %2735 = vtanh.f32 %v1664_v22 }
 0x1fe   :  { %v1496_v33 = vpop.f32.mrf.mxu2  ;;  %v1161_v38 = vpop.f32.mrf.mxu0 }
 0x1ff   :  { %v1665_v34 = vpop.f32.mrf.mxu3  ;;  %v1497_v37 = vadd.f32 %v1496_v33, %v1328_v32  ;;  %v1330_v39 = vpop.f32.mrf.mxu1  ;;  %v1162_v42 = vadd.f32 %v3535_v0, %v1161_v38 }
 0x201   :  { %v2736_v43 = vpop.eup %2735  ;;  %v1666_v44 = vadd.f32 %v1665_v34, %v1497_v37  ;;  %1200 = vmatmul.bf16.gmra.mxu0 %v2333_v35  ;;  %v1331_v45 = vadd.f32 %v1330_v39, %v1162_v42 }
 0x202   :  { %1824 = vst [vmem:[%s3932_s3 + $0x150] sm:$0xff] %v2736_v43  ;;  %1369 = vmatmul.bf16.gmra.mxu1 %v2337_v36 }
 0x203   :  { %2737 = vtanh.f32 %v1666_v44  ;;  %1538 = vmatmul.bf16.gmra.mxu2 %v2341_v40 }
 0x204   :  { %1707 = vmatmul.bf16.gmra.mxu3 %v2345_v41 }
 0x206   :  { %v1499_v46 = vpop.f32.mrf.mxu2  ;;  %v1163_v49 = vpop.f32.mrf.mxu0 }
 0x207   :  { %v1668_v47 = vpop.f32.mrf.mxu3  ;;  %v1500_v48 = vadd.f32 %v1499_v46, %v1331_v45  ;;  %v1332_v50 = vpop.f32.mrf.mxu1  ;;  %v1164_v53 = vadd.f32 %v3535_v0, %v1163_v49 }
 0x209   :  { %v2738_v51 = vpop.eup %2737  ;;  %v1669_v52 = vadd.f32 %v1668_v47, %v1500_v48  ;;  %v1333_v62 = vadd.f32 %v1332_v50, %v1164_v53 }
 0x20a   :  { %1825 = vst [vmem:[%s3932_s3 + $0x158] sm:$0xff] %v2738_v51 }
 0x20b   :  { %2739 = vtanh.f32 %v1669_v52 }
 0x20e   :  { %v1501_v63 = vpop.f32.mrf.mxu2  ;;  %v1166_v5 = vpop.f32.mrf.mxu0 }
 0x20f   :  { %v1670_v1 = vpop.f32.mrf.mxu3  ;;  %v1502_v4 = vadd.f32 %v1501_v63, %v1333_v62  ;;  %v1335_v6 = vpop.f32.mrf.mxu1  ;;  %v1167_v9 = vadd.f32 %v3535_v0, %v1166_v5 }
 0x211   :  { %v2740_v10 = vpop.eup %2739  ;;  %v1671_v11 = vadd.f32 %v1670_v1, %v1502_v4  ;;  %1205 = vmatmul.bf16.gmra.mxu0 %v2349_v2  ;;  %v1336_v12 = vadd.f32 %v1335_v6, %v1167_v9 }
 0x212   :  { %1826 = vst [vmem:[%s3932_s3 + $0x160] sm:$0xff] %v2740_v10  ;;  %1374 = vmatmul.bf16.gmra.mxu1 %v2353_v3 }
 0x213   :  { %2741 = vtanh.f32 %v1671_v11  ;;  %1543 = vmatmul.bf16.gmra.mxu2 %v2357_v7 }
 0x214   :  { %1712 = vmatmul.bf16.gmra.mxu3 %v2361_v8 }
 0x216   :  { %v1504_v13 = vpop.f32.mrf.mxu2  ;;  %v1168_v16 = vpop.f32.mrf.mxu0 }
 0x217   :  { %v1673_v14 = vpop.f32.mrf.mxu3  ;;  %v1505_v15 = vadd.f32 %v1504_v13, %v1336_v12  ;;  %v1337_v17 = vpop.f32.mrf.mxu1  ;;  %v1169_v20 = vadd.f32 %v3535_v0, %v1168_v16 }
 0x219   :  { %v2742_v18 = vpop.eup %2741  ;;  %v1674_v19 = vadd.f32 %v1673_v14, %v1505_v15  ;;  %v1338_v21 = vadd.f32 %v1337_v17, %v1169_v20 }
 0x21a   :  { %1827 = vst [vmem:[%s3932_s3 + $0x168] sm:$0xff] %v2742_v18 }
 0x21b   :  { %2743 = vtanh.f32 %v1674_v19 }
 0x21e   :  { %v1506_v22 = vpop.f32.mrf.mxu2  ;;  %v1171_v25 = vpop.f32.mrf.mxu0 }
 0x21f   :  { %v1675_v23 = vpop.f32.mrf.mxu3  ;;  %v1507_v24 = vadd.f32 %v1506_v22, %v1338_v21  ;;  %v1340_v26 = vpop.f32.mrf.mxu1  ;;  %v1172_v27 = vadd.f32 %v3535_v0, %v1171_v25 }
 0x221   :  { %v2744_v28 = vpop.eup %2743  ;;  %v1676_v29 = vadd.f32 %v1675_v23, %v1507_v24  ;;  %v1341_v30 = vadd.f32 %v1340_v26, %v1172_v27 }
 0x222   :  { %1828 = vst [vmem:[%s3932_s3 + $0x170] sm:$0xff] %v2744_v28 }
 0x223   :  { %2745 = vtanh.f32 %v1676_v29 }
 0x226   :  { %v1509_v31 = vpop.f32.mrf.mxu2  ;;  %v1173_v34 = vpop.f32.mrf.mxu0 }
 0x227   :  { %v1678_v32 = vpop.f32.mrf.mxu3  ;;  %v1510_v33 = vadd.f32 %v1509_v31, %v1341_v30  ;;  %v1342_v35 = vpop.f32.mrf.mxu1  ;;  %v1174_v38 = vadd.f32 %v3535_v0, %v1173_v34 }
 0x229   :  { %v2746_v36 = vpop.eup %2745  ;;  %v1679_v37 = vadd.f32 %v1678_v32, %v1510_v33  ;;  %v1343_v39 = vadd.f32 %v1342_v35, %v1174_v38 }
 0x22a   :  { %1829 = vst [vmem:[%s3932_s3 + $0x178] sm:$0xff] %v2746_v36 }
 0x22b   :  { %2747 = vtanh.f32 %v1679_v37 }
 0x22e   :  { %v1511_v40 = vpop.f32.mrf.mxu2  ;;  %v1176_v43 = vpop.f32.mrf.mxu0 }
 0x22f   :  { %v1680_v41 = vpop.f32.mrf.mxu3  ;;  %v1512_v42 = vadd.f32 %v1511_v40, %v1343_v39  ;;  %v1345_v44 = vpop.f32.mrf.mxu1  ;;  %v1177_v45 = vadd.f32 %v3535_v0, %v1176_v43 }
 0x231   :  { %v2748_v46 = vpop.eup %2747  ;;  %v1681_v47 = vadd.f32 %v1680_v41, %v1512_v42  ;;  %v1346_v48 = vadd.f32 %v1345_v44, %v1177_v45 }
 0x232   :  { %1830 = vst [vmem:[%s3932_s3 + $0x180] sm:$0xff] %v2748_v46 }
 0x233   :  { %2749 = vtanh.f32 %v1681_v47 }
 0x236   :  { %v1514_v49 = vpop.f32.mrf.mxu2  ;;  %v1178_v52 = vpop.f32.mrf.mxu0 }
 0x237   :  { %v1683_v50 = vpop.f32.mrf.mxu3  ;;  %v1515_v51 = vadd.f32 %v1514_v49, %v1346_v48  ;;  %v1347_v53 = vpop.f32.mrf.mxu1  ;;  %v1179_v56 = vadd.f32 %v3535_v0, %v1178_v52 }
 0x239   :  { %v2750_v54 = vpop.eup %2749  ;;  %v1684_v55 = vadd.f32 %v1683_v50, %v1515_v51  ;;  %v1348_v57 = vadd.f32 %v1347_v53, %v1179_v56 }
 0x23a   :  { %1831 = vst [vmem:[%s3932_s3 + $0x188] sm:$0xff] %v2750_v54 }
 0x23b   :  { %2751 = vtanh.f32 %v1684_v55 }
 0x23e   :  { %v1516_v58 = vpop.f32.mrf.mxu2  ;;  %v1181_v61 = vpop.f32.mrf.mxu0 }
 0x23f   :  { %v1685_v59 = vpop.f32.mrf.mxu3  ;;  %v1517_v60 = vadd.f32 %v1516_v58, %v1348_v57  ;;  %v1350_v62 = vpop.f32.mrf.mxu1  ;;  %v1182_v63 = vadd.f32 %v3535_v0, %v1181_v61 }
 0x241   :  { %v2752_v1 = vpop.eup %2751  ;;  %v1686_v2 = vadd.f32 %v1685_v59, %v1517_v60  ;;  %v1351_v3 = vadd.f32 %v1350_v62, %v1182_v63 }
 0x242   :  { %1832 = vst [vmem:[%s3932_s3 + $0x190] sm:$0xff] %v2752_v1 }
 0x243   :  { %2753 = vtanh.f32 %v1686_v2  ;;  %v2780_v2 = vld [vmem:[%s3930_s2] ss:$0 sm:$0xff] }
 0x246   :  { %v1519_v4 = vpop.f32.mrf.mxu2  ;;  %v1183_v7 = vpop.f32.mrf.mxu0 }
 0x247   :  { %v1688_v5 = vpop.f32.mrf.mxu3  ;;  %v1520_v6 = vadd.f32 %v1519_v4, %v1351_v3  ;;  %v1352_v8 = vpop.f32.mrf.mxu1  ;;  %v1184_v11 = vadd.f32 %v3535_v0, %v1183_v7 }
 0x249   :  { %v2754_v9 = vpop.eup %2753  ;;  %v1689_v10 = vadd.f32 %v1688_v5, %v1520_v6  ;;  %v1353_v12 = vadd.f32 %v1352_v8, %v1184_v11 }
 0x24a   :  { %1833 = vst [vmem:[%s3932_s3 + $0x198] sm:$0xff] %v2754_v9 }
 0x24b   :  { %2755 = vtanh.f32 %v1689_v10 }
 0x24e   :  { %v1521_v13 = vpop.f32.mrf.mxu2  ;;  %v1186_v16 = vpop.f32.mrf.mxu0 }
 0x24f   :  { %v1690_v14 = vpop.f32.mrf.mxu3  ;;  %v1522_v15 = vadd.f32 %v1521_v13, %v1353_v12  ;;  %v1355_v17 = vpop.f32.mrf.mxu1  ;;  %v1187_v18 = vadd.f32 %v3535_v0, %v1186_v16 }
 0x251   :  { %v2756_v19 = vpop.eup %2755  ;;  %v1691_v20 = vadd.f32 %v1690_v14, %v1522_v15  ;;  %v1356_v21 = vadd.f32 %v1355_v17, %v1187_v18 }
 0x252   :  { %1834 = vst [vmem:[%s3932_s3 + $0x1a0] sm:$0xff] %v2756_v19 }
 0x253   :  { %2757 = vtanh.f32 %v1691_v20 }
 0x256   :  { %v1524_v22 = vpop.f32.mrf.mxu2  ;;  %v1188_v25 = vpop.f32.mrf.mxu0 }
 0x257   :  { %v1693_v23 = vpop.f32.mrf.mxu3  ;;  %v1525_v24 = vadd.f32 %v1524_v22, %v1356_v21  ;;  %v1357_v26 = vpop.f32.mrf.mxu1  ;;  %v1189_v29 = vadd.f32 %v3535_v0, %v1188_v25 }
 0x259   :  { %v2758_v27 = vpop.eup %2757  ;;  %v1694_v28 = vadd.f32 %v1693_v23, %v1525_v24  ;;  %v1358_v30 = vadd.f32 %v1357_v26, %v1189_v29 }
 0x25a   :  { %1835 = vst [vmem:[%s3932_s3 + $0x1a8] sm:$0xff] %v2758_v27 }
 0x25b   :  { %2759 = vtanh.f32 %v1694_v28 }
 0x25e   :  { %v1526_v31 = vpop.f32.mrf.mxu2  ;;  %v1191_v34 = vpop.f32.mrf.mxu0 }
 0x25f   :  { %v1695_v32 = vpop.f32.mrf.mxu3  ;;  %v1527_v33 = vadd.f32 %v1526_v31, %v1358_v30  ;;  %v1360_v35 = vpop.f32.mrf.mxu1  ;;  %v1192_v36 = vadd.f32 %v3535_v0, %v1191_v34 }
 0x261   :  { %v2760_v37 = vpop.eup %2759  ;;  %v1696_v38 = vadd.f32 %v1695_v32, %v1527_v33  ;;  %v1361_v39 = vadd.f32 %v1360_v35, %v1192_v36 }
 0x262   :  { %1836 = vst [vmem:[%s3932_s3 + $0x1b0] sm:$0xff] %v2760_v37 }
 0x263   :  { %2761 = vtanh.f32 %v1696_v38 }
 0x266   :  { %v1529_v40 = vpop.f32.mrf.mxu2  ;;  %v1193_v43 = vpop.f32.mrf.mxu0 }
 0x267   :  { %v1698_v41 = vpop.f32.mrf.mxu3  ;;  %v1530_v42 = vadd.f32 %v1529_v40, %v1361_v39  ;;  %v1362_v44 = vpop.f32.mrf.mxu1  ;;  %v1194_v47 = vadd.f32 %v3535_v0, %v1193_v43 }
 0x269   :  { %v2762_v45 = vpop.eup %2761  ;;  %v1699_v46 = vadd.f32 %v1698_v41, %v1530_v42  ;;  %v1363_v48 = vadd.f32 %v1362_v44, %v1194_v47 }
 0x26a   :  { %1837 = vst [vmem:[%s3932_s3 + $0x1b8] sm:$0xff] %v2762_v45 }
 0x26b   :  { %2763 = vtanh.f32 %v1699_v46 }
 0x26e   :  { %v1531_v49 = vpop.f32.mrf.mxu2  ;;  %v1196_v52 = vpop.f32.mrf.mxu0 }
 0x26f   :  { %v1700_v50 = vpop.f32.mrf.mxu3  ;;  %v1532_v51 = vadd.f32 %v1531_v49, %v1363_v48  ;;  %v1365_v53 = vpop.f32.mrf.mxu1  ;;  %v1197_v54 = vadd.f32 %v3535_v0, %v1196_v52 }
 0x271   :  { %v2764_v55 = vpop.eup %2763  ;;  %v1701_v56 = vadd.f32 %v1700_v50, %v1532_v51  ;;  %v1366_v57 = vadd.f32 %v1365_v53, %v1197_v54 }
 0x272   :  { %1838 = vst [vmem:[%s3932_s3 + $0x1c0] sm:$0xff] %v2764_v55 }
 0x273   :  { %2765 = vtanh.f32 %v1701_v56 }
 0x276   :  { %v1534_v58 = vpop.f32.mrf.mxu2  ;;  %v1198_v61 = vpop.f32.mrf.mxu0 }
 0x277   :  { %v1703_v59 = vpop.f32.mrf.mxu3  ;;  %v1535_v60 = vadd.f32 %v1534_v58, %v1366_v57  ;;  %v1367_v62 = vpop.f32.mrf.mxu1  ;;  %v1199_v0 = vadd.f32 %v2780_v2, %v1198_v61 }
 0x279   :  { %v2766_v63 = vpop.eup %2765  ;;  %v1704_v1 = vadd.f32 %v1703_v59, %v1535_v60  ;;  %v1368_v3 = vadd.f32 %v1367_v62, %v1199_v0 }
 0x27a   :  { %1839 = vst [vmem:[%s3932_s3 + $0x1c8] sm:$0xff] %v2766_v63 }
 0x27b   :  { %2767 = vtanh.f32 %v1704_v1 }
 0x27e   :  { %v1536_v4 = vpop.f32.mrf.mxu2  ;;  %v1201_v7 = vpop.f32.mrf.mxu0 }
 0x27f   :  { %v1705_v5 = vpop.f32.mrf.mxu3  ;;  %v1537_v6 = vadd.f32 %v1536_v4, %v1368_v3  ;;  %v1370_v8 = vpop.f32.mrf.mxu1  ;;  %v1202_v9 = vadd.f32 %v2780_v2, %v1201_v7 }
 0x281   :  { %v2768_v10 = vpop.eup %2767  ;;  %v1706_v11 = vadd.f32 %v1705_v5, %v1537_v6  ;;  %v1371_v12 = vadd.f32 %v1370_v8, %v1202_v9 }
 0x282   :  { %1840 = vst [vmem:[%s3932_s3 + $0x1d0] sm:$0xff] %v2768_v10 }
 0x283   :  { %2769 = vtanh.f32 %v1706_v11 }
 0x286   :  { %v1539_v13 = vpop.f32.mrf.mxu2  ;;  %v1203_v16 = vpop.f32.mrf.mxu0 }
 0x287   :  { %v1708_v14 = vpop.f32.mrf.mxu3  ;;  %v1540_v15 = vadd.f32 %v1539_v13, %v1371_v12  ;;  %v1372_v17 = vpop.f32.mrf.mxu1  ;;  %v1204_v20 = vadd.f32 %v2780_v2, %v1203_v16 }
 0x289   :  { %v2770_v18 = vpop.eup %2769  ;;  %v1709_v19 = vadd.f32 %v1708_v14, %v1540_v15  ;;  %v1373_v21 = vadd.f32 %v1372_v17, %v1204_v20 }
 0x28a   :  { %1841 = vst [vmem:[%s3932_s3 + $0x1d8] sm:$0xff] %v2770_v18 }
 0x28b   :  { %2771 = vtanh.f32 %v1709_v19 }
 0x28e   :  { %v1541_v22 = vpop.f32.mrf.mxu2  ;;  %v1206_v25 = vpop.f32.mrf.mxu0 }
 0x28f   :  { %v1710_v23 = vpop.f32.mrf.mxu3  ;;  %v1542_v24 = vadd.f32 %v1541_v22, %v1373_v21  ;;  %v1207_v26 = vadd.f32 %v2780_v2, %v1206_v25  ;;  %v1375_v29 = vpop.f32.mrf.mxu1 }
 0x291   :  { %v2772_v27 = vpop.eup %2771  ;;  %v1711_v28 = vadd.f32 %v1710_v23, %v1542_v24  ;;  %v1376_v30 = vadd.f32 %v1375_v29, %v1207_v26 }
 0x292   :  { %1842 = vst [vmem:[%s3932_s3 + $0x1e0] sm:$0xff] %v2772_v27 }
 0x293   :  { %2773 = vtanh.f32 %v1711_v28 }
 0x296   :  { %v1544_v31 = vpop.f32.mrf.mxu2  ;;  %v1208_v34 = vpop.f32.mrf.mxu0 }
 0x297   :  { %v1713_v32 = vpop.f32.mrf.mxu3  ;;  %v1545_v33 = vadd.f32 %v1544_v31, %v1376_v30  ;;  %v1209_v37 = vadd.f32 %v2780_v2, %v1208_v34  ;;  %v1377_v38 = vpop.f32.mrf.mxu1 }
 0x299   :  { %v2774_v35 = vpop.eup %2773  ;;  %v1714_v36 = vadd.f32 %v1713_v32, %v1545_v33  ;;  %v1378_v39 = vadd.f32 %v1377_v38, %v1209_v37 }
 0x29a   :  { %1843 = vst [vmem:[%s3932_s3 + $0x1e8] sm:$0xff] %v2774_v35 }
 0x29b   :  { %2775 = vtanh.f32 %v1714_v36 }
 0x29e   :  { %v1546_v40 = vpop.f32.mrf.mxu2 }
 0x29f   :  { %v1547_v41 = vadd.f32 %v1546_v40, %v1378_v39  ;;  %v1715_v42 = vpop.f32.mrf.mxu3 }
 0x2a1   :  { %v2776_v43 = vpop.eup %2775  ;;  %v1716_v44 = vadd.f32 %v1715_v42, %v1547_v41 }
 0x2a2   :  { %1844 = vst [vmem:[%s3932_s3 + $0x1f0] sm:$0xff] %v2776_v43 }
 0x2a3   :  { %2777 = vtanh.f32 %v1716_v44 }
 0x2a9   :  { %v2778_v45 = vpop.eup %2777 }
 0x2aa   :  { %1845 = vst [vmem:[%s3932_s3 + $0x1f8] sm:$0xff] %v2778_v45 }

</bundles_post_ra>
